<compile_context>
chip_gen: v6e
topology: v6e:2x2x1
jax: 0.10.0
libtpu: 0.0.40
codegen_flags: <defaults>
</compile_context>

<pallas_src>
import functools

import jax
import jax.numpy as jnp
from jax import lax
from jax.experimental import pallas as pl
from jax.experimental.pallas import tpu as pltpu
import numpy as np

NEG_SLOPE = 0.01   # torch.nn.LeakyReLU default
MAX_VALUE = 3.8
PAD_VALUE = 2.0

C_IN, H_IN, W_IN = 6, 64, 64
C_OUT, HW_OUT = 14, 9


# ----------------------------------------------------------------------------------
# Host-side (numpy) constant builders — computed once, passed as resident VMEM inputs
# ----------------------------------------------------------------------------------
def _np_row_select(n_rows, n_cols, blocks):
    # 0/1 selection matrix A (n_rows, n_cols). For each (r0, cnt, c0, stride):
    # row r0+p (p in [0, cnt)) has a single 1 at column c0 + stride*p.
    a = np.zeros((n_rows, n_cols), np.float32)
    for (r0, cnt, c0, stride) in blocks:
        for p in range(cnt):
            a[r0 + p, c0 + stride * p] = 1.0
    return a


def _np_col_select(n_rows, n_cols, q0, cnt, stride):
    # 0/1 selection matrix B (n_rows, n_cols). Column q0+p has a single 1 at row
    # stride*p; other columns are all-zero.
    b = np.zeros((n_rows, n_cols), np.float32)
    for p in range(cnt):
        b[stride * p, q0 + p] = 1.0
    return b


@functools.lru_cache(maxsize=1)
def _build_constants():
    # Stage 1 (maxpool 64->31) fused with the spatial part of ConstantPad3d (31->35).
    a1 = _np_row_select(210, 382, [(35 * c + 2, 31, 64 * c, 2) for c in range(6)])
    b1 = _np_col_select(62, 35, 2, 31, 2)
    bg2 = np.full((210, 35), PAD_VALUE, np.float32)     # value-2 border, 0 interior
    for c in range(6):
        bg2[35 * c + 2:35 * c + 33, 2:33] = 0.0
    # Stage 3: 35 -> 17
    a3 = _np_row_select(102, 208, [(17 * c, 17, 35 * c, 2) for c in range(6)])
    b3 = _np_col_select(33, 17, 0, 17, 2)
    # Stage 4: 17 -> 8
    a4 = _np_row_select(48, 100, [(8 * c, 8, 17 * c, 2) for c in range(6)])
    b4 = _np_col_select(15, 8, 0, 8, 2)
    # Stage 6: 8 -> 3
    a6 = _np_row_select(18, 46, [(3 * c, 3, 8 * c, 2) for c in range(6)])
    b6 = _np_col_select(6, 3, 0, 3, 2)
    # Output embed: clamped real interior goes to channels 4..9, spatial [3:6, 3:6].
    er = _np_row_select(126, 18, [(9 * (4 + j) + 3, 3, 3 * j, 1) for j in range(6)])
    ec = _np_col_select(3, 9, 3, 3, 1)
    # Output background: zero ring (ZeroPad2d), value-2 frame (ConstantPad3d channels
    # + spatial padding + constant channels), 0 where the real interior lands.
    bgo = np.zeros((126, 9), np.float32)
    for ch in range(14):
        bgo[9 * ch + 1:9 * ch + 8, 1:8] = PAD_VALUE
    for ch in range(4, 10):
        bgo[9 * ch + 3:9 * ch + 6, 3:6] = 0.0
    return tuple(jnp.asarray(v) for v in
                 (a1, b1, bg2, a3, b3, a4, b4, a6, b6, er, ec, bgo))


# ----------------------------------------------------------------------------------
# Kernel
# ----------------------------------------------------------------------------------
def _wmax3(y):
    # y: (R, W) channel-stacked rows. Returns (R-2, W-2) 3x3 stride-1 window max.
    # Rows whose 3-row window crosses a channel boundary are never selected by the
    # downstream stride-2 row-selection matmuls, so stacking is safe.
    rr, ww = y.shape
    wm = ww - 2
    m = jnp.maximum(jnp.maximum(y[:, 0:wm], y[:, 1:1 + wm]), y[:, 2:2 + wm])
    rm = rr - 2
    return jnp.maximum(jnp.maximum(m[0:rm, :], m[1:1 + rm, :]), m[2:2 + rm, :])


def _mm(a, b):
    return jnp.dot(a, b, preferred_element_type=jnp.float32)


def _model_kernel(x_ref, a1_ref, b1_ref, bg2_ref, a3_ref, b3_ref, a4_ref, b4_ref,
                  a6_ref, b6_ref, er_ref, ec_ref, bgo_ref, out_ref):
    # Resident constants (fetched once; block index never changes).
    a1 = a1_ref[...]; b1 = b1_ref[...]; bg2 = bg2_ref[...]
    a3 = a3_ref[...]; b3 = b3_ref[...]
    a4 = a4_ref[...]; b4 = b4_ref[...]
    a6 = a6_ref[...]; b6 = b6_ref[...]
    er = er_ref[...]; ec = ec_ref[...]; bgo = bgo_ref[...]

    block_b = x_ref.shape[0]
    for b in range(block_b):                               # statically unrolled
        x = x_ref[b, :, :]                                 # (384, 64) = (6*64, 64)

        # Stage 1 (maxpool 3x3 s2) fused with the spatial padding of ConstantPad3d.
        # Only the 6 real channels are tracked; the 4 all-constant channels are
        # handled in the output background (2 is a fixed point of every later op).
        m1 = _wmax3(x)                                     # (382, 62)
        v2 = _mm(_mm(a1, m1), b1) + bg2                    # (210, 35): padded v2

        # Stage 3: maxpool 3x3 s2 (35 -> 17)
        m3 = _wmax3(v2)                                    # (208, 33)
        v3 = _mm(_mm(a3, m3), b3)                          # (102, 17)

        # Stage 4: maxpool 3x3 s2 (17 -> 8)
        m4 = _wmax3(v3)                                    # (100, 15)
        v4 = _mm(_mm(a4, m4), b4)                          # (48, 8)

        # Stage 5: LeakyReLU
        v5 = jnp.where(v4 >= 0, v4, NEG_SLOPE * v4)

        # Stage 6: maxpool 3x3 s2 (8 -> 3), then clamp_max
        m6 = _wmax3(v5)                                    # (46, 6)
        v6 = _mm(_mm(a6, m6), b6)                          # (18, 3)
        v6c = jnp.minimum(v6, MAX_VALUE)

        # Output compose: embed matmul is exactly 0 outside the real interior, so
        # the full (14,9,9) output is background + embedded. One dense store.
        out_ref[b, :, :] = _mm(_mm(er, v6c), ec) + bgo     # (126, 9)


# ----------------------------------------------------------------------------------
# Wrapper
# ----------------------------------------------------------------------------------
def _pick_block_b(n):
    if n < 4:
        return 1
    # Amortize per-step overhead but keep >= 2 grid steps so both v7x TCs get work.
    return max(1, min(8, n // 2))


def model_forward(x, block_b=None):
    n, c, h, w = x.shape
    assert (c, h, w) == (C_IN, H_IN, W_IN), "kernel is specialized to (*, 6, 64, 64)"
    if block_b is None:
        block_b = _pick_block_b(n)

    x_flat = x.astype(jnp.float32).reshape(n, c * h, w)    # channel-stacked rows
    n_pad = ((n + block_b - 1) // block_b) * block_b
    if n_pad != n:
        x_flat = jnp.concatenate(
            [x_flat, jnp.zeros((n_pad - n, c * h, w), jnp.float32)], axis=0)

    consts = _build_constants()
    const_specs = [pl.BlockSpec(cst.shape, lambda i: (0, 0)) for cst in consts]

    out_flat = pl.pallas_call(
        _model_kernel,
        out_shape=jax.ShapeDtypeStruct((n_pad, C_OUT * HW_OUT, HW_OUT), jnp.float32),
        grid_spec=pltpu.PrefetchScalarGridSpec(
            num_scalar_prefetch=0,
            grid=(n_pad // block_b,),
            in_specs=[pl.BlockSpec((block_b, c * h, w), lambda i: (i, 0, 0))]
                     + const_specs,
            out_specs=pl.BlockSpec((block_b, C_OUT * HW_OUT, HW_OUT),
                                   lambda i: (i, 0, 0)),
        ),
        compiler_params=pltpu.CompilerParams(dimension_semantics=("parallel",)),
    )(x_flat, *consts)

    return out_flat[:n].reshape(n, C_OUT, HW_OUT, HW_OUT)


# ----------------------------------------------------------------------------------
# Pure-JAX reference matching the PyTorch module semantics
# ----------------------------------------------------------------------------------
def _reference(x):
    def mp(v):
        return lax.reduce_window(v, -jnp.inf, lax.max,
                                 (1, 1, 3, 3), (1, 1, 2, 2), "VALID")
    v1 = mp(x)
    v2 = jnp.pad(v1, ((0, 0), (2, 2), (2, 2), (2, 2)), constant_values=PAD_VALUE)
    v3 = mp(v2)
    v4 = mp(v3)
    v5 = jnp.where(v4 >= 0, v4, NEG_SLOPE * v4)
    v6 = mp(v5)
    v7 = jnp.pad(v6, ((0, 0), (2, 2), (2, 2), (2, 2)), constant_values=PAD_VALUE)
    v8 = jnp.pad(v7, ((0, 0), (0, 0), (1, 1), (1, 1)), constant_values=0.0)
    return jnp.minimum(v8, MAX_VALUE)


if __name__ == "__main__":
    key = jax.random.PRNGKey(0)
    x = jax.random.normal(key, (2, 6, 64, 64), dtype=jnp.float32)

    out = model_forward(x)
    jax.block_until_ready(out)

    ref = _reference(x)
    np.testing.assert_allclose(np.asarray(out), np.asarray(ref), atol=1e-5, rtol=1e-5)
    print("KERNEL_OK")
</pallas_src>

<mosaic_0001>
module attributes {stable_mosaic.version = 11 : i64} {
  func.func @_model_kernel(%arg0: i32, %arg1: memref<1x384x64xf32, #tpu.memory_space<vmem>>, %arg2: memref<210x382xf32, #tpu.memory_space<vmem>>, %arg3: memref<62x35xf32, #tpu.memory_space<vmem>>, %arg4: memref<210x35xf32, #tpu.memory_space<vmem>>, %arg5: memref<102x208xf32, #tpu.memory_space<vmem>>, %arg6: memref<33x17xf32, #tpu.memory_space<vmem>>, %arg7: memref<48x100xf32, #tpu.memory_space<vmem>>, %arg8: memref<15x8xf32, #tpu.memory_space<vmem>>, %arg9: memref<18x46xf32, #tpu.memory_space<vmem>>, %arg10: memref<6x3xf32, #tpu.memory_space<vmem>>, %arg11: memref<126x18xf32, #tpu.memory_space<vmem>>, %arg12: memref<3x9xf32, #tpu.memory_space<vmem>>, %arg13: memref<126x9xf32, #tpu.memory_space<vmem>>, %arg14: memref<1x126x9xf32, #tpu.memory_space<vmem>>) attributes {dimension_semantics = [#tpu.dimension_semantics<parallel>], iteration_bounds = array<i64: 2>, scalar_prefetch = 0 : i64, scratch_operands = 0 : i64, tpu.core_type = #tpu.core_type<tc>, window_params = [{transform_indices = @transform_0, window_bounds = array<i64: 1, 384, 64>}, {pipeline_mode = #tpu.pipeline_mode<synchronous>, transform_indices = @transform_1, window_bounds = array<i64: 210, 382>}, {pipeline_mode = #tpu.pipeline_mode<synchronous>, transform_indices = @transform_2, window_bounds = array<i64: 62, 35>}, {pipeline_mode = #tpu.pipeline_mode<synchronous>, transform_indices = @transform_3, window_bounds = array<i64: 210, 35>}, {pipeline_mode = #tpu.pipeline_mode<synchronous>, transform_indices = @transform_4, window_bounds = array<i64: 102, 208>}, {pipeline_mode = #tpu.pipeline_mode<synchronous>, transform_indices = @transform_5, window_bounds = array<i64: 33, 17>}, {pipeline_mode = #tpu.pipeline_mode<synchronous>, transform_indices = @transform_6, window_bounds = array<i64: 48, 100>}, {pipeline_mode = #tpu.pipeline_mode<synchronous>, transform_indices = @transform_7, window_bounds = array<i64: 15, 8>}, {pipeline_mode = #tpu.pipeline_mode<synchronous>, transform_indices = @transform_8, window_bounds = array<i64: 18, 46>}, {pipeline_mode = #tpu.pipeline_mode<synchronous>, transform_indices = @transform_9, window_bounds = array<i64: 6, 3>}, {pipeline_mode = #tpu.pipeline_mode<synchronous>, transform_indices = @transform_10, window_bounds = array<i64: 126, 18>}, {pipeline_mode = #tpu.pipeline_mode<synchronous>, transform_indices = @transform_11, window_bounds = array<i64: 3, 9>}, {pipeline_mode = #tpu.pipeline_mode<synchronous>, transform_indices = @transform_12, window_bounds = array<i64: 126, 9>}, {transform_indices = @transform_13, window_bounds = array<i64: 1, 126, 9>}]} {
    %c0 = arith.constant 0 : index
    %c0_0 = arith.constant 0 : index
    %0 = vector.load %arg2[%c0, %c0_0] : memref<210x382xf32, #tpu.memory_space<vmem>>, vector<210x382xf32>
    %c0_1 = arith.constant 0 : index
    %c0_2 = arith.constant 0 : index
    %1 = vector.load %arg3[%c0_1, %c0_2] : memref<62x35xf32, #tpu.memory_space<vmem>>, vector<62x35xf32>
    %c0_3 = arith.constant 0 : index
    %c0_4 = arith.constant 0 : index
    %2 = vector.load %arg4[%c0_3, %c0_4] : memref<210x35xf32, #tpu.memory_space<vmem>>, vector<210x35xf32>
    %c0_5 = arith.constant 0 : index
    %c0_6 = arith.constant 0 : index
    %3 = vector.load %arg5[%c0_5, %c0_6] : memref<102x208xf32, #tpu.memory_space<vmem>>, vector<102x208xf32>
    %c0_7 = arith.constant 0 : index
    %c0_8 = arith.constant 0 : index
    %4 = vector.load %arg6[%c0_7, %c0_8] : memref<33x17xf32, #tpu.memory_space<vmem>>, vector<33x17xf32>
    %c0_9 = arith.constant 0 : index
    %c0_10 = arith.constant 0 : index
    %5 = vector.load %arg7[%c0_9, %c0_10] : memref<48x100xf32, #tpu.memory_space<vmem>>, vector<48x100xf32>
    %c0_11 = arith.constant 0 : index
    %c0_12 = arith.constant 0 : index
    %6 = vector.load %arg8[%c0_11, %c0_12] : memref<15x8xf32, #tpu.memory_space<vmem>>, vector<15x8xf32>
    %c0_13 = arith.constant 0 : index
    %c0_14 = arith.constant 0 : index
    %7 = vector.load %arg9[%c0_13, %c0_14] : memref<18x46xf32, #tpu.memory_space<vmem>>, vector<18x46xf32>
    %c0_15 = arith.constant 0 : index
    %c0_16 = arith.constant 0 : index
    %8 = vector.load %arg10[%c0_15, %c0_16] : memref<6x3xf32, #tpu.memory_space<vmem>>, vector<6x3xf32>
    %c0_17 = arith.constant 0 : index
    %c0_18 = arith.constant 0 : index
    %9 = vector.load %arg11[%c0_17, %c0_18] : memref<126x18xf32, #tpu.memory_space<vmem>>, vector<126x18xf32>
    %c0_19 = arith.constant 0 : index
    %c0_20 = arith.constant 0 : index
    %10 = vector.load %arg12[%c0_19, %c0_20] : memref<3x9xf32, #tpu.memory_space<vmem>>, vector<3x9xf32>
    %c0_21 = arith.constant 0 : index
    %c0_22 = arith.constant 0 : index
    %11 = vector.load %arg13[%c0_21, %c0_22] : memref<126x9xf32, #tpu.memory_space<vmem>>, vector<126x9xf32>
    %c0_23 = arith.constant 0 : index
    %c0_24 = arith.constant 0 : index
    %c0_25 = arith.constant 0 : index
    %12 = vector.load %arg1[%c0_23, %c0_24, %c0_25] : memref<1x384x64xf32, #tpu.memory_space<vmem>>, vector<1x384x64xf32>
    %13 = vector.shape_cast %12 : vector<1x384x64xf32> to vector<384x64xf32>
    %14 = vector.extract_strided_slice %13 {offsets = [0, 0], sizes = [384, 62], strides = [1, 1]} : vector<384x64xf32> to vector<384x62xf32>
    %15 = vector.extract_strided_slice %13 {offsets = [0, 1], sizes = [384, 62], strides = [1, 1]} : vector<384x64xf32> to vector<384x62xf32>
    %16 = arith.maximumf %14, %15 : vector<384x62xf32>
    %17 = vector.extract_strided_slice %13 {offsets = [0, 2], sizes = [384, 62], strides = [1, 1]} : vector<384x64xf32> to vector<384x62xf32>
    %18 = arith.maximumf %16, %17 : vector<384x62xf32>
    %19 = vector.extract_strided_slice %18 {offsets = [0, 0], sizes = [382, 62], strides = [1, 1]} : vector<384x62xf32> to vector<382x62xf32>
    %20 = vector.extract_strided_slice %18 {offsets = [1, 0], sizes = [382, 62], strides = [1, 1]} : vector<384x62xf32> to vector<382x62xf32>
    %21 = arith.maximumf %19, %20 : vector<382x62xf32>
    %22 = vector.extract_strided_slice %18 {offsets = [2, 0], sizes = [382, 62], strides = [1, 1]} : vector<384x62xf32> to vector<382x62xf32>
    %23 = arith.maximumf %21, %22 : vector<382x62xf32>
    %cst = arith.constant dense<0.000000e+00> : vector<210x62xf32>
    %24 = tpu.matmul %0, %23, %cst {dimension_numbers = #tpu.dot_dimension_numbers<[1], [0], [0], [1], [0, 0, 1, 1], [], []>} : vector<210x382xf32>, vector<382x62xf32>, vector<210x62xf32> -> vector<210x62xf32>
    %cst_26 = arith.constant dense<0.000000e+00> : vector<210x35xf32>
    %25 = tpu.matmul %24, %1, %cst_26 {dimension_numbers = #tpu.dot_dimension_numbers<[1], [0], [0], [1], [0, 0, 1, 1], [], []>} : vector<210x62xf32>, vector<62x35xf32>, vector<210x35xf32> -> vector<210x35xf32>
    %26 = arith.addf %25, %2 : vector<210x35xf32>
    %27 = vector.extract_strided_slice %26 {offsets = [0, 0], sizes = [210, 33], strides = [1, 1]} : vector<210x35xf32> to vector<210x33xf32>
    %28 = vector.extract_strided_slice %26 {offsets = [0, 1], sizes = [210, 33], strides = [1, 1]} : vector<210x35xf32> to vector<210x33xf32>
    %29 = arith.maximumf %27, %28 : vector<210x33xf32>
    %30 = vector.extract_strided_slice %26 {offsets = [0, 2], sizes = [210, 33], strides = [1, 1]} : vector<210x35xf32> to vector<210x33xf32>
    %31 = arith.maximumf %29, %30 : vector<210x33xf32>
    %32 = vector.extract_strided_slice %31 {offsets = [0, 0], sizes = [208, 33], strides = [1, 1]} : vector<210x33xf32> to vector<208x33xf32>
    %33 = vector.extract_strided_slice %31 {offsets = [1, 0], sizes = [208, 33], strides = [1, 1]} : vector<210x33xf32> to vector<208x33xf32>
    %34 = arith.maximumf %32, %33 : vector<208x33xf32>
    %35 = vector.extract_strided_slice %31 {offsets = [2, 0], sizes = [208, 33], strides = [1, 1]} : vector<210x33xf32> to vector<208x33xf32>
    %36 = arith.maximumf %34, %35 : vector<208x33xf32>
    %cst_27 = arith.constant dense<0.000000e+00> : vector<102x33xf32>
    %37 = tpu.matmul %3, %36, %cst_27 {dimension_numbers = #tpu.dot_dimension_numbers<[1], [0], [0], [1], [0, 0, 1, 1], [], []>} : vector<102x208xf32>, vector<208x33xf32>, vector<102x33xf32> -> vector<102x33xf32>
    %cst_28 = arith.constant dense<0.000000e+00> : vector<102x17xf32>
    %38 = tpu.matmul %37, %4, %cst_28 {dimension_numbers = #tpu.dot_dimension_numbers<[1], [0], [0], [1], [0, 0, 1, 1], [], []>} : vector<102x33xf32>, vector<33x17xf32>, vector<102x17xf32> -> vector<102x17xf32>
    %39 = vector.extract_strided_slice %38 {offsets = [0, 0], sizes = [102, 15], strides = [1, 1]} : vector<102x17xf32> to vector<102x15xf32>
    %40 = vector.extract_strided_slice %38 {offsets = [0, 1], sizes = [102, 15], strides = [1, 1]} : vector<102x17xf32> to vector<102x15xf32>
    %41 = arith.maximumf %39, %40 : vector<102x15xf32>
    %42 = vector.extract_strided_slice %38 {offsets = [0, 2], sizes = [102, 15], strides = [1, 1]} : vector<102x17xf32> to vector<102x15xf32>
    %43 = arith.maximumf %41, %42 : vector<102x15xf32>
    %44 = vector.extract_strided_slice %43 {offsets = [0, 0], sizes = [100, 15], strides = [1, 1]} : vector<102x15xf32> to vector<100x15xf32>
    %45 = vector.extract_strided_slice %43 {offsets = [1, 0], sizes = [100, 15], strides = [1, 1]} : vector<102x15xf32> to vector<100x15xf32>
    %46 = arith.maximumf %44, %45 : vector<100x15xf32>
    %47 = vector.extract_strided_slice %43 {offsets = [2, 0], sizes = [100, 15], strides = [1, 1]} : vector<102x15xf32> to vector<100x15xf32>
    %48 = arith.maximumf %46, %47 : vector<100x15xf32>
    %cst_29 = arith.constant dense<0.000000e+00> : vector<48x15xf32>
    %49 = tpu.matmul %5, %48, %cst_29 {dimension_numbers = #tpu.dot_dimension_numbers<[1], [0], [0], [1], [0, 0, 1, 1], [], []>} : vector<48x100xf32>, vector<100x15xf32>, vector<48x15xf32> -> vector<48x15xf32>
    %cst_30 = arith.constant dense<0.000000e+00> : vector<48x8xf32>
    %50 = tpu.matmul %49, %6, %cst_30 {dimension_numbers = #tpu.dot_dimension_numbers<[1], [0], [0], [1], [0, 0, 1, 1], [], []>} : vector<48x15xf32>, vector<15x8xf32>, vector<48x8xf32> -> vector<48x8xf32>
    %cst_31 = arith.constant 0.000000e+00 : f32
    %51 = vector.broadcast %cst_31 : f32 to vector<48x8xf32>
    %52 = arith.cmpf oge, %50, %51 : vector<48x8xf32>
    %cst_32 = arith.constant 0.00999999977 : f32
    %53 = vector.broadcast %cst_32 : f32 to vector<48x8xf32>
    %54 = arith.mulf %53, %50 : vector<48x8xf32>
    %55 = arith.select %52, %50, %54 : vector<48x8xi1>, vector<48x8xf32>
    %56 = vector.extract_strided_slice %55 {offsets = [0, 0], sizes = [48, 6], strides = [1, 1]} : vector<48x8xf32> to vector<48x6xf32>
    %57 = vector.extract_strided_slice %55 {offsets = [0, 1], sizes = [48, 6], strides = [1, 1]} : vector<48x8xf32> to vector<48x6xf32>
    %58 = arith.maximumf %56, %57 : vector<48x6xf32>
    %59 = vector.extract_strided_slice %55 {offsets = [0, 2], sizes = [48, 6], strides = [1, 1]} : vector<48x8xf32> to vector<48x6xf32>
    %60 = arith.maximumf %58, %59 : vector<48x6xf32>
    %61 = vector.extract_strided_slice %60 {offsets = [0, 0], sizes = [46, 6], strides = [1, 1]} : vector<48x6xf32> to vector<46x6xf32>
    %62 = vector.extract_strided_slice %60 {offsets = [1, 0], sizes = [46, 6], strides = [1, 1]} : vector<48x6xf32> to vector<46x6xf32>
    %63 = arith.maximumf %61, %62 : vector<46x6xf32>
    %64 = vector.extract_strided_slice %60 {offsets = [2, 0], sizes = [46, 6], strides = [1, 1]} : vector<48x6xf32> to vector<46x6xf32>
    %65 = arith.maximumf %63, %64 : vector<46x6xf32>
    %cst_33 = arith.constant dense<0.000000e+00> : vector<18x6xf32>
    %66 = tpu.matmul %7, %65, %cst_33 {dimension_numbers = #tpu.dot_dimension_numbers<[1], [0], [0], [1], [0, 0, 1, 1], [], []>} : vector<18x46xf32>, vector<46x6xf32>, vector<18x6xf32> -> vector<18x6xf32>
    %cst_34 = arith.constant dense<0.000000e+00> : vector<18x3xf32>
    %67 = tpu.matmul %66, %8, %cst_34 {dimension_numbers = #tpu.dot_dimension_numbers<[1], [0], [0], [1], [0, 0, 1, 1], [], []>} : vector<18x6xf32>, vector<6x3xf32>, vector<18x3xf32> -> vector<18x3xf32>
    %cst_35 = arith.constant 3.800000e+00 : f32
    %68 = vector.broadcast %cst_35 : f32 to vector<18x3xf32>
    %69 = arith.minimumf %67, %68 : vector<18x3xf32>
    %cst_36 = arith.constant dense<0.000000e+00> : vector<126x3xf32>
    %70 = tpu.matmul %9, %69, %cst_36 {dimension_numbers = #tpu.dot_dimension_numbers<[1], [0], [0], [1], [0, 0, 1, 1], [], []>} : vector<126x18xf32>, vector<18x3xf32>, vector<126x3xf32> -> vector<126x3xf32>
    %cst_37 = arith.constant dense<0.000000e+00> : vector<126x9xf32>
    %71 = tpu.matmul %70, %10, %cst_37 {dimension_numbers = #tpu.dot_dimension_numbers<[1], [0], [0], [1], [0, 0, 1, 1], [], []>} : vector<126x3xf32>, vector<3x9xf32>, vector<126x9xf32> -> vector<126x9xf32>
    %72 = arith.addf %71, %11 : vector<126x9xf32>
    %c0_38 = arith.constant 0 : index
    %c0_39 = arith.constant 0 : index
    %c0_40 = arith.constant 0 : index
    %73 = vector.load %arg14[%c0_38, %c0_39, %c0_40] : memref<1x126x9xf32, #tpu.memory_space<vmem>>, vector<1x126x9xf32>
    %74 = vector.shape_cast %73 : vector<1x126x9xf32> to vector<126x9xf32>
    %75 = vector.shape_cast %72 : vector<126x9xf32> to vector<1x126x9xf32>
    tpu.vector_store %arg14[%c0_38, %c0_39, %c0_40], %75 {strides = array<i32>} : memref<1x126x9xf32, #tpu.memory_space<vmem>>, vector<1x126x9xf32>,
    return
  }
  func.func @transform_0(%arg0: i32) -> (i32, i32, i32) {
    %c0_i32 = arith.constant 0 : i32
    %c0_i32_0 = arith.constant 0 : i32
    %c0_i32_1 = arith.constant 0 : i32
    return %arg0, %c0_i32, %c0_i32_0 : i32, i32, i32
  }
  func.func @transform_1(%arg0: i32) -> (i32, i32) {
    %c0_i32 = arith.constant 0 : i32
    %c0_i32_0 = arith.constant 0 : i32
    %c0_i32_1 = arith.constant 0 : i32
    return %c0_i32, %c0_i32_0 : i32, i32
  }
  func.func @transform_2(%arg0: i32) -> (i32, i32) {
    %c0_i32 = arith.constant 0 : i32
    %c0_i32_0 = arith.constant 0 : i32
    %c0_i32_1 = arith.constant 0 : i32
    return %c0_i32, %c0_i32_0 : i32, i32
  }
  func.func @transform_3(%arg0: i32) -> (i32, i32) {
    %c0_i32 = arith.constant 0 : i32
    %c0_i32_0 = arith.constant 0 : i32
    %c0_i32_1 = arith.constant 0 : i32
    return %c0_i32, %c0_i32_0 : i32, i32
  }
  func.func @transform_4(%arg0: i32) -> (i32, i32) {
    %c0_i32 = arith.constant 0 : i32
    %c0_i32_0 = arith.constant 0 : i32
    %c0_i32_1 = arith.constant 0 : i32
    return %c0_i32, %c0_i32_0 : i32, i32
  }
  func.func @transform_5(%arg0: i32) -> (i32, i32) {
    %c0_i32 = arith.constant 0 : i32
    %c0_i32_0 = arith.constant 0 : i32
    %c0_i32_1 = arith.constant 0 : i32
    return %c0_i32, %c0_i32_0 : i32, i32
  }
  func.func @transform_6(%arg0: i32) -> (i32, i32) {
    %c0_i32 = arith.constant 0 : i32
    %c0_i32_0 = arith.constant 0 : i32
    %c0_i32_1 = arith.constant 0 : i32
    return %c0_i32, %c0_i32_0 : i32, i32
  }
  func.func @transform_7(%arg0: i32) -> (i32, i32) {
    %c0_i32 = arith.constant 0 : i32
    %c0_i32_0 = arith.constant 0 : i32
    %c0_i32_1 = arith.constant 0 : i32
    return %c0_i32, %c0_i32_0 : i32, i32
  }
  func.func @transform_8(%arg0: i32) -> (i32, i32) {
    %c0_i32 = arith.constant 0 : i32
    %c0_i32_0 = arith.constant 0 : i32
    %c0_i32_1 = arith.constant 0 : i32
    return %c0_i32, %c0_i32_0 : i32, i32
  }
  func.func @transform_9(%arg0: i32) -> (i32, i32) {
    %c0_i32 = arith.constant 0 : i32
    %c0_i32_0 = arith.constant 0 : i32
    %c0_i32_1 = arith.constant 0 : i32
    return %c0_i32, %c0_i32_0 : i32, i32
  }
  func.func @transform_10(%arg0: i32) -> (i32, i32) {
    %c0_i32 = arith.constant 0 : i32
    %c0_i32_0 = arith.constant 0 : i32
    %c0_i32_1 = arith.constant 0 : i32
    return %c0_i32, %c0_i32_0 : i32, i32
  }
  func.func @transform_11(%arg0: i32) -> (i32, i32) {
    %c0_i32 = arith.constant 0 : i32
    %c0_i32_0 = arith.constant 0 : i32
    %c0_i32_1 = arith.constant 0 : i32
    return %c0_i32, %c0_i32_0 : i32, i32
  }
  func.func @transform_12(%arg0: i32) -> (i32, i32) {
    %c0_i32 = arith.constant 0 : i32
    %c0_i32_0 = arith.constant 0 : i32
    %c0_i32_1 = arith.constant 0 : i32
    return %c0_i32, %c0_i32_0 : i32, i32
  }
  func.func @transform_13(%arg0: i32) -> (i32, i32, i32) {
    %c0_i32 = arith.constant 0 : i32
    %c0_i32_0 = arith.constant 0 : i32
    %c0_i32_1 = arith.constant 0 : i32
    return %arg0, %c0_i32, %c0_i32_0 : i32, i32, i32
  }
}

</mosaic_0001>

<bundles_post_ra>
// kernel: tpu_custom_call.1
= control target key start
LH: loop header
LB: loop body
LE: loop exit
PB: predicated region body
PF: predicated region fallthrough
CT: control target
= control target key end

     0   :  { %s5200_s25 = smov 0   ;;  %s7232_s0 = inlined_call_operand.vmem [shape: f32[2,384,64], index: 0, kind: input, shape index: {}]   ;;  %s7233_s1 = inlined_call_operand.vmem [shape: f32[210,382], index: 1, kind: input, shape index: {}]   ;;  %s7234_s2 = inlined_call_operand.vmem [shape: f32[62,35], index: 2, kind: input, shape index: {}]   ;;  %s7235_s3 = inlined_call_operand.vmem [shape: f32[210,35], index: 3, kind: input, shape index: {}]   ;;  %s7236_s4 = inlined_call_operand.vmem [shape: f32[102,208], index: 4, kind: input, shape index: {}]   ;;  %s7237_s5 = inlined_call_operand.vmem [shape: f32[33,17], index: 5, kind: input, shape index: {}]   ;;  %s7238_s6 = inlined_call_operand.vmem [shape: f32[48,100], index: 6, kind: input, shape index: {}]   ;;  %s7239_s7 = inlined_call_operand.vmem [shape: f32[15,8], index: 7, kind: input, shape index: {}]   ;;  %s7240_s8 = inlined_call_operand.vmem [shape: f32[18,46], index: 8, kind: input, shape index: {}]   ;;  %s7241_s9 = inlined_call_operand.vmem [shape: f32[6,3], index: 9, kind: input, shape index: {}]   ;;  %s7242_s10 = inlined_call_operand.vmem [shape: f32[126,18], index: 10, kind: input, shape index: {}]   ;;  %s7243_s11 = inlined_call_operand.vmem [shape: f32[3,9], index: 11, kind: input, shape index: {}]   ;;  %s7244_s12 = inlined_call_operand.vmem [shape: f32[126,9], index: 12, kind: input, shape index: {}]   ;;  %s7245_s13 = inlined_call_operand.vmem [shape: f32[2,126,9], index: 13, kind: output, shape index: {}]  }
   0x1 LB: > { %s4388_s26 = sadd.s32 4294967295, %s5124_s25   ;;  %p4392_p0 = scmp.ge.s32.totalorder %s5124_s25, 1  ;;  %s5124_s25 = sphi %s5200_s25, %s23_s25  }
   0x2   : > { %p387_p1 = scmp.lt.s32.totalorder %s5124_s25, 3 }
   0x4   : > { %p388_p2 = pnand %p4392_p0, %p387_p1 }
   0x5   : > { %p431_p3 = scmp.lt.s32.totalorder (!%p388_p2), %s4388_s26, 1  ;;  %s5126_s14 = smov (!%p388_p2), 127  }
   0x6   : > { %391 = sbr.rel (%p388_p2) target bundleno = 2932 (0xb74), region = 72  ;;  %s5128_s15 = smov (!%p388_p2), 126  }
   0xb   : > { %s7249_s26 = smov (!%p431_p3, %s4388_s26), 1  ;;  %v5127_v3 = vmov 0.0   ;;  %vm1161_vm0 = vcmask 1046528   ;;  %vm1353_vm1 = vcmask 1045504   ;;  %vm5129_vm2 = vmmov 0  }
   0xc   : > { %s5105_s27 = smul.u32 384, %s7249_s26  ;;  %1630 = vmatprep.subr.mxu0 %v5127_v3  ;;  %4710 = vmatprep.subr.mxu1 %v5127_v3  ;;  %vm1545_vm3 = vcmask 1031168   ;;  %vm2030_vm4 = vcmask 506880   ;;  %vm2795_vm5 = vcmask 654336   ;;  %vm3005_vm6 = vcmask 1040384   ;;  %s4537_s24 = sshll.u32 %s7249_s26, 7 }
   0xd   : > { %4742 = vmatprep.mubr.msk.f32.mxu1 %vm5129_vm2, %v5127_v3  ;;  %vm2965_vm7 = vcmask 269312   ;;  %vm3371_vm8 = vcmask 818176   ;;  %vm3390_vm9 = vcmask 1043456   ;;  %vm3489_vm10 = vcmask 121856  }
   0xe   : > { %s5214_s30 = scalar_lea.vmem %s7232_s0, %s5105_s27 }
   0xf   : > { %v5217_v0 = vld [vmem:[%s5214_s30 + $0x78] sm:$0xff]  ;;  %v5220_v1 = vld [vmem:[%s5214_s30 + $0x70] sm:$0xff]  ;;  %v5227_v2 = vld [vmem:[%s5214_s30 + $0x80] sm:$0xff] }
  0x10   : > { %759 = vrot.lane.b32.xlu0 %v5217_v0, %s5126_s14  ;;  %757 = vrot.lane.b32.xlu1 %v5220_v1, %s5126_s14  ;;  %v5236_v4 = vld [vmem:[%s5214_s30 + $0x68] sm:$0xff]  ;;  %v5243_v5 = vld [vmem:[%s5214_s30 + $0x60] sm:$0xff] }
  0x11   : > { %v5250_v6 = vld [vmem:[%s5214_s30 + $0x58] sm:$0xff]  ;;  %v5257_v7 = vld [vmem:[%s5214_s30 + $0x50] sm:$0xff]  ;;  %v5264_v8 = vld [vmem:[%s5214_s30 + $0x48] sm:$0xff] }
  0x12   : > { %v5271_v9 = vld [vmem:[%s5214_s30 + $0x40] sm:$0xff]  ;;  %v5278_v10 = vld [vmem:[%s5214_s30 + $0x38] sm:$0xff]  ;;  %v5285_v11 = vld [vmem:[%s5214_s30 + $0x30] sm:$0xff] }
  0x13   : > { %v5292_v12 = vld [vmem:[%s5214_s30 + $0x28] sm:$0xff]  ;;  %v5299_v13 = vld [vmem:[%s5214_s30 + $0x20] sm:$0xff]  ;;  %v5306_v14 = vld [vmem:[%s5214_s30 + $0x18] sm:$0xff] }
  0x14   : > { %761 = vrot.lane.b32.xlu0 %v5227_v2, %s5126_s14  ;;  %951 = vrot.lane.b32.xlu1 %v5217_v0, %s5128_s15  ;;  %v5313_v15 = vld [vmem:[%s5214_s30 + $0x10] sm:$0xff]  ;;  %v5320_v16 = vld [vmem:[%s5214_s30 + $0x8] sm:$0xff] }
  0x15   : > { %v5327_v17 = vld [vmem:[%s5214_s30] sm:$0xff]  ;;  %v5334_v18 = vld [vmem:[%s5214_s30 + $0xf8] sm:$0xff]  ;;  %v5351_v21 = vld [vmem:[%s5214_s30 + $0xf0] sm:$0xff] }
  0x16   : > { %v5341_v19 = vld [vmem:[%s5214_s30 + $0x100] sm:$0xff]  ;;  %v5348_v20 = vld [vmem:[%s5214_s30 + $0x178] sm:$0xff]  ;;  %v5358_v22 = vld [vmem:[%s5214_s30 + $0x170] sm:$0xff] }
  0x17   : > { %v5369_v23 = vld [vmem:[%s5214_s30 + $0xe8] sm:$0xff]  ;;  %v5383_v25 = vld [vmem:[%s5214_s30 + $0xe0] sm:$0xff]  ;;  %v5397_v27 = vld [vmem:[%s5214_s30 + $0xd8] sm:$0xff] }
  0x18   : > { %953 = vrot.lane.b32.xlu0 %v5227_v2, %s5128_s15  ;;  %755 = vrot.lane.b32.xlu1 %v5236_v4, %s5126_s14  ;;  %v5372_v24 = vld [vmem:[%s5214_s30 + $0x168] sm:$0xff]  ;;  %v5386_v26 = vld [vmem:[%s5214_s30 + $0x160] sm:$0xff] }
  0x19   : > { %v5400_v28 = vld [vmem:[%s5214_s30 + $0x158] sm:$0xff]  ;;  %v5411_v29 = vld [vmem:[%s5214_s30 + $0xd0] sm:$0xff]  ;;  %v5425_v31 = vld [vmem:[%s5214_s30 + $0xc8] sm:$0xff] }
  0x1a   : > { %v5414_v30 = vld [vmem:[%s5214_s30 + $0x150] sm:$0xff]  ;;  %v5428_v32 = vld [vmem:[%s5214_s30 + $0x148] sm:$0xff]  ;;  %v5441_v40 = vld [vmem:[%s5214_s30 + $0xc0] sm:$0xff] }
  0x1b   : > { %v5444_v41 = vld [vmem:[%s5214_s30 + $0x140] sm:$0xff]  ;;  %v5467_v59 = vld [vmem:[%s5214_s30 + $0xb8] sm:$0xff] }
  0x1c   : > { %949 = vrot.lane.b32.xlu0 %v5220_v1, %s5128_s15  ;;  %753 = vrot.lane.b32.xlu1 %v5243_v5, %s5126_s14  ;;  %v5470_v63 = vld [vmem:[%s5214_s30 + $0x138] sm:$0xff] }
  0x20   : > { %947 = vrot.lane.b32.xlu0 %v5236_v4, %s5128_s15  ;;  %751 = vrot.lane.b32.xlu1 %v5250_v6, %s5126_s14 }
  0x24   : > { %945 = vrot.lane.b32.xlu0 %v5243_v5, %s5128_s15  ;;  %749 = vrot.lane.b32.xlu1 %v5257_v7, %s5126_s14 }
  0x28   : > { %943 = vrot.lane.b32.xlu0 %v5250_v6, %s5128_s15  ;;  %747 = vrot.lane.b32.xlu1 %v5264_v8, %s5126_s14 }
  0x2c   : > { %941 = vrot.lane.b32.xlu0 %v5257_v7, %s5128_s15  ;;  %745 = vrot.lane.b32.xlu1 %v5271_v9, %s5126_s14 }
  0x30   : > { %939 = vrot.lane.b32.xlu0 %v5264_v8, %s5128_s15  ;;  %743 = vrot.lane.b32.xlu1 %v5278_v10, %s5126_s14 }
  0x34   : > { %937 = vrot.lane.b32.xlu0 %v5271_v9, %s5128_s15  ;;  %741 = vrot.lane.b32.xlu1 %v5285_v11, %s5126_s14 }
  0x38   : > { %935 = vrot.lane.b32.xlu0 %v5278_v10, %s5128_s15  ;;  %739 = vrot.lane.b32.xlu1 %v5292_v12, %s5126_s14 }
  0x3c   : > { %933 = vrot.lane.b32.xlu0 %v5285_v11, %s5128_s15  ;;  %737 = vrot.lane.b32.xlu1 %v5299_v13, %s5126_s14 }
  0x40   : > { %931 = vrot.lane.b32.xlu0 %v5292_v12, %s5128_s15  ;;  %735 = vrot.lane.b32.xlu1 %v5306_v14, %s5126_s14 }
  0x44   : > { %929 = vrot.lane.b32.xlu0 %v5299_v13, %s5128_s15  ;;  %733 = vrot.lane.b32.xlu1 %v5313_v15, %s5126_s14 }
  0x48   : > { %927 = vrot.lane.b32.xlu0 %v5306_v14, %s5128_s15  ;;  %731 = vrot.lane.b32.xlu1 %v5320_v16, %s5126_s14 }
  0x4c   : > { %925 = vrot.lane.b32.xlu0 %v5313_v15, %s5128_s15  ;;  %729 = vrot.lane.b32.xlu1 %v5327_v17, %s5126_s14 }
  0x50   : > { %923 = vrot.lane.b32.xlu0 %v5320_v16, %s5128_s15  ;;  %791 = vrot.lane.b32.xlu1 %v5334_v18, %s5126_s14 }
  0x54   : > { %793 = vrot.lane.b32.xlu0 %v5341_v19, %s5126_s14  ;;  %921 = vrot.lane.b32.xlu1 %v5327_v17, %s5128_s15 }
  0x58   : > { %823 = vrot.lane.b32.xlu0 %v5348_v20, %s5126_s14  ;;  %789 = vrot.lane.b32.xlu1 %v5351_v21, %s5126_s14 }
  0x5c   : > { %821 = vrot.lane.b32.xlu0 %v5358_v22, %s5126_s14  ;;  %983 = vrot.lane.b32.xlu1 %v5334_v18, %s5128_s15 }
  0x60   : > { %985 = vrot.lane.b32.xlu0 %v5341_v19, %s5128_s15  ;;  %1015 = vrot.lane.b32.xlu1 %v5348_v20, %s5128_s15 }
  0x64   : > { %787 = vrot.lane.b32.xlu0 %v5369_v23, %s5126_s14  ;;  %819 = vrot.lane.b32.xlu1 %v5372_v24, %s5126_s14 }
  0x68   : > { %981 = vrot.lane.b32.xlu0 %v5351_v21, %s5128_s15  ;;  %1013 = vrot.lane.b32.xlu1 %v5358_v22, %s5128_s15 }
  0x6c   : > { %785 = vrot.lane.b32.xlu0 %v5383_v25, %s5126_s14  ;;  %817 = vrot.lane.b32.xlu1 %v5386_v26, %s5126_s14 }
  0x70   : > { %979 = vrot.lane.b32.xlu0 %v5369_v23, %s5128_s15  ;;  %1011 = vrot.lane.b32.xlu1 %v5372_v24, %s5128_s15 }
  0x74   : > { %783 = vrot.lane.b32.xlu0 %v5397_v27, %s5126_s14  ;;  %815 = vrot.lane.b32.xlu1 %v5400_v28, %s5126_s14 }
  0x78   : > { %977 = vrot.lane.b32.xlu0 %v5383_v25, %s5128_s15  ;;  %1009 = vrot.lane.b32.xlu1 %v5386_v26, %s5128_s15 }
  0x7c   : > { %781 = vrot.lane.b32.xlu0 %v5411_v29, %s5126_s14  ;;  %813 = vrot.lane.b32.xlu1 %v5414_v30, %s5126_s14 }
  0x80   : > { %975 = vrot.lane.b32.xlu0 %v5397_v27, %s5128_s15  ;;  %1007 = vrot.lane.b32.xlu1 %v5400_v28, %s5128_s15 }
  0x82   : > { %v760_v33 = vpop.permute.xlu0 %759  ;;  %v758_v34 = vpop.permute.xlu1 %757 }
  0x83   : > { %v888_v37 = vmax.f32 %v5217_v0, %v760_v33  ;;  %v887_v45 = vmax.f32 %v5220_v1, %v758_v34 }
  0x84   : > { %779 = vrot.lane.b32.xlu0 %v5425_v31, %s5126_s14  ;;  %811 = vrot.lane.b32.xlu1 %v5428_v32, %s5126_s14 }
  0x86   : > { %v762_v35 = vpop.permute.xlu0 %761  ;;  %v952_v36 = vpop.permute.xlu1 %951 }
  0x87   : > { %v889_v38 = vmax.f32 %v5227_v2, %v762_v35  ;;  %v1080_v39 = vmax.f32 %v888_v37, %v952_v36 }
  0x88   : > { %973 = vrot.lane.b32.xlu0 %v5411_v29, %s5128_s15  ;;  %1005 = vrot.lane.b32.xlu1 %v5414_v30, %s5128_s15 }
  0x89   : > { %v1191_v46 = vrot.slane %v1080_v39, 1  ;;  %v1383_v51 = vrot.slane %v1080_v39, 2 }
  0x8a   : > { %v954_v42 = vpop.permute.xlu0 %953  ;;  %v756_v43 = vpop.permute.xlu1 %755 }
  0x8b   : > { %v5446_v44 = vmax.f32 %v889_v38, %v954_v42  ;;  %v886_v55 = vmax.f32 %v5236_v4, %v756_v43 }
  0x8c   : > { %777 = vrot.lane.b32.xlu0 %v5441_v40, %s5126_s14  ;;  %809 = vrot.lane.b32.xlu1 %v5444_v41, %s5126_s14 }
  0x8d   : > { %v1193_v47 = vrot.slane %v5446_v44, 1  ;;  %v1385_v48 = vrot.slane %v5446_v44, 2 }
  0x8e   : > { %v950_v49 = vpop.permute.xlu0 %949  ;;  %v754_v50 = vpop.permute.xlu1 %753 }
  0x8f   : > { %v1079_v52 = vmax.f32 %v887_v45, %v950_v49  ;;  %v1194_v53 = vsel %vm1161_vm0, %v1191_v46, %v1193_v47  ;;  %v1386_v58 = vsel %vm1353_vm1, %v1383_v51, %v1385_v48  ;;  %v885_v4 = vmax.f32 %v5243_v5, %v754_v50  ;;  %v5489_v50 = vld [vmem:[%s5214_s30 + $0xb0] sm:$0xff] }
  0x90   : > { %971 = vrot.lane.b32.xlu0 %v5425_v31, %s5128_s15  ;;  %1003 = vrot.lane.b32.xlu1 %v5428_v32, %s5128_s15  ;;  %v1320_v54 = vmax.f32 %v1080_v39, %v1194_v53 }
  0x91   : > { %v1189_v56 = vrot.slane %v1079_v52, 1  ;;  %v1381_v57 = vrot.slane %v1079_v52, 2 }
  0x92   : > { %v948_v60 = vpop.permute.xlu0 %947  ;;  %v752_v61 = vpop.permute.xlu1 %751  ;;  %v1512_v62 = vmax.f32 %v1320_v54, %v1386_v58  ;;  %v5492_v54 = vld [vmem:[%s5214_s30 + $0x130] sm:$0xff] }
  0x93   : > { %v1078_v0 = vmax.f32 %v886_v55, %v948_v60  ;;  %v1192_v1 = vsel %vm1161_vm0, %v1189_v56, %v1191_v46  ;;  %v1384_v35 = vsel %vm1353_vm1, %v1381_v57, %v1383_v51  ;;  %v884_v43 = vmax.f32 %v5250_v6, %v752_v61 }
  0x94   : > { %1631 = vmatpush1.msra.mxu0 %v1512_v62  ;;  %775 = vrot.lane.b32.xlu0 %v5467_v59, %s5126_s14  ;;  %v1319_v2 = vmax.f32 %v1079_v52, %v1192_v1 }
  0x95   : > { %v1187_v33 = vrot.slane %v1078_v0, 1  ;;  %v1379_v34 = vrot.slane %v1078_v0, 2  ;;  %807 = vrot.lane.b32.xlu1 %v5470_v63, %s5126_s14  ;;  %1632 = vmatprep.subr.mxu0 %v5127_v3 }
  0x96   : > { %v946_v36 = vpop.permute.xlu0 %945  ;;  %v750_v37 = vpop.permute.xlu1 %749  ;;  %v1511_v38 = vmax.f32 %v1319_v2, %v1384_v35 }
  0x97   : > { %v1077_v39 = vmax.f32 %v885_v4, %v946_v36  ;;  %v1190_v42 = vsel %vm1161_vm0, %v1187_v33, %v1189_v56  ;;  %v1382_v49 = vsel %vm1353_vm1, %v1379_v34, %v1381_v57  ;;  %v883_v58 = vmax.f32 %v5257_v7, %v750_v37  ;;  %v5511_v37 = vld [vmem:[%s5214_s30 + $0xa8] sm:$0xff] }
  0x98   : > { %1633 = vmatpush1.msra.mxu0 %v1511_v38  ;;  %969 = vrot.lane.b32.xlu0 %v5441_v40, %s5128_s15  ;;  %v1318_v5 = vmax.f32 %v1078_v0, %v1190_v42 }
  0x99   : > { %v1185_v45 = vrot.slane %v1077_v39, 1  ;;  %v1377_v46 = vrot.slane %v1077_v39, 2  ;;  %1001 = vrot.lane.b32.xlu1 %v5444_v41, %s5128_s15  ;;  %1634 = vmatprep.subr.mxu0 %v5127_v3 }
  0x9a   : > { %v944_v51 = vpop.permute.xlu0 %943  ;;  %v748_v52 = vpop.permute.xlu1 %747  ;;  %v1510_v53 = vmax.f32 %v1318_v5, %v1382_v49  ;;  %v5514_v5 = vld [vmem:[%s5214_s30 + $0x128] sm:$0xff] }
  0x9b   : > { %v1076_v55 = vmax.f32 %v884_v43, %v944_v51  ;;  %v1188_v56 = vsel %vm1161_vm0, %v1185_v45, %v1187_v33  ;;  %v1380_v57 = vsel %vm1353_vm1, %v1377_v46, %v1379_v34  ;;  %v882_v33 = vmax.f32 %v5264_v8, %v748_v52 }
  0x9c   : > { %1635 = vmatpush1.msra.mxu0 %v1510_v53  ;;  %773 = vrot.lane.b32.xlu0 %v5489_v50, %s5126_s14  ;;  %v1317_v6 = vmax.f32 %v1077_v39, %v1188_v56 }
  0x9d   : > { %v1183_v60 = vrot.slane %v1076_v55, 1  ;;  %v1375_v61 = vrot.slane %v1076_v55, 2  ;;  %805 = vrot.lane.b32.xlu1 %v5492_v54, %s5126_s14  ;;  %1636 = vmatprep.subr.mxu0 %v5127_v3 }
  0x9e   : > { %v942_v62 = vpop.permute.xlu0 %941  ;;  %v746_v0 = vpop.permute.xlu1 %745  ;;  %v1509_v1 = vmax.f32 %v1317_v6, %v1380_v57 }
  0x9f   : > { %v1075_v2 = vmax.f32 %v883_v58, %v942_v62  ;;  %v1186_v4 = vsel %vm1161_vm0, %v1183_v60, %v1185_v45  ;;  %v1378_v34 = vsel %vm1353_vm1, %v1375_v61, %v1377_v46  ;;  %v881_v49 = vmax.f32 %v5271_v9, %v746_v0  ;;  %v5533_v0 = vld [vmem:[%s5214_s30 + $0xa0] sm:$0xff] }
  0xa0   : > { %1637 = vmatpush1.msra.mxu0 %v1509_v1  ;;  %967 = vrot.lane.b32.xlu0 %v5467_v59, %s5128_s15  ;;  %v1316_v7 = vmax.f32 %v1076_v55, %v1186_v4 }
  0xa1   : > { %v1181_v35 = vrot.slane %v1075_v2, 1  ;;  %v1373_v36 = vrot.slane %v1075_v2, 2  ;;  %999 = vrot.lane.b32.xlu1 %v5470_v63, %s5128_s15  ;;  %1638 = vmatprep.subr.mxu0 %v5127_v3 }
  0xa2   : > { %v940_v38 = vpop.permute.xlu0 %939  ;;  %v744_v39 = vpop.permute.xlu1 %743  ;;  %v1508_v42 = vmax.f32 %v1316_v7, %v1378_v34  ;;  %v5536_v7 = vld [vmem:[%s5214_s30 + $0x120] sm:$0xff] }
  0xa3   : > { %v1074_v43 = vmax.f32 %v882_v33, %v940_v38  ;;  %v1184_v45 = vsel %vm1161_vm0, %v1181_v35, %v1183_v60  ;;  %v1376_v46 = vsel %vm1353_vm1, %v1373_v36, %v1375_v61  ;;  %v880_v60 = vmax.f32 %v5278_v10, %v744_v39 }
  0xa4   : > { %1639 = vmatpush1.msra.mxu0 %v1508_v42  ;;  %771 = vrot.lane.b32.xlu0 %v5511_v37, %s5126_s14  ;;  %v1315_v8 = vmax.f32 %v1075_v2, %v1184_v45 }
  0xa5   : > { %v1179_v51 = vrot.slane %v1074_v43, 1  ;;  %v1371_v52 = vrot.slane %v1074_v43, 2  ;;  %803 = vrot.lane.b32.xlu1 %v5514_v5, %s5126_s14  ;;  %1640 = vmatprep.subr.mxu0 %v5127_v3 }
  0xa6   : > { %v938_v53 = vpop.permute.xlu0 %937  ;;  %v742_v55 = vpop.permute.xlu1 %741  ;;  %v1507_v56 = vmax.f32 %v1315_v8, %v1376_v46 }
  0xa7   : > { %v1073_v6 = vmax.f32 %v881_v49, %v938_v53  ;;  %v1182_v58 = vsel %vm1161_vm0, %v1179_v51, %v1181_v35  ;;  %v1374_v61 = vsel %vm1353_vm1, %v1371_v52, %v1373_v36  ;;  %v879_v34 = vmax.f32 %v5285_v11, %v742_v55  ;;  %v5555_v55 = vld [vmem:[%s5214_s30 + $0x98] sm:$0xff] }
  0xa8   : > { %1641 = vmatpush1.msra.mxu0 %v1507_v56  ;;  %965 = vrot.lane.b32.xlu0 %v5489_v50, %s5128_s15  ;;  %v1314_v9 = vmax.f32 %v1074_v43, %v1182_v58 }
  0xa9   : > { %v1177_v57 = vrot.slane %v1073_v6, 1  ;;  %v1369_v62 = vrot.slane %v1073_v6, 2  ;;  %997 = vrot.lane.b32.xlu1 %v5492_v54, %s5128_s15  ;;  %1642 = vmatprep.subr.mxu0 %v5127_v3 }
  0xaa   : > { %v936_v1 = vpop.permute.xlu0 %935  ;;  %v740_v2 = vpop.permute.xlu1 %739  ;;  %v1506_v4 = vmax.f32 %v1314_v9, %v1374_v61  ;;  %v5558_v9 = vld [vmem:[%s5214_s30 + $0x118] sm:$0xff] }
  0xab   : > { %v1072_v33 = vmax.f32 %v880_v60, %v936_v1  ;;  %v1180_v35 = vsel %vm1161_vm0, %v1177_v57, %v1179_v51  ;;  %v1372_v36 = vsel %vm1353_vm1, %v1369_v62, %v1371_v52  ;;  %v878_v51 = vmax.f32 %v5292_v12, %v740_v2 }
  0xac   : > { %1643 = vmatpush1.msra.mxu0 %v1506_v4  ;;  %769 = vrot.lane.b32.xlu0 %v5533_v0, %s5126_s14  ;;  %v1313_v10 = vmax.f32 %v1073_v6, %v1180_v35 }
  0xad   : > { %v1175_v38 = vrot.slane %v1072_v33, 1  ;;  %v1367_v39 = vrot.slane %v1072_v33, 2  ;;  %801 = vrot.lane.b32.xlu1 %v5536_v7, %s5126_s14  ;;  %1644 = vmatprep.subr.mxu0 %v5127_v3 }
  0xae   : > { %v934_v42 = vpop.permute.xlu0 %933  ;;  %v738_v43 = vpop.permute.xlu1 %737  ;;  %v1505_v45 = vmax.f32 %v1313_v10, %v1372_v36 }
  0xaf   : > { %v1071_v8 = vmax.f32 %v879_v34, %v934_v42  ;;  %v1178_v49 = vsel %vm1161_vm0, %v1175_v38, %v1177_v57  ;;  %v1370_v52 = vsel %vm1353_vm1, %v1367_v39, %v1369_v62  ;;  %v877_v61 = vmax.f32 %v5299_v13, %v738_v43  ;;  %v5577_v43 = vld [vmem:[%s5214_s30 + $0x90] sm:$0xff] }
  0xb0   : > { %1645 = vmatpush1.msra.mxu0 %v1505_v45  ;;  %963 = vrot.lane.b32.xlu0 %v5511_v37, %s5128_s15  ;;  %v1312_v11 = vmax.f32 %v1072_v33, %v1178_v49 }
  0xb1   : > { %v1173_v46 = vrot.slane %v1071_v8, 1  ;;  %v1365_v53 = vrot.slane %v1071_v8, 2  ;;  %995 = vrot.lane.b32.xlu1 %v5514_v5, %s5128_s15  ;;  %1646 = vmatprep.subr.mxu0 %v5127_v3 }
  0xb2   : > { %v932_v56 = vpop.permute.xlu0 %931  ;;  %v736_v6 = vpop.permute.xlu1 %735  ;;  %v1504_v58 = vmax.f32 %v1312_v11, %v1370_v52  ;;  %v5580_v11 = vld [vmem:[%s5214_s30 + $0x110] sm:$0xff] }
  0xb3   : > { %v1070_v60 = vmax.f32 %v878_v51, %v932_v56  ;;  %v1176_v57 = vsel %vm1161_vm0, %v1173_v46, %v1175_v38  ;;  %v1368_v62 = vsel %vm1353_vm1, %v1365_v53, %v1367_v39  ;;  %v876_v38 = vmax.f32 %v5306_v14, %v736_v6 }
  0xb4   : > { %1647 = vmatpush1.msra.mxu0 %v1504_v58  ;;  %767 = vrot.lane.b32.xlu0 %v5555_v55, %s5126_s14  ;;  %v1311_v12 = vmax.f32 %v1071_v8, %v1176_v57 }
  0xb5   : > { %v1171_v1 = vrot.slane %v1070_v60, 1  ;;  %v1363_v2 = vrot.slane %v1070_v60, 2  ;;  %799 = vrot.lane.b32.xlu1 %v5558_v9, %s5126_s14  ;;  %1648 = vmatprep.subr.mxu0 %v5127_v3 }
  0xb6   : > { %v930_v4 = vpop.permute.xlu0 %929  ;;  %v734_v33 = vpop.permute.xlu1 %733  ;;  %v1503_v35 = vmax.f32 %v1311_v12, %v1368_v62 }
  0xb7   : > { %v1069_v10 = vmax.f32 %v877_v61, %v930_v4  ;;  %v1174_v34 = vsel %vm1161_vm0, %v1171_v1, %v1173_v46  ;;  %v1366_v39 = vsel %vm1353_vm1, %v1363_v2, %v1365_v53  ;;  %v875_v52 = vmax.f32 %v5313_v15, %v734_v33  ;;  %v5599_v33 = vld [vmem:[%s5214_s30 + $0x88] sm:$0xff] }
  0xb8   : > { %1649 = vmatpush1.msra.mxu0 %v1503_v35  ;;  %961 = vrot.lane.b32.xlu0 %v5533_v0, %s5128_s15  ;;  %v1310_v13 = vmax.f32 %v1070_v60, %v1174_v34 }
  0xb9   : > { %v1169_v36 = vrot.slane %v1069_v10, 1  ;;  %v1361_v42 = vrot.slane %v1069_v10, 2  ;;  %993 = vrot.lane.b32.xlu1 %v5536_v7, %s5128_s15  ;;  %1650 = vmatprep.subr.mxu0 %v5127_v3 }
  0xba   : > { %v928_v45 = vpop.permute.xlu0 %927  ;;  %v732_v8 = vpop.permute.xlu1 %731  ;;  %v1502_v49 = vmax.f32 %v1310_v13, %v1366_v39  ;;  %v5602_v13 = vld [vmem:[%s5214_s30 + $0x108] sm:$0xff] }
  0xbb   : > { %v1068_v51 = vmax.f32 %v876_v38, %v928_v45  ;;  %v1172_v46 = vsel %vm1161_vm0, %v1169_v36, %v1171_v1  ;;  %v1364_v53 = vsel %vm1353_vm1, %v1361_v42, %v1363_v2  ;;  %v874_v1 = vmax.f32 %v5320_v16, %v732_v8 }
  0xbc   : > { %1651 = vmatpush1.msra.mxu0 %v1502_v49  ;;  %765 = vrot.lane.b32.xlu0 %v5577_v43, %s5126_s14  ;;  %v1309_v14 = vmax.f32 %v1069_v10, %v1172_v46 }
  0xbd   : > { %v1167_v56 = vrot.slane %v1068_v51, 1  ;;  %v1359_v6 = vrot.slane %v1068_v51, 2  ;;  %797 = vrot.lane.b32.xlu1 %v5580_v11, %s5126_s14  ;;  %1652 = vmatprep.subr.mxu0 %v5127_v3 }
  0xbe   : > { %v926_v58 = vpop.permute.xlu0 %925  ;;  %v730_v60 = vpop.permute.xlu1 %729  ;;  %v1501_v57 = vmax.f32 %v1309_v14, %v1364_v53 }
  0xbf   : > { %v1067_v12 = vmax.f32 %v875_v52, %v926_v58  ;;  %v1170_v61 = vsel %vm1161_vm0, %v1167_v56, %v1169_v36  ;;  %v1362_v2 = vsel %vm1353_vm1, %v1359_v6, %v1361_v42  ;;  %v873_v39 = vmax.f32 %v5327_v17, %v730_v60 }
  0xc0   : > { %1653 = vmatpush1.msra.mxu0 %v1501_v57  ;;  %959 = vrot.lane.b32.xlu0 %v5555_v55, %s5128_s15  ;;  %v1308_v15 = vmax.f32 %v1068_v51, %v1170_v61 }
  0xc1   : > { %v1165_v62 = vrot.slane %v1067_v12, 1  ;;  %v1357_v4 = vrot.slane %v1067_v12, 2  ;;  %991 = vrot.lane.b32.xlu1 %v5558_v9, %s5128_s15  ;;  %1654 = vmatprep.subr.mxu0 %v5127_v3 }
  0xc2   : > { %v924_v35 = vpop.permute.xlu0 %923  ;;  %v792_v10 = vpop.permute.xlu1 %791  ;;  %v1500_v34 = vmax.f32 %v1308_v15, %v1362_v2 }
  0xc3   : > { %v1066_v38 = vmax.f32 %v874_v1, %v924_v35  ;;  %v1168_v36 = vsel %vm1161_vm0, %v1165_v62, %v1167_v56  ;;  %v1360_v42 = vsel %vm1353_vm1, %v1357_v4, %v1359_v6  ;;  %v904_v35 = vmax.f32 %v5334_v18, %v792_v10 }
  0xc4   : > { %1655 = vmatpush1.msra.mxu0 %v1500_v34  ;;  %763 = vrot.lane.b32.xlu0 %v5599_v33, %s5126_s14  ;;  %v1307_v16 = vmax.f32 %v1067_v12, %v1168_v36  ;;  %v442_v12 = vld [vmem:[%s7233_s1 + $0x8] sm:$0xff] }
  0xc5   : > { %v1163_v45 = vrot.slane %v1066_v38, 1  ;;  %v1355_v8 = vrot.slane %v1066_v38, 2  ;;  %795 = vrot.lane.b32.xlu1 %v5602_v13, %s5126_s14  ;;  %1656 = vmatprep.subr.mxu0 %v5127_v3 }
  0xc6   : > { %v794_v49 = vpop.permute.xlu0 %793  ;;  %v922_v51 = vpop.permute.xlu1 %921  ;;  %v1499_v46 = vmax.f32 %v1307_v16, %v1360_v42  ;;  %1694 = vmatprep.mubr.f32.mxu0 %v442_v12 }
  0xc7   : > { %v1065_v14 = vmax.f32 %v873_v39, %v922_v51  ;;  %v1166_v52 = vsel %vm1161_vm0, %v1163_v45, %v1165_v62  ;;  %v1358_v6 = vsel %vm1353_vm1, %v1355_v8, %v1357_v4  ;;  %v905_v34 = vmax.f32 %v5341_v19, %v794_v49 }
  0xc8   : > { %1657 = vmatpush1.msra.mxu0 %v1499_v46  ;;  %957 = vrot.lane.b32.xlu0 %v5577_v43, %s5128_s15  ;;  %v1306_v17 = vmax.f32 %v1066_v38, %v1166_v52 }
  0xc9   : > { %v1162_v56 = vrot.slane %v1065_v14, 1  ;;  %v1354_v53 = vrot.slane %v1065_v14, 2  ;;  %989 = vrot.lane.b32.xlu1 %v5580_v11, %s5128_s15  ;;  %1658 = vmatprep.subr.mxu0 %v5127_v3 }
  0xca   : > { %v824_v58 = vpop.permute.xlu0 %823  ;;  %v790_v60 = vpop.permute.xlu1 %789  ;;  %v1498_v57 = vmax.f32 %v1306_v17, %v1358_v6 }
  0xcb   : > { %v1164_v61 = vsel %vm1161_vm0, %v1162_v56, %v1163_v45  ;;  %v1356_v1 = vsel %vm1353_vm1, %v1354_v53, %v1355_v8  ;;  %v920_v38 = vmax.f32 %v5348_v20, %v824_v58  ;;  %v903_v56 = vmax.f32 %v5351_v21, %v790_v60 }
  0xcc   : > { %955 = vrot.lane.b32.xlu0 %v5599_v33, %s5128_s15  ;;  %1659 = vmatpush1.msra.mxu0 %v1498_v57  ;;  %v1305_v15 = vmax.f32 %v1065_v14, %v1164_v61 }
  0xcd   : > { %987 = vrot.lane.b32.xlu1 %v5602_v13, %s5128_s15  ;;  %1660 = vmatprep.subr.mxu0 %v5127_v3 }
  0xce   : > { %v822_v62 = vpop.permute.xlu0 %821  ;;  %v984_v4 = vpop.permute.xlu1 %983  ;;  %v1497_v2 = vmax.f32 %v1305_v15, %v1356_v1 }
  0xcf   : > { %v1096_v36 = vmax.f32 %v904_v35, %v984_v4  ;;  %v919_v53 = vmax.f32 %v5358_v22, %v822_v62 }
  0xd0   : > { %1661 = vmatpush1.msra.mxu0 %v1497_v2 }
  0xd1   : > { %1662 = vmatprep.subr.mxu0 %v5127_v3  ;;  %v1223_v42 = vrot.slane %v1096_v36, 1  ;;  %v1415_v52 = vrot.slane %v1096_v36, 2 }
  0xd2   : > { %v986_v16 = vpop.permute.xlu0 %985  ;;  %v1016_v39 = vpop.permute.xlu1 %1015 }
  0xd3   : > { %v5635_v45 = vmax.f32 %v905_v34, %v986_v16  ;;  %v1112_v8 = vmax.f32 %v920_v38, %v1016_v39 }
  0xd5   : > { %v1225_v51 = vrot.slane %v5635_v45, 1  ;;  %v1417_v46 = vrot.slane %v5635_v45, 2  ;;  %v1255_v14 = vrot.slane %v1112_v8, 1  ;;  %v1447_v49 = vrot.slane %v1112_v8, 2 }
  0xd6   : > { %v788_v18 = vpop.permute.xlu0 %787  ;;  %v820_v10 = vpop.permute.xlu1 %819 }
  0xd7   : > { %v1352_v19 = vmax.f32 %v1112_v8, %v1255_v14  ;;  %v1226_v20 = vsel %vm1161_vm0, %v1223_v42, %v1225_v51  ;;  %v1418_v58 = vsel %vm1353_vm1, %v1415_v52, %v1417_v46  ;;  %v918_v16 = vmax.f32 %v5372_v24, %v820_v10 }
  0xd8   : > { %v1336_v17 = vmax.f32 %v1096_v36, %v1226_v20  ;;  %v902_v36 = vmax.f32 %v5369_v23, %v788_v18 }
  0xd9   : > { %v1544_v6 = vmax.f32 %v1352_v19, %v1447_v49 }
  0xda   : > { %v982_v57 = vpop.permute.xlu0 %981  ;;  %v1014_v12 = vpop.permute.xlu1 %1013  ;;  %v1528_v61 = vmax.f32 %v1336_v17, %v1418_v58 }
  0xdb   : > { %v1095_v15 = vmax.f32 %v903_v56, %v982_v57  ;;  %v1111_v1 = vmax.f32 %v919_v53, %v1014_v12  ;;  %4711 = vmatpush3.msk.msra.mxu1 %vm1353_vm1, %v1544_v6 }
  0xdc   : > { %1663 = vmatpush2.msra.mxu0 %v1528_v61  ;;  %4712 = vmatprep.subr.mxu1 %v5127_v3 }
  0xdd   : > { %v1221_v4 = vrot.slane %v1095_v15, 1  ;;  %v1413_v2 = vrot.slane %v1095_v15, 2  ;;  %v1253_v21 = vrot.slane %v1111_v1, 1  ;;  %1664 = vmatprep.subr.mxu0 %v5127_v3  ;;  %v1445_v22 = vrot.slane %v1111_v1, 2 }
  0xde   : > { %v786_v60 = vpop.permute.xlu0 %785  ;;  %v818_v62 = vpop.permute.xlu1 %817 }
  0xdf   : > { %v1224_v35 = vsel %vm1161_vm0, %v1221_v4, %v1223_v42  ;;  %v1256_v38 = vsel %vm1161_vm0, %v1253_v21, %v1255_v14  ;;  %v1416_v39 = vsel %vm1353_vm1, %v1413_v2, %v1415_v52  ;;  %v1448_v56 = vsel %vm1353_vm1, %v1445_v22, %v1447_v49 }
  0xe0   : > { %v1335_v34 = vmax.f32 %v1095_v15, %v1224_v35  ;;  %v1351_v8 = vmax.f32 %v1111_v1, %v1256_v38  ;;  %v901_v49 = vmax.f32 %v5383_v25, %v786_v60  ;;  %v917_v61 = vmax.f32 %v5386_v26, %v818_v62 }
  0xe2   : > { %v980_v19 = vpop.permute.xlu0 %979  ;;  %v1012_v20 = vpop.permute.xlu1 %1011  ;;  %v1527_v17 = vmax.f32 %v1335_v34, %v1416_v39  ;;  %v1543_v58 = vmax.f32 %v1351_v8, %v1448_v56 }
  0xe3   : > { %v1094_v53 = vmax.f32 %v902_v36, %v980_v19  ;;  %v1110_v6 = vmax.f32 %v918_v16, %v1012_v20 }
  0xe4   : > { %1665 = vmatpush2.msra.mxu0 %v1527_v17  ;;  %4713 = vmatpush3.msra.mxu1 %v1543_v58 }
  0xe5   : > { %v1219_v42 = vrot.slane %v1094_v53, 1  ;;  %v1411_v57 = vrot.slane %v1094_v53, 2  ;;  %v1251_v12 = vrot.slane %v1110_v6, 1  ;;  %1666 = vmatprep.subr.mxu0 %v5127_v3  ;;  %v1443_v23 = vrot.slane %v1110_v6, 2  ;;  %4714 = vmatprep.subr.mxu1 %v5127_v3 }
  0xe6   : > { %v784_v24 = vpop.permute.xlu0 %783  ;;  %v816_v14 = vpop.permute.xlu1 %815 }
  0xe7   : > { %v1222_v18 = vsel %vm1161_vm0, %v1219_v42, %v1221_v4  ;;  %v1254_v52 = vsel %vm1161_vm0, %v1251_v12, %v1253_v21  ;;  %v1414_v15 = vsel %vm1353_vm1, %v1411_v57, %v1413_v2  ;;  %v1446_v36 = vsel %vm1353_vm1, %v1443_v23, %v1445_v22 }
  0xe8   : > { %v1334_v10 = vmax.f32 %v1094_v53, %v1222_v18  ;;  %v1350_v1 = vmax.f32 %v1110_v6, %v1254_v52  ;;  %v900_v62 = vmax.f32 %v5397_v27, %v784_v24  ;;  %v916_v17 = vmax.f32 %v5400_v28, %v816_v14 }
  0xea   : > { %v978_v35 = vpop.permute.xlu0 %977  ;;  %v1010_v34 = vpop.permute.xlu1 %1009  ;;  %v1526_v38 = vmax.f32 %v1334_v10, %v1414_v15  ;;  %v1542_v8 = vmax.f32 %v1350_v1, %v1446_v36 }
  0xeb   : > { %v1093_v16 = vmax.f32 %v901_v49, %v978_v35  ;;  %v1109_v39 = vmax.f32 %v917_v61, %v1010_v34 }
  0xec   : > { %1667 = vmatpush2.msra.mxu0 %v1526_v38  ;;  %4715 = vmatpush3.msra.mxu1 %v1542_v8 }
  0xed   : > { %v1217_v4 = vrot.slane %v1093_v16, 1  ;;  %v1409_v19 = vrot.slane %v1093_v16, 2  ;;  %v1249_v20 = vrot.slane %v1109_v39, 1  ;;  %1668 = vmatprep.subr.mxu0 %v5127_v3  ;;  %v1441_v25 = vrot.slane %v1109_v39, 2  ;;  %4716 = vmatprep.subr.mxu1 %v5127_v3 }
  0xee   : > { %v782_v26 = vpop.permute.xlu0 %781  ;;  %v814_v21 = vpop.permute.xlu1 %813 }
  0xef   : > { %v1220_v2 = vsel %vm1161_vm0, %v1217_v4, %v1219_v42  ;;  %v1252_v22 = vsel %vm1161_vm0, %v1249_v20, %v1251_v12  ;;  %v1412_v56 = vsel %vm1353_vm1, %v1409_v19, %v1411_v57  ;;  %v1444_v10 = vsel %vm1353_vm1, %v1441_v25, %v1443_v23 }
  0xf0   : > { %v1333_v60 = vmax.f32 %v1093_v16, %v1220_v2  ;;  %v1349_v53 = vmax.f32 %v1109_v39, %v1252_v22  ;;  %v899_v14 = vmax.f32 %v5411_v29, %v782_v26  ;;  %v915_v35 = vmax.f32 %v5414_v30, %v814_v21 }
  0xf2   : > { %v976_v6 = vpop.permute.xlu0 %975  ;;  %v1008_v58 = vpop.permute.xlu1 %1007  ;;  %v1525_v18 = vmax.f32 %v1333_v60, %v1412_v56  ;;  %v1541_v61 = vmax.f32 %v1349_v53, %v1444_v10 }
  0xf3   : > { %v1092_v52 = vmax.f32 %v900_v62, %v976_v6  ;;  %v1108_v49 = vmax.f32 %v916_v17, %v1008_v58 }
  0xf4   : > { %1669 = vmatpush2.msra.mxu0 %v1525_v18  ;;  %4717 = vmatpush3.msra.mxu1 %v1541_v61 }
  0xf5   : > { %v1215_v42 = vrot.slane %v1092_v52, 1  ;;  %v1407_v15 = vrot.slane %v1092_v52, 2  ;;  %v1247_v1 = vrot.slane %v1108_v49, 1  ;;  %1670 = vmatprep.subr.mxu0 %v5127_v3  ;;  %v1439_v27 = vrot.slane %v1108_v49, 2  ;;  %4718 = vmatprep.subr.mxu1 %v5127_v3 }
  0xf6   : > { %v780_v28 = vpop.permute.xlu0 %779  ;;  %v812_v12 = vpop.permute.xlu1 %811 }
  0xf7   : > { %v1218_v57 = vsel %vm1161_vm0, %v1215_v42, %v1217_v4  ;;  %v1250_v23 = vsel %vm1161_vm0, %v1247_v1, %v1249_v20  ;;  %v1410_v34 = vsel %vm1353_vm1, %v1407_v15, %v1409_v19  ;;  %v1442_v8 = vsel %vm1353_vm1, %v1439_v27, %v1441_v25 }
  0xf8   : > { %v1332_v24 = vmax.f32 %v1092_v52, %v1218_v57  ;;  %v1348_v38 = vmax.f32 %v1108_v49, %v1250_v23  ;;  %v898_v21 = vmax.f32 %v5425_v31, %v780_v28  ;;  %v914_v56 = vmax.f32 %v5428_v32, %v812_v12 }
  0xfa   : > { %v974_v36 = vpop.permute.xlu0 %973  ;;  %v1006_v16 = vpop.permute.xlu1 %1005  ;;  %v1524_v39 = vmax.f32 %v1332_v24, %v1410_v34  ;;  %v1540_v22 = vmax.f32 %v1348_v38, %v1442_v8 }
  0xfb   : > { %v1091_v2 = vmax.f32 %v899_v14, %v974_v36  ;;  %v1107_v60 = vmax.f32 %v915_v35, %v1006_v16 }
  0xfc   : > { %1671 = vmatpush2.msra.mxu0 %v1524_v39  ;;  %4719 = vmatpush3.msra.mxu1 %v1540_v22 }
  0xfd   : > { %v1213_v4 = vrot.slane %v1091_v2, 1  ;;  %v1405_v62 = vrot.slane %v1091_v2, 2  ;;  %v1245_v17 = vrot.slane %v1107_v60, 1  ;;  %1672 = vmatprep.subr.mxu0 %v5127_v3  ;;  %v1437_v29 = vrot.slane %v1107_v60, 2  ;;  %4720 = vmatprep.subr.mxu1 %v5127_v3 }
  0xfe   : > { %v778_v30 = vpop.permute.xlu0 %777  ;;  %v810_v20 = vpop.permute.xlu1 %809 }
  0xff   : > { %v1216_v19 = vsel %vm1161_vm0, %v1213_v4, %v1215_v42  ;;  %v1248_v25 = vsel %vm1161_vm0, %v1245_v17, %v1247_v1  ;;  %v1408_v53 = vsel %vm1353_vm1, %v1405_v62, %v1407_v15  ;;  %v1440_v52 = vsel %vm1353_vm1, %v1437_v29, %v1439_v27 }
 0x100   : > { %v1331_v26 = vmax.f32 %v1091_v2, %v1216_v19  ;;  %v1347_v6 = vmax.f32 %v1107_v60, %v1248_v25  ;;  %v897_v14 = vmax.f32 %v5441_v40, %v778_v30  ;;  %v913_v38 = vmax.f32 %v5444_v41, %v810_v20 }
 0x102   : > { %v972_v58 = vpop.permute.xlu0 %971  ;;  %v1004_v18 = vpop.permute.xlu1 %1003  ;;  %v1523_v10 = vmax.f32 %v1331_v26, %v1408_v53  ;;  %v1539_v57 = vmax.f32 %v1347_v6, %v1440_v52 }
 0x103   : > { %v1090_v49 = vmax.f32 %v898_v21, %v972_v58  ;;  %v1106_v61 = vmax.f32 %v914_v56, %v1004_v18 }
 0x104   : > { %1673 = vmatpush2.msra.mxu0 %v1523_v10  ;;  %4721 = vmatpush3.msra.mxu1 %v1539_v57 }
 0x105   : > { %v1211_v42 = vrot.slane %v1090_v49, 1  ;;  %v1403_v24 = vrot.slane %v1090_v49, 2  ;;  %v1243_v23 = vrot.slane %v1106_v61, 1  ;;  %v1435_v1 = vrot.slane %v1106_v61, 2  ;;  %1674 = vmatprep.subr.mxu0 %v5127_v3  ;;  %4722 = vmatprep.subr.mxu1 %v5127_v3 }
 0x106   : > { %v776_v31 = vpop.permute.xlu0 %775 }
 0x107   : > { %v808_v32 = vpop.permute.xlu1 %807  ;;  %v1214_v15 = vsel %vm1161_vm0, %v1211_v42, %v1213_v4  ;;  %v1246_v28 = vsel %vm1161_vm0, %v1243_v23, %v1245_v17  ;;  %v1406_v35 = vsel %vm1353_vm1, %v1403_v24, %v1405_v62  ;;  %v1438_v34 = vsel %vm1353_vm1, %v1435_v1, %v1437_v29 }
 0x108   : > { %v1330_v27 = vmax.f32 %v1090_v49, %v1214_v15  ;;  %v1346_v12 = vmax.f32 %v1106_v61, %v1246_v28  ;;  %v896_v19 = vmax.f32 %v5467_v59, %v776_v31  ;;  %v912_v21 = vmax.f32 %v5470_v63, %v808_v32 }
 0x10a   : > { %v970_v36 = vpop.permute.xlu0 %969  ;;  %v1522_v16 = vmax.f32 %v1330_v27, %v1406_v35  ;;  %v1538_v39 = vmax.f32 %v1346_v12, %v1438_v34 }
 0x10b   : > { %v1089_v8 = vmax.f32 %v897_v14, %v970_v36  ;;  %v1002_v2 = vpop.permute.xlu1 %1001 }
 0x10c   : > { %v1105_v60 = vmax.f32 %v913_v38, %v1002_v2  ;;  %1675 = vmatpush2.msra.mxu0 %v1522_v16  ;;  %4723 = vmatpush3.msra.mxu1 %v1538_v39 }
 0x10d   : > { %v1209_v22 = vrot.slane %v1089_v8, 1  ;;  %v1401_v4 = vrot.slane %v1089_v8, 2  ;;  %1676 = vmatprep.subr.mxu0 %v5127_v3  ;;  %4724 = vmatprep.subr.mxu1 %v5127_v3 }
 0x10e   : > { %v1241_v40 = vrot.slane %v1105_v60, 1  ;;  %v1433_v62 = vrot.slane %v1105_v60, 2  ;;  %v774_v17 = vpop.permute.xlu0 %773 }
 0x10f   : > { %v806_v29 = vpop.permute.xlu1 %805  ;;  %v1212_v41 = vsel %vm1161_vm0, %v1209_v22, %v1211_v42  ;;  %v1404_v26 = vsel %vm1353_vm1, %v1401_v4, %v1403_v24  ;;  %v895_v31 = vmax.f32 %v5489_v50, %v774_v17 }
 0x110   : > { %v1329_v30 = vmax.f32 %v1089_v8, %v1212_v41  ;;  %v1244_v20 = vsel %vm1161_vm0, %v1241_v40, %v1243_v23  ;;  %v1436_v6 = vsel %vm1353_vm1, %v1433_v62, %v1435_v1  ;;  %v911_v28 = vmax.f32 %v5492_v54, %v806_v29 }
 0x111   : > { %v1345_v25 = vmax.f32 %v1105_v60, %v1244_v20 }
 0x112   : > { %v968_v56 = vpop.permute.xlu0 %967  ;;  %v1521_v53 = vmax.f32 %v1329_v30, %v1404_v26 }
 0x113   : > { %v1088_v58 = vmax.f32 %v896_v19, %v968_v56  ;;  %v1000_v18 = vpop.permute.xlu1 %999  ;;  %v1537_v10 = vmax.f32 %v1345_v25, %v1436_v6 }
 0x114   : > { %v1104_v52 = vmax.f32 %v912_v21, %v1000_v18  ;;  %1677 = vmatpush2.msra.mxu0 %v1521_v53 }
 0x115   : > { %v1207_v49 = vrot.slane %v1088_v58, 1  ;;  %v1399_v61 = vrot.slane %v1088_v58, 2  ;;  %4725 = vmatpush3.msra.mxu1 %v1537_v10  ;;  %1678 = vmatprep.subr.mxu0 %v5127_v3 }
 0x116   : > { %v1239_v59 = vrot.slane %v1104_v52, 1  ;;  %v1431_v57 = vrot.slane %v1104_v52, 2  ;;  %v772_v42 = vpop.permute.xlu0 %771  ;;  %4726 = vmatprep.subr.mxu1 %v5127_v3 }
 0x117   : > { %v804_v63 = vpop.permute.xlu1 %803  ;;  %v1210_v24 = vsel %vm1161_vm0, %v1207_v49, %v1209_v22  ;;  %v1402_v32 = vsel %vm1353_vm1, %v1399_v61, %v1401_v4 }
 0x118   : > { %v1328_v23 = vmax.f32 %v1088_v58, %v1210_v24  ;;  %v1242_v1 = vsel %vm1161_vm0, %v1239_v59, %v1241_v40  ;;  %v1434_v14 = vsel %vm1353_vm1, %v1431_v57, %v1433_v62  ;;  %v894_v40 = vmax.f32 %v5511_v37, %v772_v42 }
 0x119   : > { %v1344_v15 = vmax.f32 %v1104_v52, %v1242_v1  ;;  %v910_v29 = vmax.f32 %v5514_v5, %v804_v63 }
 0x11a   : > { %v966_v27 = vpop.permute.xlu0 %965  ;;  %v1520_v12 = vmax.f32 %v1328_v23, %v1402_v32 }
 0x11b   : > { %v1087_v35 = vmax.f32 %v895_v31, %v966_v27  ;;  %v998_v34 = vpop.permute.xlu1 %997  ;;  %v1536_v38 = vmax.f32 %v1344_v15, %v1434_v14 }
 0x11c   : > { %v1103_v36 = vmax.f32 %v911_v28, %v998_v34  ;;  %1679 = vmatpush2.msra.mxu0 %v1520_v12 }
 0x11d   : > { %v1205_v16 = vrot.slane %v1087_v35, 1  ;;  %v1397_v39 = vrot.slane %v1087_v35, 2  ;;  %4727 = vmatpush3.msra.mxu1 %v1536_v38  ;;  %1680 = vmatprep.subr.mxu0 %v5127_v3 }
 0x11e   : > { %v1237_v50 = vrot.slane %v1103_v36, 1  ;;  %v1429_v8 = vrot.slane %v1103_v36, 2  ;;  %v770_v2 = vpop.permute.xlu0 %769  ;;  %4728 = vmatprep.subr.mxu1 %v5127_v3 }
 0x11f   : > { %v802_v54 = vpop.permute.xlu1 %801  ;;  %v1208_v60 = vsel %vm1161_vm0, %v1205_v16, %v1207_v49  ;;  %v1400_v62 = vsel %vm1353_vm1, %v1397_v39, %v1399_v61  ;;  %v893_v49 = vmax.f32 %v5533_v0, %v770_v2 }
 0x120   : > { %v1327_v22 = vmax.f32 %v1087_v35, %v1208_v60  ;;  %v1240_v4 = vsel %vm1161_vm0, %v1237_v50, %v1239_v59  ;;  %v1432_v20 = vsel %vm1353_vm1, %v1429_v8, %v1431_v57  ;;  %v909_v57 = vmax.f32 %v5536_v7, %v802_v54 }
 0x121   : > { %v1343_v17 = vmax.f32 %v1103_v36, %v1240_v4 }
 0x122   : > { %v964_v41 = vpop.permute.xlu0 %963  ;;  %v1519_v30 = vmax.f32 %v1327_v22, %v1400_v62 }
 0x123   : > { %v1086_v19 = vmax.f32 %v894_v40, %v964_v41  ;;  %v996_v26 = vpop.permute.xlu1 %995  ;;  %v1535_v25 = vmax.f32 %v1343_v17, %v1432_v20 }
 0x124   : > { %v1102_v21 = vmax.f32 %v910_v29, %v996_v26  ;;  %1681 = vmatpush2.msra.mxu0 %v1519_v30 }
 0x125   : > { %v1203_v56 = vrot.slane %v1086_v19, 1  ;;  %v1395_v53 = vrot.slane %v1086_v19, 2  ;;  %4729 = vmatpush3.msra.mxu1 %v1535_v25  ;;  %1682 = vmatprep.subr.mxu0 %v5127_v3 }
 0x126   : > { %v1235_v37 = vrot.slane %v1102_v21, 1  ;;  %v1427_v6 = vrot.slane %v1102_v21, 2  ;;  %v768_v58 = vpop.permute.xlu0 %767  ;;  %4730 = vmatprep.subr.mxu1 %v5127_v3 }
 0x127   : > { %v800_v5 = vpop.permute.xlu1 %799  ;;  %v1206_v18 = vsel %vm1161_vm0, %v1203_v56, %v1205_v16  ;;  %v1398_v61 = vsel %vm1353_vm1, %v1395_v53, %v1397_v39  ;;  %v892_v38 = vmax.f32 %v5555_v55, %v768_v58 }
 0x128   : > { %v1326_v10 = vmax.f32 %v1086_v19, %v1206_v18  ;;  %v1238_v52 = vsel %vm1161_vm0, %v1235_v37, %v1237_v50  ;;  %v1430_v24 = vsel %vm1353_vm1, %v1427_v6, %v1429_v8  ;;  %v908_v39 = vmax.f32 %v5558_v9, %v800_v5 }
 0x129   : > { %v1342_v59 = vmax.f32 %v1102_v21, %v1238_v52 }
 0x12a   : > { %v962_v42 = vpop.permute.xlu0 %961  ;;  %v1518_v63 = vmax.f32 %v1326_v10, %v1398_v61 }
 0x12b   : > { %v1085_v23 = vmax.f32 %v893_v49, %v962_v42  ;;  %v994_v1 = vpop.permute.xlu1 %993  ;;  %v1534_v31 = vmax.f32 %v1342_v59, %v1430_v24 }
 0x12c   : > { %v1101_v32 = vmax.f32 %v909_v57, %v994_v1  ;;  %1683 = vmatpush2.msra.mxu0 %v1518_v63 }
 0x12d   : > { %v1201_v15 = vrot.slane %v1085_v23, 1  ;;  %v1393_v28 = vrot.slane %v1085_v23, 2  ;;  %4731 = vmatpush3.msra.mxu1 %v1534_v31  ;;  %1684 = vmatprep.subr.mxu0 %v5127_v3 }
 0x12e   : > { %v1233_v0 = vrot.slane %v1101_v32, 1  ;;  %v1425_v27 = vrot.slane %v1101_v32, 2  ;;  %v766_v12 = vpop.permute.xlu0 %765  ;;  %4732 = vmatprep.subr.mxu1 %v5127_v3 }
 0x12f   : > { %v798_v7 = vpop.permute.xlu1 %797  ;;  %v1204_v14 = vsel %vm1161_vm0, %v1201_v15, %v1203_v56  ;;  %v1396_v36 = vsel %vm1353_vm1, %v1393_v28, %v1395_v53  ;;  %v891_v19 = vmax.f32 %v5577_v43, %v766_v12 }
 0x130   : > { %v1325_v35 = vmax.f32 %v1085_v23, %v1204_v14  ;;  %v1236_v34 = vsel %vm1161_vm0, %v1233_v0, %v1235_v37  ;;  %v1428_v2 = vsel %vm1353_vm1, %v1425_v27, %v1427_v6  ;;  %v907_v21 = vmax.f32 %v5580_v11, %v798_v7 }
 0x131   : > { %v1341_v16 = vmax.f32 %v1101_v32, %v1236_v34 }
 0x132   : > { %v960_v50 = vpop.permute.xlu0 %959  ;;  %v1517_v8 = vmax.f32 %v1325_v35, %v1396_v36 }
 0x133   : > { %v1084_v54 = vmax.f32 %v892_v38, %v960_v50  ;;  %v992_v60 = vpop.permute.xlu1 %991  ;;  %v1533_v22 = vmax.f32 %v1341_v16, %v1428_v2 }
 0x134   : > { %v1100_v4 = vmax.f32 %v908_v39, %v992_v60  ;;  %1685 = vmatpush2.msra.mxu0 %v1517_v8 }
 0x135   : > { %v1199_v40 = vrot.slane %v1084_v54, 1  ;;  %v1391_v62 = vrot.slane %v1084_v54, 2  ;;  %4733 = vmatpush3.msra.mxu1 %v1533_v22  ;;  %1686 = vmatprep.subr.mxu0 %v5127_v3 }
 0x136   : > { %v1231_v55 = vrot.slane %v1100_v4, 1  ;;  %v1423_v17 = vrot.slane %v1100_v4, 2  ;;  %v764_v29 = vpop.permute.xlu0 %763  ;;  %4734 = vmatprep.subr.mxu1 %v5127_v3 }
 0x137   : > { %v796_v9 = vpop.permute.xlu1 %795  ;;  %v1202_v41 = vsel %vm1161_vm0, %v1199_v40, %v1201_v15  ;;  %v1394_v26 = vsel %vm1353_vm1, %v1391_v62, %v1393_v28  ;;  %v890_v10 = vmax.f32 %v5599_v33, %v764_v29  ;;  %v527_v29 = vld [vmem:[%s7234_s2 + $0x28] sm:$0xff] }
 0x138   : > { %v1324_v30 = vmax.f32 %v1084_v54, %v1202_v41  ;;  %v1234_v20 = vsel %vm1161_vm0, %v1231_v55, %v1233_v0  ;;  %v1426_v37 = vsel %vm1353_vm1, %v1423_v17, %v1425_v27  ;;  %v906_v43 = vmax.f32 %v5602_v13, %v796_v9  ;;  %v449_v9 = vld [vmem:[%s7233_s1 + $0x40] sm:$0xff]  ;;  %v451_v41 = vld [vmem:[%s7233_s1 + $0x50] sm:$0xff] }
 0x139   : > { %v1340_v25 = vmax.f32 %v1100_v4, %v1234_v20  ;;  %v450_v20 = vld [vmem:[%s7233_s1 + $0x48] sm:$0xff] }
 0x13a   : > { %v958_v56 = vpop.permute.xlu0 %957  ;;  %v1516_v53 = vmax.f32 %v1324_v30, %v1394_v26  ;;  %v526_v30 = vld [vmem:[%s7234_s2 + $0x20] sm:$0xff]  ;;  %v454_v26 = vld [vmem:[%s7233_s1 + $0x68] sm:$0xff] }
 0x13b   : > { %v1083_v6 = vmax.f32 %v891_v19, %v958_v56  ;;  %v990_v58 = vpop.permute.xlu1 %989  ;;  %v1532_v5 = vmax.f32 %v1340_v25, %v1426_v37  ;;  %v452_v19 = vld [vmem:[%s7233_s1 + $0x58] sm:$0xff]  ;;  %v524_v56 = vld [vmem:[%s7234_s2 + $0x10] sm:$0xff]  ;;  %v457_v37 = vld [vmem:[%s7233_s1 + $0x80] sm:$0xff] }
 0x13c   : > { %v1099_v18 = vmax.f32 %v907_v21, %v990_v58  ;;  %1687 = vmatpush2.msra.mxu0 %v1516_v53  ;;  %v525_v25 = vld [vmem:[%s7234_s2 + $0x18] sm:$0xff]  ;;  %v453_v21 = vld [vmem:[%s7233_s1 + $0x60] sm:$0xff]  ;;  %v455_v53 = vld [vmem:[%s7233_s1 + $0x70] sm:$0xff] }
 0x13d   : > { %v1197_v52 = vrot.slane %v1083_v6, 1  ;;  %v1389_v49 = vrot.slane %v1083_v6, 2  ;;  %4735 = vmatpush3.msra.mxu1 %v1532_v5  ;;  %1688 = vmatprep.subr.mxu0 %v5127_v3  ;;  %v458_v58 = vld [vmem:[%s7233_s1 + $0x88] sm:$0xff]  ;;  %v460_v5 = vld [vmem:[%s7233_s1 + $0x98] sm:$0xff] }
 0x13e   : > { %v1229_v61 = vrot.slane %v1099_v18, 1  ;;  %v1421_v11 = vrot.slane %v1099_v18, 2  ;;  %v956_v59 = vpop.permute.xlu0 %955  ;;  %4736 = vmatprep.subr.mxu1 %v5127_v3 }
 0x13f   : > { %v1200_v57 = vsel %vm1161_vm0, %v1197_v52, %v1199_v40  ;;  %v1082_v42 = vmax.f32 %v890_v10, %v956_v59  ;;  %v988_v63 = vpop.permute.xlu1 %987  ;;  %v1392_v15 = vsel %vm1353_vm1, %v1389_v49, %v1391_v62  ;;  %v446_v40 = vld [vmem:[%s7233_s1 + $0x28] sm:$0xff]  ;;  %v448_v62 = vld [vmem:[%s7233_s1 + $0x38] sm:$0xff]  ;;  %v461_v10 = vld [vmem:[%s7233_s1 + $0xa0] sm:$0xff] }
 0x140   : > { %v1323_v24 = vmax.f32 %v1083_v6, %v1200_v57  ;;  %v1232_v23 = vsel %vm1161_vm0, %v1229_v61, %v1231_v55  ;;  %v1098_v33 = vmax.f32 %v906_v43, %v988_v63  ;;  %v1424_v27 = vsel %vm1353_vm1, %v1421_v11, %v1423_v17  ;;  %v528_v55 = vld [vmem:[%s7234_s2 + $0x30] sm:$0xff]  ;;  %v456_v6 = vld [vmem:[%s7233_s1 + $0x78] sm:$0xff]  ;;  %v469_v57 = vld [vmem:[%s7233_s1 + $0xe0] sm:$0xff] }
 0x141   : > { %v1339_v1 = vmax.f32 %v1099_v18, %v1232_v23  ;;  %v1195_v31 = vrot.slane %v1082_v42, 1  ;;  %v1387_v32 = vrot.slane %v1082_v42, 2  ;;  %v447_v17 = vld [vmem:[%s7233_s1 + $0x30] sm:$0xff]  ;;  %v464_v43 = vld [vmem:[%s7233_s1 + $0xb8] sm:$0xff]  ;;  %v470_v63 = vld [vmem:[%s7233_s1 + $0xe8] sm:$0xff] }
 0x142   : > { %v1227_v28 = vrot.slane %v1098_v33, 1  ;;  %v1419_v13 = vrot.slane %v1098_v33, 2  ;;  %v1515_v0 = vmax.f32 %v1323_v24, %v1392_v15  ;;  %v459_v18 = vld [vmem:[%s7233_s1 + $0x90] sm:$0xff]  ;;  %v472_v24 = vld [vmem:[%s7233_s1 + $0xf8] sm:$0xff]  ;;  %v478_v15 = vld [vmem:[%s7233_s1 + $0x128] sm:$0xff] }
 0x143   : > { %v1198_v12 = vsel %vm1161_vm0, %v1195_v31, %v1197_v52  ;;  %v1531_v7 = vmax.f32 %v1339_v1, %v1424_v27  ;;  %v1196_v14 = vsel %vm1161_vm0, %v1193_v47, %v1195_v31  ;;  %v1390_v16 = vsel %vm1353_vm1, %v1387_v32, %v1389_v49  ;;  %v463_v52 = vld [vmem:[%s7233_s1 + $0xb0] sm:$0xff]  ;;  %v462_v49 = vld [vmem:[%s7233_s1 + $0xa8] sm:$0xff]  ;;  %v480_v27 = vld [vmem:[%s7233_s1 + $0x138] sm:$0xff] }
 0x144   : > { %v1322_v35 = vmax.f32 %v1082_v42, %v1198_v12  ;;  %v1230_v34 = vsel %vm1161_vm0, %v1227_v28, %v1229_v61  ;;  %1689 = vmatpush2.msra.mxu0 %v1515_v0  ;;  %v1321_v38 = vmax.f32 %v5446_v44, %v1196_v14  ;;  %v1228_v39 = vsel %vm1161_vm0, %v1225_v51, %v1227_v28  ;;  %v441_v51 = vld [vmem:[%s7233_s1] sm:$0xff]  ;;  %v443_v44 = vld [vmem:[%s7233_s1 + $0x10] sm:$0xff]  ;;  %v466_v61 = vld [vmem:[%s7233_s1 + $0xc8] sm:$0xff] }
 0x145   : > { %v1338_v36 = vmax.f32 %v1098_v33, %v1230_v34  ;;  %4737 = vmatpush3.msra.mxu1 %v1531_v7  ;;  %1690 = vmatprep.subr.mxu0 %v5127_v3  ;;  %v1422_v47 = vsel %vm1353_vm1, %v1419_v13, %v1421_v11  ;;  %v1337_v8 = vmax.f32 %v5635_v45, %v1228_v39  ;;  %v529_v45 = vld [vmem:[%s7234_s2 + $0x38] sm:$0x3f]  ;;  %v465_v11 = vld [vmem:[%s7233_s1 + $0xc0] sm:$0xff]  ;;  %v467_v59 = vld [vmem:[%s7233_s1 + $0xd0] sm:$0xff] }
 0x146   : > { %4738 = vmatprep.subr.mxu1 %v5127_v3  ;;  %v1514_v50 = vmax.f32 %v1322_v35, %v1390_v16  ;;  %v1388_v54 = vsel %vm1353_vm1, %v1385_v48, %v1387_v32  ;;  %v1420_v22 = vsel %vm1353_vm1, %v1417_v46, %v1419_v13  ;;  %v445_v48 = vld [vmem:[%s7233_s1 + $0x20] sm:$0xff]  ;;  %v444_v46 = vld [vmem:[%s7233_s1 + $0x18] sm:$0xff]  ;;  %v471_v23 = vld [vmem:[%s7233_s1 + $0xf0] sm:$0xff] }
 0x147   : > { %v1530_v2 = vmax.f32 %v1338_v36, %v1422_v47  ;;  %v1513_v60 = vmax.f32 %v1321_v38, %v1388_v54  ;;  %v1529_v4 = vmax.f32 %v1337_v8, %v1420_v22  ;;  %v468_v42 = vld [vmem:[%s7233_s1 + $0xd8] sm:$0xff]  ;;  %v473_v33 = vld [vmem:[%s7233_s1 + $0x100] sm:$0xff]  ;;  %v475_v1 = vld [vmem:[%s7233_s1 + $0x110] sm:$0xff] }
 0x148   : > { %1691 = vmatpush2.msra.mxu0 %v1514_v50  ;;  %v474_v31 = vld [vmem:[%s7233_s1 + $0x108] sm:$0xff]  ;;  %v476_v32 = vld [vmem:[%s7233_s1 + $0x118] sm:$0xff]  ;;  %v477_v28 = vld [vmem:[%s7233_s1 + $0x120] sm:$0xff] }
 0x149   : > { %4739 = vmatpush3.msra.mxu1 %v1530_v2  ;;  %1692 = vmatprep.subr.mxu0 %v5127_v3  ;;  %v479_v13 = vld [vmem:[%s7233_s1 + $0x130] sm:$0xff]  ;;  %v481_v0 = vld [vmem:[%s7233_s1 + $0x140] sm:$0xff]  ;;  %v482_v12 = vld [vmem:[%s7233_s1 + $0x148] sm:$0xff] }
 0x14a   : > { %4740 = vmatprep.subr.mxu1 %v5127_v3  ;;  %1693 = vmatpush2.msra.mxu0 %v1513_v60  ;;  %v484_v7 = vld [vmem:[%s7233_s1 + $0x158] sm:$0xff]  ;;  %v483_v14 = vld [vmem:[%s7233_s1 + $0x150] sm:$0xff]  ;;  %v485_v35 = vld [vmem:[%s7233_s1 + $0x160] sm:$0xff] }
 0x14b   : > { %4741 = vmatpush3.msra.mxu1 %v1529_v4  ;;  %1695 = vmatmul.mubr.f32.vlgmr.msra.gmra.mxu0 %v441_v51  ;;  %v487_v34 = vld [vmem:[%s7233_s1 + $0x170] sm:$0xff]  ;;  %v486_v38 = vld [vmem:[%s7233_s1 + $0x168] sm:$0xff]  ;;  %v488_v36 = vld [vmem:[%s7233_s1 + $0x178] sm:$0xff] }
 0x14c   : > { %4743 = vmatmul.mubr.msk.f32.vlgmr.msra.gmra.mxu1 %vm1545_vm3, %v443_v44  ;;  %1699 = vmatprep.mubr.f32.mxu0 %v445_v48  ;;  %v490_v16 = vld [vmem:[%s7233_s1 + $0x188] sm:$0xff]  ;;  %v489_v39 = vld [vmem:[%s7233_s1 + $0x180] sm:$0xff]  ;;  %v491_v50 = vld [vmem:[%s7233_s1 + $0x190] sm:$0xff] }
 0x14d   : > { %4745 = vmatprep.mubr.msk.f32.mxu1 %vm5129_vm2, %v5127_v3  ;;  %4823 = vmatprep.subr.mxu1 %v5127_v3  ;;  %v493_v47 = vld [vmem:[%s7233_s1 + $0x1a0] sm:$0xff]  ;;  %v492_v8 = vld [vmem:[%s7233_s1 + $0x198] sm:$0xff]  ;;  %v494_v2 = vld [vmem:[%s7233_s1 + $0x1a8] sm:$0xff] }
 0x14e   : > { %4824 = vmatpush3.msk.msra.mxu1 %vm1353_vm1, %v529_v45  ;;  %2835 = vmatprep.subr.mxu0 %v5127_v3  ;;  %v496_v54 = vld [vmem:[%s7233_s1 + $0x1b8] sm:$0xff]  ;;  %v523_v60 = vld [vmem:[%s7234_s2 + $0x8] sm:$0xff]  ;;  %v522_v22 = vld [vmem:[%s7234_s2] sm:$0xff] }
 0x14f   : > { %1700 = vmatmul.mubr.f32.gmra.mxu0 %v444_v46  ;;  %4825 = vmatprep.subr.mxu1 %v5127_v3  ;;  %v495_v51 = vld [vmem:[%s7233_s1 + $0x1b0] sm:$0xff]  ;;  %v497_v4 = vld [vmem:[%s7233_s1 + $0x1c0] sm:$0xff]  ;;  %v498_v48 = vld [vmem:[%s7233_s1 + $0x1c8] sm:$0xff] }
 0x150   : > { %4746 = vmatmul.mubr.msk.f32.gmra.mxu1 %vm1545_vm3, %v446_v40  ;;  %1704 = vmatprep.mubr.f32.mxu0 %v448_v62  ;;  %v499_v44 = vld [vmem:[%s7233_s1 + $0x1d0] sm:$0xff]  ;;  %v500_v45 = vld [vmem:[%s7233_s1 + $0x1d8] sm:$0xff]  ;;  %v502_v46 = vld [vmem:[%s7233_s1 + $0x1e8] sm:$0xff] }
 0x151   : > { %4748 = vmatprep.mubr.msk.f32.mxu1 %vm5129_vm2, %v5127_v3  ;;  %4826 = vmatpush3.msra.mxu1 %v528_v55  ;;  %v501_v40 = vld [vmem:[%s7233_s1 + $0x1e0] sm:$0xff]  ;;  %v503_v62 = vld [vmem:[%s7233_s1 + $0x1f0] sm:$0xff] }
 0x152   : > { %4827 = vmatprep.subr.mxu1 %v5127_v3  ;;  %v505_v55 = vld [vmem:[%s7233_s1 + $0x200] sm:$0xff] }
 0x153   : > { %1705 = vmatmul.mubr.f32.gmra.mxu0 %v447_v17  ;;  %4828 = vmatpush3.msra.mxu1 %v527_v29  ;;  %v504_v17 = vld [vmem:[%s7233_s1 + $0x1f8] sm:$0xff]  ;;  %v506_v29 = vld [vmem:[%s7233_s1 + $0x208] sm:$0xff] }
 0x154   : > { %4749 = vmatmul.mubr.msk.f32.gmra.mxu1 %vm1545_vm3, %v449_v9  ;;  %1709 = vmatprep.mubr.f32.mxu0 %v451_v41  ;;  %v508_v9 = vld [vmem:[%s7233_s1 + $0x218] sm:$0xff]  ;;  %v507_v41 = vld [vmem:[%s7233_s1 + $0x210] sm:$0xff] }
 0x155   : > { %4751 = vmatprep.mubr.msk.f32.mxu1 %vm5129_vm2, %v5127_v3  ;;  %4829 = vmatprep.subr.mxu1 %v5127_v3 }
 0x156   : > { %4830 = vmatpush3.msra.mxu1 %v526_v30  ;;  %v509_v30 = vld [vmem:[%s7233_s1 + $0x220] sm:$0xff] }
 0x157   : > { %1710 = vmatmul.mubr.f32.gmra.mxu0 %v450_v20  ;;  %4831 = vmatprep.subr.mxu1 %v5127_v3  ;;  %v511_v20 = vld [vmem:[%s7233_s1 + $0x230] sm:$0xff] }
 0x158   : > { %4752 = vmatmul.mubr.msk.f32.gmra.mxu1 %vm1545_vm3, %v452_v19  ;;  %1714 = vmatprep.mubr.f32.mxu0 %v454_v26  ;;  %v510_v19 = vld [vmem:[%s7233_s1 + $0x228] sm:$0xff]  ;;  %v512_v26 = vld [vmem:[%s7233_s1 + $0x238] sm:$0xff] }
 0x159   : > { %4754 = vmatprep.mubr.msk.f32.mxu1 %vm5129_vm2, %v5127_v3  ;;  %4832 = vmatpush3.msra.mxu1 %v525_v25  ;;  %v514_v25 = vld [vmem:[%s7233_s1 + $0x248] sm:$0xff] }
 0x15a   : > { %4833 = vmatprep.subr.mxu1 %v5127_v3 }
 0x15b   : > { %1715 = vmatmul.mubr.f32.gmra.mxu0 %v453_v21  ;;  %4834 = vmatpush3.msra.mxu1 %v524_v56  ;;  %v513_v21 = vld [vmem:[%s7233_s1 + $0x240] sm:$0xff]  ;;  %v515_v56 = vld [vmem:[%s7233_s1 + $0x250] sm:$0xff] }
 0x15c   : > { %4755 = vmatmul.mubr.msk.f32.gmra.mxu1 %vm1545_vm3, %v455_v53  ;;  %1719 = vmatprep.mubr.f32.mxu0 %v457_v37  ;;  %v517_v53 = vld [vmem:[%s7233_s1 + $0x260] sm:$0xff]  ;;  %v516_v37 = vld [vmem:[%s7233_s1 + $0x258] sm:$0xff] }
 0x15d   : > { %4757 = vmatprep.mubr.msk.f32.mxu1 %vm5129_vm2, %v5127_v3  ;;  %4835 = vmatprep.subr.mxu1 %v5127_v3 }
 0x15e   : > { %4836 = vmatpush3.msra.mxu1 %v523_v60 }
 0x15f   : > { %1720 = vmatmul.mubr.f32.gmra.mxu0 %v456_v6  ;;  %4837 = vmatprep.subr.mxu1 %v5127_v3  ;;  %v518_v6 = vld [vmem:[%s7233_s1 + $0x268] sm:$0xff] }
 0x160   : > { %4758 = vmatmul.mubr.msk.f32.gmra.mxu1 %vm1545_vm3, %v458_v58  ;;  %1724 = vmatprep.mubr.f32.mxu0 %v460_v5  ;;  %v520_v58 = vld [vmem:[%s7233_s1 + $0x278] sm:$0x3]  ;;  %v519_v5 = vld [vmem:[%s7233_s1 + $0x270] sm:$0x3] }
 0x161   : > { %4760 = vmatprep.mubr.msk.f32.mxu1 %vm5129_vm2, %v5127_v3  ;;  %4838 = vmatpush3.msra.mxu1 %v522_v22 }
 0x163   : > { %1725 = vmatmul.mubr.f32.gmra.mxu0 %v459_v18  ;;  %v521_v18 = vld [vmem:[%s7233_s1 + $0x280] sm:$0x3] }
 0x164   : > { %4761 = vmatmul.mubr.msk.f32.gmra.mxu1 %vm1545_vm3, %v461_v10  ;;  %1729 = vmatprep.mubr.f32.mxu0 %v463_v52 }
 0x165   : > { %4763 = vmatprep.mubr.msk.f32.mxu1 %vm5129_vm2, %v5127_v3 }
 0x167   : > { %1730 = vmatmul.mubr.f32.gmra.mxu0 %v462_v49 }
 0x168   : > { %4764 = vmatmul.mubr.msk.f32.gmra.mxu1 %vm1545_vm3, %v464_v43  ;;  %1734 = vmatprep.mubr.f32.mxu0 %v466_v61 }
 0x169   : > { %4766 = vmatprep.mubr.msk.f32.mxu1 %vm5129_vm2, %v5127_v3 }
 0x16b   : > { %1735 = vmatmul.mubr.f32.gmra.mxu0 %v465_v11 }
 0x16c   : > { %4767 = vmatmul.mubr.msk.f32.gmra.mxu1 %vm1545_vm3, %v467_v59  ;;  %1739 = vmatprep.mubr.f32.mxu0 %v469_v57 }
 0x16d   : > { %4769 = vmatprep.mubr.msk.f32.mxu1 %vm5129_vm2, %v5127_v3 }
 0x16f   : > { %1740 = vmatmul.mubr.f32.gmra.mxu0 %v468_v42 }
 0x170   : > { %4770 = vmatmul.mubr.msk.f32.gmra.mxu1 %vm1545_vm3, %v470_v63  ;;  %1744 = vmatprep.mubr.f32.mxu0 %v472_v24 }
 0x171   : > { %4772 = vmatprep.mubr.msk.f32.mxu1 %vm5129_vm2, %v5127_v3 }
 0x173   : > { %1745 = vmatmul.mubr.f32.gmra.mxu0 %v471_v23 }
 0x174   : > { %4773 = vmatmul.mubr.msk.f32.gmra.mxu1 %vm1545_vm3, %v473_v33  ;;  %1749 = vmatprep.mubr.f32.mxu0 %v475_v1 }
 0x175   : > { %4775 = vmatprep.mubr.msk.f32.mxu1 %vm5129_vm2, %v5127_v3 }
 0x177   : > { %1750 = vmatmul.mubr.f32.gmra.mxu0 %v474_v31 }
 0x178   : > { %4776 = vmatmul.mubr.msk.f32.gmra.mxu1 %vm1545_vm3, %v476_v32  ;;  %1754 = vmatprep.mubr.f32.mxu0 %v478_v15 }
 0x179   : > { %4778 = vmatprep.mubr.msk.f32.mxu1 %vm5129_vm2, %v5127_v3 }
 0x17b   : > { %1755 = vmatmul.mubr.f32.gmra.mxu0 %v477_v28 }
 0x17c   : > { %4779 = vmatmul.mubr.msk.f32.gmra.mxu1 %vm1545_vm3, %v479_v13  ;;  %1759 = vmatprep.mubr.f32.mxu0 %v481_v0 }
 0x17d   : > { %4781 = vmatprep.mubr.msk.f32.mxu1 %vm5129_vm2, %v5127_v3 }
 0x17f   : > { %1760 = vmatmul.mubr.f32.gmra.mxu0 %v480_v27 }
 0x180   : > { %4782 = vmatmul.mubr.msk.f32.gmra.mxu1 %vm1545_vm3, %v482_v12  ;;  %1764 = vmatprep.mubr.f32.mxu0 %v484_v7 }
 0x181   : > { %4784 = vmatprep.mubr.msk.f32.mxu1 %vm5129_vm2, %v5127_v3 }
 0x183   : > { %1765 = vmatmul.mubr.f32.gmra.mxu0 %v483_v14 }
 0x184   : > { %4785 = vmatmul.mubr.msk.f32.gmra.mxu1 %vm1545_vm3, %v485_v35  ;;  %1769 = vmatprep.mubr.f32.mxu0 %v487_v34 }
 0x185   : > { %4787 = vmatprep.mubr.msk.f32.mxu1 %vm5129_vm2, %v5127_v3 }
 0x187   : > { %1770 = vmatmul.mubr.f32.gmra.mxu0 %v486_v38 }
 0x188   : > { %4788 = vmatmul.mubr.msk.f32.gmra.mxu1 %vm1545_vm3, %v488_v36  ;;  %1774 = vmatprep.mubr.f32.mxu0 %v490_v16 }
 0x189   : > { %4790 = vmatprep.mubr.msk.f32.mxu1 %vm5129_vm2, %v5127_v3 }
 0x18b   : > { %1775 = vmatmul.mubr.f32.gmra.mxu0 %v489_v39 }
 0x18c   : > { %4791 = vmatmul.mubr.msk.f32.gmra.mxu1 %vm1545_vm3, %v491_v50  ;;  %1779 = vmatprep.mubr.f32.mxu0 %v493_v47 }
 0x18d   : > { %4793 = vmatprep.mubr.msk.f32.mxu1 %vm5129_vm2, %v5127_v3 }
 0x18f   : > { %1780 = vmatmul.mubr.f32.gmra.mxu0 %v492_v8 }
 0x190   : > { %4794 = vmatmul.mubr.msk.f32.gmra.mxu1 %vm1545_vm3, %v494_v2  ;;  %1784 = vmatprep.mubr.f32.mxu0 %v496_v54 }
 0x191   : > { %4796 = vmatprep.mubr.msk.f32.mxu1 %vm5129_vm2, %v5127_v3 }
 0x193   : > { %1785 = vmatmul.mubr.f32.gmra.mxu0 %v495_v51 }
 0x194   : > { %4797 = vmatmul.mubr.msk.f32.gmra.mxu1 %vm1545_vm3, %v497_v4  ;;  %1789 = vmatprep.mubr.f32.mxu0 %v499_v44 }
 0x195   : > { %4799 = vmatprep.mubr.msk.f32.mxu1 %vm5129_vm2, %v5127_v3 }
 0x197   : > { %1790 = vmatmul.mubr.f32.gmra.mxu0 %v498_v48 }
 0x198   : > { %4800 = vmatmul.mubr.msk.f32.gmra.mxu1 %vm1545_vm3, %v500_v45  ;;  %1794 = vmatprep.mubr.f32.mxu0 %v502_v46 }
 0x199   : > { %4802 = vmatprep.mubr.msk.f32.mxu1 %vm5129_vm2, %v5127_v3 }
 0x19b   : > { %1795 = vmatmul.mubr.f32.gmra.mxu0 %v501_v40 }
 0x19c   : > { %4803 = vmatmul.mubr.msk.f32.gmra.mxu1 %vm1545_vm3, %v503_v62  ;;  %1799 = vmatprep.mubr.f32.mxu0 %v505_v55 }
 0x19d   : > { %4805 = vmatprep.mubr.msk.f32.mxu1 %vm5129_vm2, %v5127_v3 }
 0x19f   : > { %1800 = vmatmul.mubr.f32.gmra.mxu0 %v504_v17 }
 0x1a0   : > { %4806 = vmatmul.mubr.msk.f32.gmra.mxu1 %vm1545_vm3, %v506_v29  ;;  %1804 = vmatprep.mubr.f32.mxu0 %v508_v9 }
 0x1a1   : > { %4808 = vmatprep.mubr.msk.f32.mxu1 %vm5129_vm2, %v5127_v3 }
 0x1a3   : > { %1805 = vmatmul.mubr.f32.gmra.mxu0 %v507_v41 }
 0x1a4   : > { %4809 = vmatmul.mubr.msk.f32.gmra.mxu1 %vm1545_vm3, %v509_v30  ;;  %1809 = vmatprep.mubr.f32.mxu0 %v511_v20 }
 0x1a5   : > { %4811 = vmatprep.mubr.msk.f32.mxu1 %vm5129_vm2, %v5127_v3 }
 0x1a7   : > { %1810 = vmatmul.mubr.f32.gmra.mxu0 %v510_v19 }
 0x1a8   : > { %4812 = vmatmul.mubr.msk.f32.gmra.mxu1 %vm1545_vm3, %v512_v26  ;;  %1814 = vmatprep.mubr.f32.mxu0 %v514_v25 }
 0x1a9   : > { %4814 = vmatprep.mubr.msk.f32.mxu1 %vm5129_vm2, %v5127_v3 }
 0x1ab   : > { %1815 = vmatmul.mubr.f32.gmra.mxu0 %v513_v21 }
 0x1ac   : > { %4815 = vmatmul.mubr.msk.f32.gmra.mxu1 %vm1545_vm3, %v515_v56  ;;  %1819 = vmatprep.mubr.f32.mxu0 %v517_v53 }
 0x1ad   : > { %4817 = vmatprep.mubr.msk.f32.mxu1 %vm5129_vm2, %v5127_v3 }
 0x1af   : > { %1820 = vmatmul.mubr.f32.gmra.mxu0 %v516_v37 }
 0x1b0   : > { %4818 = vmatmul.mubr.msk.f32.gmra.mxu1 %vm1545_vm3, %v518_v6  ;;  %1824 = vmatprep.mubr.f32.mxu0 %v520_v58 }
 0x1b1   : > { %4820 = vmatprep.mubr.msk.f32.mxu1 %vm5129_vm2, %v5127_v3 }
 0x1b3   : > { %1825 = vmatmul.mubr.f32.gmra.mxu0 %v519_v5 }
 0x1b4   : > { %4821 = vmatmul.mubr.msk.f32.gmra.mxu1 %vm1545_vm3, %v521_v18 }
 0x1b5   : > { %4839 = vmatprep.mubr.msk.f32.mxu1 %vm5129_vm2, %v5127_v3 }
 0x20b   : > { %v1696_v10 = vpop.f32.mrf.mxu0 }
 0x20c   : > { %v1896_v52 = vpop.f32.mrf.mxu1 }
 0x20d   : > { %v1897_v49 = vadd.f32 %v1896_v52, %v1696_v10  ;;  %v1698_v43 = vpop.f32.mrf.mxu0 }
 0x20e   : > { %v4744_v61 = vpop.f32.mrf.mxu1 }
 0x20f   : > { %4840 = vmatmul.mubr.msk.f32.vlgmr.msra.gmra.mxu1 %vm2030_vm4, %v1897_v49  ;;  %v1701_v11 = vpop.f32.mrf.mxu0 }
 0x210   : > { %v1901_v59 = vpop.f32.mrf.mxu1  ;;  %4842 = vmatprep.mubr.msk.f32.mxu1 %vm5129_vm2, %v5127_v3 }
 0x211   : > { %v1902_v57 = vadd.f32 %v1901_v59, %v1701_v11  ;;  %v1703_v42 = vpop.f32.mrf.mxu0 }
 0x212   : > { %v4747_v63 = vpop.f32.mrf.mxu1 }
 0x213   : > { %4843 = vmatmul.mubr.msk.f32.gmra.mxu1 %vm2030_vm4, %v1902_v57  ;;  %v1706_v24 = vpop.f32.mrf.mxu0 }
 0x214   : > { %v1906_v23 = vpop.f32.mrf.mxu1  ;;  %4845 = vmatprep.mubr.msk.f32.mxu1 %vm5129_vm2, %v5127_v3 }
 0x215   : > { %v1907_v33 = vadd.f32 %v1906_v23, %v1706_v24  ;;  %v1708_v1 = vpop.f32.mrf.mxu0 }
 0x216   : > { %v4750_v31 = vpop.f32.mrf.mxu1 }
 0x217   : > { %4846 = vmatmul.mubr.msk.f32.gmra.mxu1 %vm2030_vm4, %v1907_v33  ;;  %v1711_v32 = vpop.f32.mrf.mxu0 }
 0x218   : > { %v1911_v15 = vpop.f32.mrf.mxu1  ;;  %4848 = vmatprep.mubr.msk.f32.mxu1 %vm5129_vm2, %v5127_v3 }
 0x219   : > { %v1912_v28 = vadd.f32 %v1911_v15, %v1711_v32  ;;  %v1713_v13 = vpop.f32.mrf.mxu0 }
 0x21a   : > { %v4753_v0 = vpop.f32.mrf.mxu1 }
 0x21b   : > { %4849 = vmatmul.mubr.msk.f32.gmra.mxu1 %vm2030_vm4, %v1912_v28  ;;  %v1716_v27 = vpop.f32.mrf.mxu0 }
 0x21c   : > { %v1916_v12 = vpop.f32.mrf.mxu1  ;;  %4851 = vmatprep.mubr.msk.f32.mxu1 %vm5129_vm2, %v5127_v3 }
 0x21d   : > { %v1917_v7 = vadd.f32 %v1916_v12, %v1716_v27  ;;  %v1718_v14 = vpop.f32.mrf.mxu0 }
 0x21e   : > { %v4756_v35 = vpop.f32.mrf.mxu1 }
 0x21f   : > { %4852 = vmatmul.mubr.msk.f32.gmra.mxu1 %vm2030_vm4, %v1917_v7  ;;  %v1721_v34 = vpop.f32.mrf.mxu0 }
 0x220   : > { %v1921_v38 = vpop.f32.mrf.mxu1  ;;  %4854 = vmatprep.mubr.msk.f32.mxu1 %vm5129_vm2, %v5127_v3 }
 0x221   : > { %v1922_v36 = vadd.f32 %v1921_v38, %v1721_v34  ;;  %v1723_v16 = vpop.f32.mrf.mxu0 }
 0x222   : > { %v4759_v39 = vpop.f32.mrf.mxu1 }
 0x223   : > { %4855 = vmatmul.mubr.msk.f32.gmra.mxu1 %vm2030_vm4, %v1922_v36  ;;  %v1726_v50 = vpop.f32.mrf.mxu0 }
 0x224   : > { %v1926_v47 = vpop.f32.mrf.mxu1  ;;  %4857 = vmatprep.mubr.msk.f32.mxu1 %vm5129_vm2, %v5127_v3 }
 0x225   : > { %v1927_v8 = vadd.f32 %v1926_v47, %v1726_v50  ;;  %v1728_v2 = vpop.f32.mrf.mxu0 }
 0x226   : > { %v4762_v54 = vpop.f32.mrf.mxu1 }
 0x227   : > { %4858 = vmatmul.mubr.msk.f32.gmra.mxu1 %vm2030_vm4, %v1927_v8  ;;  %v1731_v60 = vpop.f32.mrf.mxu0 }
 0x228   : > { %v1931_v22 = vpop.f32.mrf.mxu1  ;;  %4860 = vmatprep.mubr.msk.f32.mxu1 %vm5129_vm2, %v5127_v3 }
 0x229   : > { %v1932_v51 = vadd.f32 %v1931_v22, %v1731_v60  ;;  %v1733_v4 = vpop.f32.mrf.mxu0 }
 0x22a   : > { %v4765_v44 = vpop.f32.mrf.mxu1 }
 0x22b   : > { %4861 = vmatmul.mubr.msk.f32.gmra.mxu1 %vm2030_vm4, %v1932_v51  ;;  %v1736_v48 = vpop.f32.mrf.mxu0 }
 0x22c   : > { %v1936_v45 = vpop.f32.mrf.mxu1  ;;  %4863 = vmatprep.mubr.msk.f32.mxu1 %vm5129_vm2, %v5127_v3 }
 0x22d   : > { %v1937_v46 = vadd.f32 %v1936_v45, %v1736_v48  ;;  %v1738_v40 = vpop.f32.mrf.mxu0 }
 0x22e   : > { %v4768_v62 = vpop.f32.mrf.mxu1 }
 0x22f   : > { %4864 = vmatmul.mubr.msk.f32.gmra.mxu1 %vm2030_vm4, %v1937_v46  ;;  %v1741_v55 = vpop.f32.mrf.mxu0 }
 0x230   : > { %v1941_v17 = vpop.f32.mrf.mxu1  ;;  %4866 = vmatprep.mubr.msk.f32.mxu1 %vm5129_vm2, %v5127_v3 }
 0x231   : > { %v1942_v29 = vadd.f32 %v1941_v17, %v1741_v55  ;;  %v1743_v9 = vpop.f32.mrf.mxu0 }
 0x232   : > { %v4771_v41 = vpop.f32.mrf.mxu1 }
 0x233   : > { %4867 = vmatmul.mubr.msk.f32.gmra.mxu1 %vm2030_vm4, %v1942_v29  ;;  %v1746_v30 = vpop.f32.mrf.mxu0 }
 0x234   : > { %v1946_v20 = vpop.f32.mrf.mxu1  ;;  %4869 = vmatprep.mubr.msk.f32.mxu1 %vm5129_vm2, %v5127_v3 }
 0x235   : > { %v1947_v19 = vadd.f32 %v1946_v20, %v1746_v30  ;;  %v1748_v26 = vpop.f32.mrf.mxu0 }
 0x236   : > { %v4774_v25 = vpop.f32.mrf.mxu1 }
 0x237   : > { %4870 = vmatmul.mubr.msk.f32.gmra.mxu1 %vm2030_vm4, %v1947_v19  ;;  %v1751_v21 = vpop.f32.mrf.mxu0 }
 0x238   : > { %v1951_v56 = vpop.f32.mrf.mxu1  ;;  %4872 = vmatprep.mubr.msk.f32.mxu1 %vm5129_vm2, %v5127_v3 }
 0x239   : > { %v1952_v53 = vadd.f32 %v1951_v56, %v1751_v21  ;;  %v1753_v37 = vpop.f32.mrf.mxu0 }
 0x23a   : > { %v4777_v6 = vpop.f32.mrf.mxu1 }
 0x23b   : > { %4873 = vmatmul.mubr.msk.f32.gmra.mxu1 %vm2030_vm4, %v1952_v53  ;;  %v1756_v58 = vpop.f32.mrf.mxu0 }
 0x23c   : > { %v1956_v5 = vpop.f32.mrf.mxu1  ;;  %4875 = vmatprep.mubr.msk.f32.mxu1 %vm5129_vm2, %v5127_v3 }
 0x23d   : > { %v1957_v18 = vadd.f32 %v1956_v5, %v1756_v58  ;;  %v1758_v10 = vpop.f32.mrf.mxu0 }
 0x23e   : > { %v4780_v52 = vpop.f32.mrf.mxu1 }
 0x23f   : > { %4876 = vmatmul.mubr.msk.f32.gmra.mxu1 %vm2030_vm4, %v1957_v18  ;;  %v1761_v49 = vpop.f32.mrf.mxu0 }
 0x240   : > { %v1961_v43 = vpop.f32.mrf.mxu1  ;;  %4878 = vmatprep.mubr.msk.f32.mxu1 %vm5129_vm2, %v5127_v3 }
 0x241   : > { %v1962_v61 = vadd.f32 %v1961_v43, %v1761_v49  ;;  %v1763_v11 = vpop.f32.mrf.mxu0 }
 0x242   : > { %v4783_v59 = vpop.f32.mrf.mxu1 }
 0x243   : > { %4879 = vmatmul.mubr.msk.f32.gmra.mxu1 %vm2030_vm4, %v1962_v61  ;;  %v1766_v57 = vpop.f32.mrf.mxu0 }
 0x244   : > { %v1966_v42 = vpop.f32.mrf.mxu1  ;;  %4881 = vmatprep.mubr.msk.f32.mxu1 %vm5129_vm2, %v5127_v3 }
 0x245   : > { %v1967_v63 = vadd.f32 %v1966_v42, %v1766_v57  ;;  %v1768_v24 = vpop.f32.mrf.mxu0 }
 0x246   : > { %v4786_v23 = vpop.f32.mrf.mxu1 }
 0x247   : > { %4882 = vmatmul.mubr.msk.f32.gmra.mxu1 %vm2030_vm4, %v1967_v63  ;;  %v1771_v33 = vpop.f32.mrf.mxu0 }
 0x248   : > { %v1971_v1 = vpop.f32.mrf.mxu1  ;;  %4884 = vmatprep.mubr.msk.f32.mxu1 %vm5129_vm2, %v5127_v3 }
 0x249   : > { %v1972_v31 = vadd.f32 %v1971_v1, %v1771_v33  ;;  %v1773_v32 = vpop.f32.mrf.mxu0  ;;  %v532_v1 = vld [vmem:[%s7235_s3 + $0x10] sm:$0xff] }
 0x24a   : > { %v4789_v15 = vpop.f32.mrf.mxu1 }
 0x24b   : > { %4885 = vmatmul.mubr.msk.f32.gmra.mxu1 %vm2030_vm4, %v1972_v31  ;;  %v1776_v28 = vpop.f32.mrf.mxu0 }
 0x24c   : > { %v1976_v13 = vpop.f32.mrf.mxu1  ;;  %4887 = vmatprep.mubr.msk.f32.mxu1 %vm5129_vm2, %v5127_v3 }
 0x24d   : > { %v1977_v0 = vadd.f32 %v1976_v13, %v1776_v28  ;;  %v1778_v27 = vpop.f32.mrf.mxu0  ;;  %v533_v28 = vld [vmem:[%s7235_s3 + $0x18] sm:$0xff] }
 0x24e   : > { %v4792_v12 = vpop.f32.mrf.mxu1 }
 0x24f   : > { %4888 = vmatmul.mubr.msk.f32.gmra.mxu1 %vm2030_vm4, %v1977_v0  ;;  %v1781_v7 = vpop.f32.mrf.mxu0  ;;  %v534_v12 = vld [vmem:[%s7235_s3 + $0x20] sm:$0xff] }
 0x250   : > { %v1981_v14 = vpop.f32.mrf.mxu1  ;;  %4890 = vmatprep.mubr.msk.f32.mxu1 %vm5129_vm2, %v5127_v3 }
 0x251   : > { %v1982_v35 = vadd.f32 %v1981_v14, %v1781_v7  ;;  %v1783_v34 = vpop.f32.mrf.mxu0 }
 0x252   : > { %v4795_v38 = vpop.f32.mrf.mxu1  ;;  %v535_v34 = vld [vmem:[%s7235_s3 + $0x28] sm:$0xff] }
 0x253   : > { %4891 = vmatmul.mubr.msk.f32.gmra.mxu1 %vm2030_vm4, %v1982_v35  ;;  %v1786_v36 = vpop.f32.mrf.mxu0 }
 0x254   : > { %v1986_v16 = vpop.f32.mrf.mxu1  ;;  %4893 = vmatprep.mubr.msk.f32.mxu1 %vm5129_vm2, %v5127_v3 }
 0x255   : > { %v1987_v39 = vadd.f32 %v1986_v16, %v1786_v36  ;;  %v1788_v50 = vpop.f32.mrf.mxu0 }
 0x256   : > { %v4798_v47 = vpop.f32.mrf.mxu1 }
 0x257   : > { %4894 = vmatmul.mubr.msk.f32.gmra.mxu1 %vm2030_vm4, %v1987_v39  ;;  %v1791_v8 = vpop.f32.mrf.mxu0  ;;  %v536_v39 = vld [vmem:[%s7235_s3 + $0x30] sm:$0xff] }
 0x258   : > { %v1991_v2 = vpop.f32.mrf.mxu1  ;;  %4896 = vmatprep.mubr.msk.f32.mxu1 %vm5129_vm2, %v5127_v3 }
 0x259   : > { %v1992_v54 = vadd.f32 %v1991_v2, %v1791_v8  ;;  %v1793_v60 = vpop.f32.mrf.mxu0  ;;  %v537_v2 = vld [vmem:[%s7235_s3 + $0x38] sm:$0xff] }
 0x25a   : > { %v4801_v22 = vpop.f32.mrf.mxu1 }
 0x25b   : > { %4897 = vmatmul.mubr.msk.f32.gmra.mxu1 %vm2030_vm4, %v1992_v54  ;;  %v1796_v51 = vpop.f32.mrf.mxu0 }
 0x25c   : > { %v1996_v4 = vpop.f32.mrf.mxu1  ;;  %4899 = vmatprep.mubr.msk.f32.mxu1 %vm5129_vm2, %v5127_v3 }
 0x25d   : > { %v1997_v44 = vadd.f32 %v1996_v4, %v1796_v51  ;;  %v1798_v48 = vpop.f32.mrf.mxu0  ;;  %v538_v51 = vld [vmem:[%s7235_s3 + $0x40] sm:$0xff] }
 0x25e   : > { %v4804_v45 = vpop.f32.mrf.mxu1 }
 0x25f   : > { %4900 = vmatmul.mubr.msk.f32.gmra.mxu1 %vm2030_vm4, %v1997_v44  ;;  %v1801_v46 = vpop.f32.mrf.mxu0  ;;  %v539_v45 = vld [vmem:[%s7235_s3 + $0x48] sm:$0xff] }
 0x260   : > { %v2001_v40 = vpop.f32.mrf.mxu1  ;;  %4902 = vmatprep.mubr.msk.f32.mxu1 %vm5129_vm2, %v5127_v3 }
 0x261   : > { %v2002_v62 = vadd.f32 %v2001_v40, %v1801_v46  ;;  %v1803_v55 = vpop.f32.mrf.mxu0 }
 0x262   : > { %v4807_v17 = vpop.f32.mrf.mxu1  ;;  %v540_v55 = vld [vmem:[%s7235_s3 + $0x50] sm:$0xff] }
 0x263   : > { %4903 = vmatmul.mubr.msk.f32.gmra.mxu1 %vm2030_vm4, %v2002_v62  ;;  %v1806_v29 = vpop.f32.mrf.mxu0 }
 0x264   : > { %v2006_v9 = vpop.f32.mrf.mxu1  ;;  %4905 = vmatprep.mubr.msk.f32.mxu1 %vm5129_vm2, %v5127_v3 }
 0x265   : > { %v2007_v41 = vadd.f32 %v2006_v9, %v1806_v29  ;;  %v1808_v30 = vpop.f32.mrf.mxu0 }
 0x266   : > { %v4810_v20 = vpop.f32.mrf.mxu1 }
 0x267   : > { %4906 = vmatmul.mubr.msk.f32.gmra.mxu1 %vm2030_vm4, %v2007_v41  ;;  %v1811_v19 = vpop.f32.mrf.mxu0  ;;  %v541_v41 = vld [vmem:[%s7235_s3 + $0x58] sm:$0xff] }
 0x268   : > { %v2011_v26 = vpop.f32.mrf.mxu1  ;;  %4908 = vmatprep.mubr.msk.f32.mxu1 %vm5129_vm2, %v5127_v3 }
 0x269   : > { %v2012_v25 = vadd.f32 %v2011_v26, %v1811_v19  ;;  %v1813_v21 = vpop.f32.mrf.mxu0  ;;  %v542_v26 = vld [vmem:[%s7235_s3 + $0x60] sm:$0xff] }
 0x26a   : > { %v4813_v56 = vpop.f32.mrf.mxu1 }
 0x26b   : > { %4909 = vmatmul.mubr.msk.f32.gmra.mxu1 %vm2030_vm4, %v2012_v25  ;;  %v1816_v53 = vpop.f32.mrf.mxu0 }
 0x26c   : > { %v2016_v37 = vpop.f32.mrf.mxu1  ;;  %4911 = vmatprep.mubr.msk.f32.mxu1 %vm5129_vm2, %v5127_v3 }
 0x26d   : > { %v2017_v6 = vadd.f32 %v2016_v37, %v1816_v53  ;;  %v1818_v58 = vpop.f32.mrf.mxu0  ;;  %v543_v53 = vld [vmem:[%s7235_s3 + $0x68] sm:$0xff] }
 0x26e   : > { %v4816_v5 = vpop.f32.mrf.mxu1 }
 0x26f   : > { %4912 = vmatmul.mubr.msk.f32.gmra.mxu1 %vm2030_vm4, %v2017_v6  ;;  %v1821_v18 = vpop.f32.mrf.mxu0  ;;  %v544_v5 = vld [vmem:[%s7235_s3 + $0x70] sm:$0xff] }
 0x270   : > { %v2021_v10 = vpop.f32.mrf.mxu1  ;;  %4914 = vmatprep.mubr.msk.f32.mxu1 %vm5129_vm2, %v5127_v3 }
 0x271   : > { %v2022_v52 = vadd.f32 %v2021_v10, %v1821_v18  ;;  %v1823_v49 = vpop.f32.mrf.mxu0 }
 0x272   : > { %v4819_v43 = vpop.f32.mrf.mxu1  ;;  %v545_v49 = vld [vmem:[%s7235_s3 + $0x78] sm:$0xff] }
 0x273   : > { %4915 = vmatmul.mubr.msk.f32.gmra.mxu1 %vm2030_vm4, %v2022_v52  ;;  %v1826_v61 = vpop.f32.mrf.mxu0 }
 0x274   : > { %v2026_v11 = vpop.f32.mrf.mxu1  ;;  %4917 = vmatprep.mubr.msk.f32.mxu1 %vm5129_vm2, %v5127_v3 }
 0x275   : > { %v2027_v59 = vadd.f32 %v2026_v11, %v1826_v61  ;;  %v1828_v57 = vpop.f32.mrf.mxu0 }
 0x276   : > { %v4822_v42 = vpop.f32.mrf.mxu1 }
 0x277   : > { %4918 = vmatmul.mubr.msk.f32.gmra.mxu1 %vm2030_vm4, %v2027_v59  ;;  %v546_v59 = vld [vmem:[%s7235_s3 + $0x80] sm:$0xff]  ;;  %vm3919_vm4 = vcmask 146432  }
 0x2cf   : > { %v6208_v63 = vpop.f32.mrf.mxu1 }
 0x2d1   : > { %v4841_v24 = vpop.f32.mrf.mxu1 }
 0x2d2   : > { %v531_v24 = vld [vmem:[%s7235_s3 + $0x8] sm:$0xff] }
 0x2d3   : > { %v6210_v23 = vpop.f32.mrf.mxu1 }
 0x2d5   : > { %v4844_v33 = vpop.f32.mrf.mxu1 }
 0x2d7   : > { %v2191_v31 = vpop.f32.mrf.mxu1 }
 0x2d8   : > { %v6215_v32 = vadd.f32 %v2191_v31, %v532_v1  ;;  %v6349_v31 = vadd.f32 %v6210_v23, %v531_v24 }
 0x2d9   : > { %v4847_v15 = vpop.f32.mrf.mxu1 }
 0x2da   : > { %2346 = vrot.lane.b32.xlu1 %v6215_v32, %s5126_s14  ;;  %v530_v15 = vld [vmem:[%s7235_s3] sm:$0xff] }
 0x2db   : > { %v2196_v13 = vpop.f32.mrf.mxu1 }
 0x2dc   : > { %v6222_v0 = vadd.f32 %v2196_v13, %v533_v28 }
 0x2dd   : > { %v4850_v27 = vpop.f32.mrf.mxu1 }
 0x2de   : > { %2456 = vrot.lane.b32.xlu0 %v6222_v0, %s5128_s15  ;;  %2348 = vrot.lane.b32.xlu1 %v6222_v0, %s5126_s14  ;;  %v6359_v27 = vadd.f32 %v6208_v63, %v530_v15 }
 0x2df   : > { %v2201_v7 = vpop.f32.mrf.mxu1 }
 0x2e0   : > { %v6231_v14 = vadd.f32 %v2201_v7, %v534_v12 }
 0x2e1   : > { %v4853_v35 = vpop.f32.mrf.mxu1 }
 0x2e2   : > { %2458 = vrot.lane.b32.xlu0 %v6231_v14, %s5128_s15  ;;  %2350 = vrot.lane.b32.xlu1 %v6231_v14, %s5126_s14  ;;  %v550_v35 = vld [vmem:[%s7235_s3 + $0xa0] sm:$0xff] }
 0x2e3   : > { %v2206_v38 = vpop.f32.mrf.mxu1 }
 0x2e4   : > { %v6240_v36 = vadd.f32 %v2206_v38, %v535_v34 }
 0x2e5   : > { %v4856_v16 = vpop.f32.mrf.mxu1 }
 0x2e6   : > { %2460 = vrot.lane.b32.xlu0 %v6240_v36, %s5128_s15  ;;  %2352 = vrot.lane.b32.xlu1 %v6240_v36, %s5126_s14  ;;  %v551_v16 = vld [vmem:[%s7235_s3 + $0xa8] sm:$0xff] }
 0x2e7   : > { %v2211_v50 = vpop.f32.mrf.mxu1 }
 0x2e8   : > { %v6249_v47 = vadd.f32 %v2211_v50, %v536_v39 }
 0x2e9   : > { %v4859_v8 = vpop.f32.mrf.mxu1 }
 0x2ea   : > { %2462 = vrot.lane.b32.xlu0 %v6249_v47, %s5128_s15  ;;  %2354 = vrot.lane.b32.xlu1 %v6249_v47, %s5126_s14 }
 0x2eb   : > { %v2216_v54 = vpop.f32.mrf.mxu1 }
 0x2ec   : > { %v6258_v60 = vadd.f32 %v2216_v54, %v537_v2  ;;  %v552_v2 = vld [vmem:[%s7235_s3 + $0xb0] sm:$0xff] }
 0x2ed   : > { %v4862_v22 = vpop.f32.mrf.mxu1 }
 0x2ee   : > { %2464 = vrot.lane.b32.xlu0 %v6258_v60, %s5128_s15  ;;  %2356 = vrot.lane.b32.xlu1 %v6258_v60, %s5126_s14 }
 0x2ef   : > { %v2221_v4 = vpop.f32.mrf.mxu1 }
 0x2f0   : > { %v6267_v44 = vadd.f32 %v2221_v4, %v538_v51  ;;  %v553_v4 = vld [vmem:[%s7235_s3 + $0xb8] sm:$0xff] }
 0x2f1   : > { %v4865_v48 = vpop.f32.mrf.mxu1 }
 0x2f2   : > { %2466 = vrot.lane.b32.xlu0 %v6267_v44, %s5128_s15  ;;  %2358 = vrot.lane.b32.xlu1 %v6267_v44, %s5126_s14 }
 0x2f3   : > { %v2226_v46 = vpop.f32.mrf.mxu1 }
 0x2f4   : > { %v6276_v40 = vadd.f32 %v2226_v46, %v539_v45 }
 0x2f5   : > { %v4868_v62 = vpop.f32.mrf.mxu1 }
 0x2f6   : > { %2468 = vrot.lane.b32.xlu0 %v6276_v40, %s5128_s15  ;;  %2360 = vrot.lane.b32.xlu1 %v6276_v40, %s5126_s14  ;;  %v554_v62 = vld [vmem:[%s7235_s3 + $0xc0] sm:$0xff] }
 0x2f7   : > { %v2231_v17 = vpop.f32.mrf.mxu1 }
 0x2f8   : > { %v6285_v29 = vadd.f32 %v2231_v17, %v540_v55 }
 0x2f9   : > { %v4871_v9 = vpop.f32.mrf.mxu1 }
 0x2fa   : > { %2470 = vrot.lane.b32.xlu0 %v6285_v29, %s5128_s15  ;;  %2362 = vrot.lane.b32.xlu1 %v6285_v29, %s5126_s14 }
 0x2fb   : > { %v2236_v30 = vpop.f32.mrf.mxu1 }
 0x2fc   : > { %v6294_v20 = vadd.f32 %v2236_v30, %v541_v41  ;;  %v555_v41 = vld [vmem:[%s7235_s3 + $0xc8] sm:$0xff] }
 0x2fd   : > { %v4874_v19 = vpop.f32.mrf.mxu1 }
 0x2fe   : > { %2472 = vrot.lane.b32.xlu0 %v6294_v20, %s5128_s15  ;;  %2364 = vrot.lane.b32.xlu1 %v6294_v20, %s5126_s14 }
 0x2ff   : > { %v2241_v25 = vpop.f32.mrf.mxu1 }
 0x300   : > { %v6303_v21 = vadd.f32 %v2241_v25, %v542_v26  ;;  %v556_v25 = vld [vmem:[%s7235_s3 + $0xd0] sm:$0x3] }
 0x301   : > { %v4877_v56 = vpop.f32.mrf.mxu1 }
 0x302   : > { %2474 = vrot.lane.b32.xlu0 %v6303_v21, %s5128_s15  ;;  %2366 = vrot.lane.b32.xlu1 %v6303_v21, %s5126_s14 }
 0x303   : > { %v2246_v37 = vpop.f32.mrf.mxu1 }
 0x304   : > { %v6312_v6 = vadd.f32 %v2246_v37, %v543_v53  ;;  %v549_v37 = vld [vmem:[%s7235_s3 + $0x98] sm:$0xff] }
 0x305   : > { %v4880_v58 = vpop.f32.mrf.mxu1 }
 0x306   : > { %2476 = vrot.lane.b32.xlu0 %v6312_v6, %s5128_s15  ;;  %2368 = vrot.lane.b32.xlu1 %v6312_v6, %s5126_s14 }
 0x307   : > { %v2251_v18 = vpop.f32.mrf.mxu1 }
 0x308   : > { %v6321_v10 = vadd.f32 %v2251_v18, %v544_v5  ;;  %v548_v18 = vld [vmem:[%s7235_s3 + $0x90] sm:$0xff] }
 0x309   : > { %v4883_v52 = vpop.f32.mrf.mxu1 }
 0x30a   : > { %2370 = vrot.lane.b32.xlu0 %v6321_v10, %s5126_s14 }
 0x30b   : > { %v2256_v43 = vpop.f32.mrf.mxu1 }
 0x30c   : > { %v6328_v61 = vadd.f32 %v2256_v43, %v545_v49  ;;  %v547_v49 = vld [vmem:[%s7235_s3 + $0x88] sm:$0xff] }
 0x30d   : > { %v4886_v11 = vpop.f32.mrf.mxu1 }
 0x30e   : > { %2478 = vrot.lane.b32.xlu0 %v6321_v10, %s5128_s15  ;;  %2480 = vrot.lane.b32.xlu1 %v6328_v61, %s5128_s15 }
 0x30f   : > { %v2261_v57 = vpop.f32.mrf.mxu1 }
 0x310   : > { %v6337_v42 = vadd.f32 %v2261_v57, %v546_v59  ;;  %v558_v59 = vld [vmem:[%s7236_s4 + $0x8] sm:$0xff] }
 0x311   : > { %v4889_v33 = vpop.f32.mrf.mxu1  ;;  %4452 = vmatprep.mubr.msk.f32.mxu0 %vm2795_vm5, %v558_v59 }
 0x312   : > { %2372 = vrot.lane.b32.xlu0 %v6328_v61, %s5126_s14  ;;  %2374 = vrot.lane.b32.xlu1 %v6337_v42, %s5126_s14 }
 0x313   : > { %v6346_v1 = vpop.f32.mrf.mxu1 }
 0x314   : > { %v6448_v43 = vadd.f32 %v6346_v1, %v547_v49 }
 0x315   : > { %v4892_v28 = vpop.f32.mrf.mxu1 }
 0x316   : > { %2482 = vrot.lane.b32.xlu0 %v6337_v42, %s5128_s15  ;;  %2344 = vrot.lane.b32.xlu1 %v6349_v31, %s5126_s14 }
 0x317   : > { %v2271_v13 = vpop.f32.mrf.mxu1 }
 0x318   : > { %v6438_v52 = vadd.f32 %v2271_v13, %v548_v18 }
 0x319   : > { %v4895_v12 = vpop.f32.mrf.mxu1 }
 0x31a   : > { %2454 = vrot.lane.b32.xlu0 %v6215_v32, %s5128_s15  ;;  %2342 = vrot.lane.b32.xlu1 %v6359_v27, %s5126_s14 }
 0x31b   : > { %v2276_v23 = vpop.f32.mrf.mxu1 }
 0x31c   : > { %v6429_v5 = vadd.f32 %v2276_v23, %v549_v37 }
 0x31d   : > { %v4898_v7 = vpop.f32.mrf.mxu1 }
 0x31e   : > { %2452 = vrot.lane.b32.xlu0 %v6349_v31, %s5128_s15  ;;  %2450 = vrot.lane.b32.xlu1 %v6359_v27, %s5128_s15 }
 0x31f   : > { %v2281_v63 = vpop.f32.mrf.mxu1 }
 0x320   : > { %v6372_v34 = vadd.f32 %v2281_v63, %v550_v35 }
 0x321   : > { %v4901_v38 = vpop.f32.mrf.mxu1 }
 0x322   : > { %2382 = vrot.lane.b32.xlu1 %v6372_v34, %s5126_s14 }
 0x323   : > { %v2286_v39 = vpop.f32.mrf.mxu1 }
 0x324   : > { %v6379_v50 = vadd.f32 %v2286_v39, %v551_v16 }
 0x325   : > { %v4904_v8 = vpop.f32.mrf.mxu1 }
 0x326   : > { %2384 = vrot.lane.b32.xlu1 %v6379_v50, %s5126_s14 }
 0x327   : > { %v2291_v54 = vpop.f32.mrf.mxu1 }
 0x328   : > { %v6386_v22 = vadd.f32 %v2291_v54, %v552_v2 }
 0x329   : > { %v4907_v51 = vpop.f32.mrf.mxu1 }
 0x32a   : > { %2494 = vrot.lane.b32.xlu0 %v6386_v22, %s5128_s15  ;;  %2386 = vrot.lane.b32.xlu1 %v6386_v22, %s5126_s14 }
 0x32b   : > { %v2296_v48 = vpop.f32.mrf.mxu1 }
 0x32c   : > { %v6395_v45 = vadd.f32 %v2296_v48, %v553_v4 }
 0x32d   : > { %v4910_v46 = vpop.f32.mrf.mxu1 }
 0x32e   : > { %2496 = vrot.lane.b32.xlu0 %v6395_v45, %s5128_s15  ;;  %2388 = vrot.lane.b32.xlu1 %v6395_v45, %s5126_s14 }
 0x32f   : > { %v2301_v55 = vpop.f32.mrf.mxu1 }
 0x330   : > { %v6404_v17 = vadd.f32 %v2301_v55, %v554_v62 }
 0x331   : > { %v4913_v9 = vpop.f32.mrf.mxu1 }
 0x332   : > { %2390 = vrot.lane.b32.xlu0 %v6404_v17, %s5126_s14 }
 0x333   : > { %v2306_v30 = vpop.f32.mrf.mxu1 }
 0x334   : > { %v6411_v19 = vadd.f32 %v2306_v30, %v555_v41 }
 0x335   : > { %v4916_v26 = vpop.f32.mrf.mxu1 }
 0x336   : > { %2498 = vrot.lane.b32.xlu0 %v6404_v17, %s5128_s15  ;;  %2392 = vrot.lane.b32.xlu1 %v6411_v19, %s5126_s14 }
 0x337   : > { %v2311_v56 = vpop.f32.mrf.mxu1 }
 0x338   : > { %v6420_v53 = vadd.f32 %v2311_v56, %v556_v25 }
 0x339   : > { %v4919_v58 = vpop.f32.mrf.mxu1 }
 0x33a   : > { %2500 = vrot.lane.b32.xlu1 %v6411_v19, %s5128_s15  ;;  %2394 = vrot.lane.b32.xlu0 %v6420_v53, %s5126_s14 }
 0x33e   : > { %2380 = vrot.lane.b32.xlu1 %v6429_v5, %s5126_s14  ;;  %2502 = vrot.lane.b32.xlu0 %v6420_v53, %s5128_s15 }
 0x342   : > { %2378 = vrot.lane.b32.xlu1 %v6438_v52, %s5126_s14  ;;  %2492 = vrot.lane.b32.xlu0 %v6379_v50, %s5128_s15 }
 0x346   : > { %2376 = vrot.lane.b32.xlu1 %v6448_v43, %s5126_s14  ;;  %2490 = vrot.lane.b32.xlu0 %v6372_v34, %s5128_s15 }
 0x34a   : > { %2484 = vrot.lane.b32.xlu1 %v6448_v43, %s5128_s15  ;;  %2488 = vrot.lane.b32.xlu0 %v6429_v5, %s5128_s15 }
 0x34c   : > { %v6458_v11 = vpop.permute.xlu1 %2346 }
 0x34e   : > { %2486 = vrot.lane.b32.xlu0 %v6438_v52, %s5128_s15 }
 0x350   : > { %v2457_v57 = vpop.permute.xlu0 %2456  ;;  %v2349_v24 = vpop.permute.xlu1 %2348 }
 0x351   : > { %v2426_v33 = vmax.f32 %v6222_v0, %v2349_v24 }
 0x353   : > { %v6467_v1 = vmax.f32 %v2426_v33, %v2457_v57 }
 0x354   : > { %v2459_v15 = vpop.permute.xlu0 %2458  ;;  %v2351_v28 = vpop.permute.xlu1 %2350 }
 0x355   : > { %v2427_v13 = vmax.f32 %v6231_v14, %v2351_v28  ;;  %v2590_v23 = vrot.slane %v6467_v1, 1  ;;  %v2695_v63 = vrot.slane %v6467_v1, 2 }
 0x357   : > { %v2535_v12 = vmax.f32 %v2427_v13, %v2459_v15 }
 0x358   : > { %v2461_v7 = vpop.permute.xlu0 %2460  ;;  %v2353_v35 = vpop.permute.xlu1 %2352 }
 0x359   : > { %v2592_v38 = vrot.slane %v2535_v12, 1  ;;  %v2697_v16 = vrot.slane %v2535_v12, 2  ;;  %v2428_v39 = vmax.f32 %v6240_v36, %v2353_v35 }
 0x35b   : > { %v6473_v8 = vmax.f32 %v2428_v39, %v2461_v7  ;;  %v2593_v0 = vsel %vm1161_vm0, %v2590_v23, %v2592_v38  ;;  %v2698_v14 = vsel %vm1353_vm1, %v2695_v63, %v2697_v16 }
 0x35c   : > { %v6481_v2 = vpop.permute.xlu0 %2462  ;;  %v6483_v54 = vpop.permute.xlu1 %2354  ;;  %v2667_v51 = vmax.f32 %v6467_v1, %v2593_v0 }
 0x35d   : > { %v2594_v4 = vrot.slane %v6473_v8, 1  ;;  %v7246_v36 = vrot.slane %v6473_v8, 2 }
 0x35e   : > { %v6488_v48 = vmax.f32 %v2667_v51, %v2698_v14 }
 0x35f   : > { %v2595_v46 = vsel %vm1161_vm0, %v2592_v38, %v2594_v4  ;;  %v2700_v62 = vsel %vm1353_vm1, %v2697_v16, %v7246_v36 }
 0x360   : > { %v6496_v55 = vpop.permute.xlu0 %2464  ;;  %v6498_v9 = vpop.permute.xlu1 %2356  ;;  %v2668_v41 = vmax.f32 %v2535_v12, %v2595_v46 }
 0x362   : > { %v6500_v30 = vmax.f32 %v2668_v41, %v2700_v62 }
 0x364   : > { %v2467_v26 = vpop.permute.xlu0 %2466  ;;  %v2359_v25 = vpop.permute.xlu1 %2358 }
 0x365   : > { %v2431_v36 = vmax.f32 %v6267_v44, %v2359_v25 }
 0x368   : > { %v2469_v56 = vpop.permute.xlu0 %2468  ;;  %v2361_v37 = vpop.permute.xlu1 %2360 }
 0x36c   : > { %v2471_v58 = vpop.permute.xlu0 %2470  ;;  %v2363_v18 = vpop.permute.xlu1 %2362 }
 0x370   : > { %v2473_v49 = vpop.permute.xlu0 %2472  ;;  %v2365_v59 = vpop.permute.xlu1 %2364 }
 0x371   : > { %v2434_v51 = vmax.f32 %v6294_v20, %v2365_v59  ;;  %v2425_v20 = vmax.f32 %v6215_v32, %v6458_v11  ;;  %v6531_v59 = vmax.f32 %v2431_v36, %v2467_v26 }
 0x373   : > { %v6523_v44 = vmax.f32 %v2434_v51, %v2473_v49 }
 0x374   : > { %v2475_v57 = vpop.permute.xlu0 %2474  ;;  %v2367_v24 = vpop.permute.xlu1 %2366 }
 0x375   : > { %v2435_v38 = vmax.f32 %v6303_v21, %v2367_v24  ;;  %v2606_v36 = vrot.slane %v6523_v44, 1 }
 0x378   : > { %v2477_v33 = vpop.permute.xlu0 %2476  ;;  %v2369_v15 = vpop.permute.xlu1 %2368 }
 0x379   : > { %v2436_v35 = vmax.f32 %v6312_v6, %v2369_v15  ;;  %v2432_v6 = vmax.f32 %v6276_v40, %v2361_v37  ;;  %v6513_v15 = vmax.f32 %v2435_v38, %v2475_v57 }
 0x37b   : > { %v6507_v46 = vmax.f32 %v2436_v35, %v2477_v33  ;;  %v6533_v57 = vmax.f32 %v2432_v6, %v2469_v56 }
 0x37c   : > { %v2371_v28 = vpop.permute.xlu0 %2370 }
 0x37d   : > { %v2437_v12 = vmax.f32 %v6321_v10, %v2371_v28  ;;  %v2433_v10 = vmax.f32 %v6285_v29, %v2363_v18  ;;  %v2610_v40 = vrot.slane %v6507_v46, 1  ;;  %v2430_v29 = vmax.f32 %v6258_v60, %v6498_v9 }
 0x37f   : > { %v6535_v32 = vmax.f32 %v2433_v10, %v2471_v58 }
 0x380   : > { %v2479_v13 = vpop.permute.xlu0 %2478  ;;  %v2481_v7 = vpop.permute.xlu1 %2480 }
 0x381   : > { %v2545_v0 = vmax.f32 %v2437_v12, %v2479_v13 }
 0x383   : > { %v2612_v28 = vrot.slane %v2545_v0, 1 }
 0x384   : > { %v2373_v16 = vpop.permute.xlu0 %2372  ;;  %v2375_v39 = vpop.permute.xlu1 %2374 }
 0x385   : > { %v2438_v14 = vmax.f32 %v6328_v61, %v2373_v16  ;;  %v2439_v41 = vmax.f32 %v6337_v42, %v2375_v39  ;;  %v2429_v42 = vmax.f32 %v6249_v47, %v6483_v54  ;;  %v2608_v47 = vrot.slane %v6513_v15, 1 }
 0x386   : > { %v2613_v49 = vsel %vm1161_vm0, %v2610_v40, %v2612_v28  ;;  %v2604_v16 = vrot.slane %v6535_v32, 1 }
 0x387   : > { %v2546_v62 = vmax.f32 %v2438_v14, %v2481_v7  ;;  %v2611_v58 = vsel %vm1161_vm0, %v2608_v47, %v2610_v40  ;;  %v2717_v7 = vrot.slane %v2545_v0, 2  ;;  %v2677_v51 = vmax.f32 %v6507_v46, %v2613_v49 }
 0x388   : > { %v2483_v21 = vpop.permute.xlu0 %2482  ;;  %v6515_v24 = vpop.permute.xlu1 %2344  ;;  %v6581_v40 = vmax.f32 %v2429_v42, %v6481_v2 }
 0x389   : > { %v2614_v61 = vrot.slane %v2546_v62, 1  ;;  %v6517_v13 = vmax.f32 %v2439_v41, %v2483_v21  ;;  %v2719_v60 = vrot.slane %v2546_v62, 2  ;;  %v2715_v41 = vrot.slane %v6507_v46, 2 }
 0x38a   : > { %v6571_v21 = vmax.f32 %v2430_v29, %v6496_v55 }
 0x38b   : > { %v2616_v25 = vrot.slane %v6517_v13, 1  ;;  %v2721_v37 = vrot.slane %v6517_v13, 2  ;;  %v2615_v18 = vsel %vm1161_vm0, %v2612_v28, %v2614_v61  ;;  %v2720_v10 = vsel %vm1353_vm1, %v2717_v7, %v2719_v60 }
 0x38c   : > { %v2455_v11 = vpop.permute.xlu0 %2454  ;;  %v6538_v54 = vpop.permute.xlu1 %2342  ;;  %v2678_v56 = vmax.f32 %v2545_v0, %v2615_v18  ;;  %v2718_v1 = vsel %vm1353_vm1, %v2715_v41, %v2717_v7 }
 0x38d   : > { %v2617_v9 = vsel %vm1161_vm0, %v2614_v61, %v2616_v25  ;;  %v6544_v33 = vmax.f32 %v2425_v20, %v2455_v11  ;;  %v2722_v38 = vsel %vm1353_vm1, %v2719_v60, %v2721_v37  ;;  %v2676_v61 = vmax.f32 %v6513_v15, %v2611_v58 }
 0x38e   : > { %v2679_v26 = vmax.f32 %v2546_v62, %v2617_v9  ;;  %v2609_v62 = vsel %vm1161_vm0, %v2606_v36, %v2608_v47  ;;  %v2783_v46 = vmax.f32 %v2678_v56, %v2720_v10  ;;  %v2602_v20 = vrot.slane %v6533_v57, 1 }
 0x38f   : > { %v2588_v35 = vrot.slane %v6544_v33, 1  ;;  %v2693_v12 = vrot.slane %v6544_v33, 2  ;;  %v2782_v18 = vmax.f32 %v2677_v51, %v2718_v1  ;;  %v2675_v47 = vmax.f32 %v6523_v44, %v2609_v62 }
 0x390   : > { %v6554_v39 = vpop.permute.xlu1 %2450  ;;  %v2784_v14 = vmax.f32 %v2679_v26, %v2722_v38  ;;  %v2600_v11 = vrot.slane %v6531_v59, 1  ;;  %v2605_v60 = vsel %vm1161_vm0, %v2602_v20, %v2604_v16  ;;  %v2598_v9 = vrot.slane %v6571_v21, 1  ;;  %v2453_v58 = vpop.permute.xlu0 %2452 }
 0x391   : > { %v2591_v0 = vsel %vm1161_vm0, %v2588_v35, %v2590_v23  ;;  %v2696_v6 = vsel %vm1353_vm1, %v2693_v12, %v2695_v63  ;;  %v2713_v23 = vrot.slane %v6513_v15, 2  ;;  %v2607_v63 = vsel %vm1161_vm0, %v2604_v16, %v2606_v36 }
 0x392   : > { %v2666_v28 = vmax.f32 %v6544_v33, %v2591_v0  ;;  %2836 = vmatpush1.msra.mxu0 %v2784_v14  ;;  %v2711_v15 = vrot.slane %v6523_v44, 2  ;;  %v2674_v42 = vmax.f32 %v6535_v32, %v2607_v63  ;;  %v2709_v36 = vrot.slane %v6535_v32, 2 }
 0x393   : > { %2837 = vmatprep.subr.mxu0 %v5127_v3  ;;  %v2716_v49 = vsel %vm1353_vm1, %v2713_v23, %v2715_v41  ;;  %v2603_v44 = vsel %vm1161_vm0, %v2600_v11, %v2602_v20  ;;  %v2596_v56 = vrot.slane %v6581_v40, 1  ;;  %v2673_v16 = vmax.f32 %v6533_v57, %v2605_v60 }
 0x394   : > { %v6583_v55 = vmax.f32 %v2666_v28, %v2696_v6  ;;  %2838 = vmatpush1.msra.mxu0 %v2783_v46  ;;  %v6585_v29 = vpop.permute.xlu1 %2382  ;;  %v2781_v2 = vmax.f32 %v2676_v61, %v2716_v49  ;;  %v2714_v26 = vsel %vm1353_vm1, %v2711_v15, %v2713_v23  ;;  %v2707_v14 = vrot.slane %v6533_v57, 2 }
 0x395   : > { %2839 = vmatprep.subr.mxu0 %v5127_v3  ;;  %v2780_v38 = vmax.f32 %v2675_v47, %v2714_v26  ;;  %v2712_v32 = vsel %vm1353_vm1, %v2709_v36, %v2711_v15  ;;  %v2601_v51 = vsel %vm1161_vm0, %v2598_v9, %v2600_v11  ;;  %v2672_v41 = vmax.f32 %v6531_v59, %v2603_v44 }
 0x396   : > { %2840 = vmatpush1.msra.mxu0 %v2782_v18  ;;  %v2779_v62 = vmax.f32 %v2674_v42, %v2712_v32  ;;  %v2705_v0 = vrot.slane %v6531_v59, 2  ;;  %v2424_v6 = vmax.f32 %v6349_v31, %v6515_v24  ;;  %v2710_v10 = vsel %vm1353_vm1, %v2707_v14, %v2709_v36 }
 0x397   : > { %2841 = vmatprep.subr.mxu0 %v5127_v3  ;;  %v2599_v57 = vsel %vm1161_vm0, %v2596_v56, %v2598_v9  ;;  %v2778_v46 = vmax.f32 %v2673_v16, %v2710_v10  ;;  %v2671_v61 = vmax.f32 %v6571_v21, %v2601_v51  ;;  %v2597_v20 = vsel %vm1161_vm0, %v2594_v4, %v2596_v56 }
 0x398   : > { %2842 = vmatpush1.msra.mxu0 %v2781_v2  ;;  %v6600_v7 = vpop.permute.xlu1 %2384  ;;  %v2703_v59 = vrot.slane %v6571_v21, 2  ;;  %v2423_v31 = vmax.f32 %v6359_v27, %v6538_v54  ;;  %v2532_v24 = vmax.f32 %v2424_v6, %v2453_v58  ;;  %v2708_v23 = vsel %vm1353_vm1, %v2705_v0, %v2707_v14 }
 0x399   : > { %2843 = vmatprep.subr.mxu0 %v5127_v3  ;;  %v2777_v63 = vmax.f32 %v2672_v41, %v2708_v23  ;;  %v2670_v18 = vmax.f32 %v6581_v40, %v2599_v57  ;;  %v2701_v47 = vrot.slane %v6581_v40, 2  ;;  %v2669_v21 = vmax.f32 %v6473_v8, %v2597_v20 }
 0x39a   : > { %2844 = vmatpush1.msra.mxu0 %v2780_v38  ;;  %v2531_v11 = vmax.f32 %v2423_v31, %v6554_v39  ;;  %v2706_v4 = vsel %vm1353_vm1, %v2703_v59, %v2705_v0  ;;  %v2586_v15 = vrot.slane %v2532_v24, 1  ;;  %v7247_v39 = vrot.slane %v6473_v8, 2 }
 0x39b   : > { %2845 = vmatprep.subr.mxu0 %v5127_v3  ;;  %v2776_v54 = vmax.f32 %v2671_v61, %v2706_v4  ;;  %v2704_v49 = vsel %vm1353_vm1, %v2701_v47, %v2703_v59  ;;  %v2691_v44 = vrot.slane %v2532_v24, 2  ;;  %v2444_v20 = vmax.f32 %v6379_v50, %v6600_v7 }
 0x39c   : > { %2846 = vmatpush1.msra.mxu0 %v2779_v62  ;;  %v6614_v28 = vpop.permute.xlu0 %2494  ;;  %v2387_v1 = vpop.permute.xlu1 %2386  ;;  %v2775_v60 = vmax.f32 %v2670_v18, %v2704_v49  ;;  %v2585_v2 = vrot.slane %v2531_v11, 1  ;;  %v2702_v40 = vsel %vm1353_vm1, %v7247_v39, %v2701_v47  ;;  %v2589_v26 = vsel %vm1161_vm0, %v2586_v15, %v2588_v35 }
 0x39d   : > { %2847 = vmatprep.subr.mxu0 %v5127_v3  ;;  %v2774_v36 = vmax.f32 %v2669_v21, %v2702_v40  ;;  %v2665_v58 = vmax.f32 %v2532_v24, %v2589_v26  ;;  %v2690_v16 = vrot.slane %v2531_v11, 2  ;;  %v2694_v35 = vsel %vm1353_vm1, %v2691_v44, %v2693_v12 }
 0x39e   : > { %2848 = vmatpush1.msra.mxu0 %v2778_v46  ;;  %v2587_v56 = vsel %vm1161_vm0, %v2585_v2, %v2586_v15  ;;  %v2445_v41 = vmax.f32 %v6386_v22, %v2387_v1  ;;  %v2443_v50 = vmax.f32 %v6372_v34, %v6585_v29 }
 0x39f   : > { %2849 = vmatprep.subr.mxu0 %v5127_v3  ;;  %v2664_v14 = vmax.f32 %v2531_v11, %v2587_v56 }
 0x3a0   : > { %2850 = vmatpush1.msra.mxu0 %v2777_v63  ;;  %v2497_v27 = vpop.permute.xlu0 %2496  ;;  %v2389_v42 = vpop.permute.xlu1 %2388  ;;  %v2553_v22 = vmax.f32 %v2445_v41, %v6614_v28 }
 0x3a1   : > { %2851 = vmatprep.subr.mxu0 %v5127_v3  ;;  %v2446_v32 = vmax.f32 %v6395_v45, %v2389_v42 }
 0x3a2   : > { %2852 = vmatpush1.msra.mxu0 %v2776_v54  ;;  %v2733_v26 = vrot.slane %v2553_v22, 2 }
 0x3a3   : > { %2853 = vmatprep.subr.mxu0 %v5127_v3 }
 0x3a4   : > { %2854 = vmatpush1.msra.mxu0 %v2775_v60  ;;  %v2391_v9 = vpop.permute.xlu0 %2390 }
 0x3a5   : > { %2855 = vmatprep.subr.mxu0 %v5127_v3  ;;  %v2447_v51 = vmax.f32 %v6404_v17, %v2391_v9  ;;  %v2554_v17 = vmax.f32 %v2446_v32, %v2497_v27 }
 0x3a6   : > { %2856 = vmatpush1.msra.mxu0 %v2774_v36 }
 0x3a7   : > { %2857 = vmatprep.subr.mxu0 %v5127_v3  ;;  %v2630_v59 = vrot.slane %v2554_v17, 1  ;;  %v2735_v49 = vrot.slane %v2554_v17, 2 }
 0x3a8   : > { %2858 = vmatpush1.msra.mxu0 %v6500_v30  ;;  %v2499_v8 = vpop.permute.xlu0 %2498  ;;  %v2393_v38 = vpop.permute.xlu1 %2392  ;;  %v2770_v30 = vmax.f32 %v2665_v58, %v2694_v35 }
 0x3a9   : > { %2859 = vmatprep.subr.mxu0 %v5127_v3  ;;  %v2448_v62 = vmax.f32 %v6411_v19, %v2393_v38  ;;  %v2555_v33 = vmax.f32 %v2447_v51, %v2499_v8  ;;  %v2736_v51 = vsel %vm1353_vm1, %v2733_v26, %v2735_v49 }
 0x3aa   : > { %2860 = vmatpush1.msra.mxu0 %v6488_v48  ;;  %v2692_v48 = vsel %vm1353_vm1, %v2690_v16, %v2691_v44 }
 0x3ab   : > { %2861 = vmatprep.subr.mxu0 %v5127_v3  ;;  %v2769_v45 = vmax.f32 %v2664_v14, %v2692_v48  ;;  %v2632_v46 = vrot.slane %v2555_v33, 1  ;;  %v2737_v4 = vrot.slane %v2555_v33, 2 }
 0x3ac   : > { %2862 = vmatpush1.msra.mxu0 %v6583_v55  ;;  %v2501_v0 = vpop.permute.xlu1 %2500  ;;  %v2395_v6 = vpop.permute.xlu0 %2394 }
 0x3ad   : > { %v2556_v10 = vmax.f32 %v2448_v62, %v2501_v0  ;;  %2863 = vmatprep.subr.mxu0 %v5127_v3  ;;  %v2449_v19 = vmax.f32 %v6420_v53, %v2395_v6  ;;  %v2628_v53 = vrot.slane %v2553_v22, 1  ;;  %v2633_v28 = vsel %vm1161_vm0, %v2630_v59, %v2632_v46 }
 0x3ae   : > { %2864 = vmatpush1.msra.mxu0 %v2770_v30  ;;  %v2687_v40 = vmax.f32 %v2554_v17, %v2633_v28  ;;  %v2738_v34 = vsel %vm1353_vm1, %v2735_v49, %v2737_v4  ;;  %v584_v49 = vld [vmem:[%s7237_s5 + $0x8] sm:$0xff] }
 0x3af   : > { %v2634_v12 = vrot.slane %v2556_v10, 1  ;;  %2865 = vmatprep.subr.mxu0 %v5127_v3  ;;  %v2739_v18 = vrot.slane %v2556_v10, 2  ;;  %v2631_v15 = vsel %vm1161_vm0, %v2628_v53, %v2630_v59 }
 0x3b0   : > { %2866 = vmatpush1.msra.mxu0 %v2769_v45  ;;  %v2381_v55 = vpop.permute.xlu1 %2380  ;;  %v2503_v57 = vpop.permute.xlu0 %2502  ;;  %v2686_v29 = vmax.f32 %v2553_v22, %v2631_v15  ;;  %v2792_v32 = vmax.f32 %v2687_v40, %v2738_v34  ;;  %v585_v15 = vld [vmem:[%s7237_s5 + $0x10] sm:$0xff]  ;;  %v566_v40 = vld [vmem:[%s7236_s4 + $0x48] sm:$0xff]  ;;  %v572_v34 = vld [vmem:[%s7236_s4 + $0x78] sm:$0xff] }
 0x3b1   : > { %v2557_v61 = vmax.f32 %v2449_v19, %v2503_v57  ;;  %2879 = vmatprep.subr.mxu0 %v5127_v3  ;;  %v2635_v31 = vsel %vm1161_vm0, %v2632_v46, %v2634_v12  ;;  %v2740_v36 = vsel %vm1353_vm1, %v2737_v4, %v2739_v18  ;;  %v2442_v56 = vmax.f32 %v6429_v5, %v2381_v55 }
 0x3b2   : > { %v2688_v54 = vmax.f32 %v2555_v33, %v2635_v31 }
 0x3b3   : > { %v2636_v24 = vrot.slane %v2557_v61, 1  ;;  %v2741_v23 = vrot.slane %v2557_v61, 2 }
 0x3b4   : > { %v2379_v1 = vpop.permute.xlu1 %2378  ;;  %v2493_v63 = vpop.permute.xlu0 %2492  ;;  %v2793_v44 = vmax.f32 %v2688_v54, %v2740_v36  ;;  %v557_v54 = vld [vmem:[%s7236_s4] sm:$0xff]  ;;  %v567_v36 = vld [vmem:[%s7236_s4 + $0x50] sm:$0xff] }
 0x3b5   : > { %v2637_v47 = vsel %vm1161_vm0, %v2634_v12, %v2636_v24  ;;  %v2552_v11 = vmax.f32 %v2444_v20, %v2493_v63  ;;  %v2742_v7 = vsel %vm1353_vm1, %v2739_v18, %v2741_v23  ;;  %v2441_v6 = vmax.f32 %v6438_v52, %v2379_v1 }
 0x3b6   : > { %v2689_v27 = vmax.f32 %v2556_v10, %v2637_v47 }
 0x3b7   : > { %v2626_v21 = vrot.slane %v2552_v11, 1  ;;  %v2731_v58 = vrot.slane %v2552_v11, 2 }
 0x3b8   : > { %v2377_v60 = vpop.permute.xlu1 %2376  ;;  %v2491_v2 = vpop.permute.xlu0 %2490  ;;  %v2794_v39 = vmax.f32 %v2689_v27, %v2742_v7  ;;  %v587_v7 = vld [vmem:[%s7237_s5 + $0x20] sm:$0x1] }
 0x3b9   : > { %v2629_v42 = vsel %vm1161_vm0, %v2626_v21, %v2628_v53  ;;  %v2551_v9 = vmax.f32 %v2443_v50, %v2491_v2  ;;  %v2440_v8 = vmax.f32 %v6448_v43, %v2377_v60  ;;  %v2791_v43 = vmax.f32 %v2686_v29, %v2736_v51  ;;  %v560_v50 = vld [vmem:[%s7236_s4 + $0x18] sm:$0xff]  ;;  %v561_v60 = vld [vmem:[%s7236_s4 + $0x20] sm:$0xff]  ;;  %v571_v29 = vld [vmem:[%s7236_s4 + $0x70] sm:$0xff] }
 0x3ba   : > { %2880 = vmatpush2.msra.mxu0 %v2794_v39  ;;  %v2685_v16 = vmax.f32 %v2552_v11, %v2629_v42  ;;  %v2734_v48 = vsel %vm1353_vm1, %v2731_v58, %v2733_v26  ;;  %v564_v2 = vld [vmem:[%s7236_s4 + $0x38] sm:$0xff]  ;;  %v563_v39 = vld [vmem:[%s7236_s4 + $0x30] sm:$0xff]  ;;  %v565_v42 = vld [vmem:[%s7236_s4 + $0x40] sm:$0xff] }
 0x3bb   : > { %v2624_v38 = vrot.slane %v2551_v9, 1  ;;  %2881 = vmatprep.subr.mxu0 %v5127_v3  ;;  %v2729_v30 = vrot.slane %v2551_v9, 2  ;;  %v570_v26 = vld [vmem:[%s7236_s4 + $0x68] sm:$0xff] }
 0x3bc   : > { %v2485_v14 = vpop.permute.xlu1 %2484  ;;  %2882 = vmatpush2.msra.mxu0 %v2793_v44  ;;  %v2489_v35 = vpop.permute.xlu0 %2488  ;;  %v2790_v45 = vmax.f32 %v2685_v16, %v2734_v48  ;;  %v569_v44 = vld [vmem:[%s7236_s4 + $0x60] sm:$0xff]  ;;  %v578_v16 = vld [vmem:[%s7236_s4 + $0xa8] sm:$0xff] }
 0x3bd   : > { %v2627_v62 = vsel %vm1161_vm0, %v2624_v38, %v2626_v21  ;;  %v2548_v41 = vmax.f32 %v2440_v8, %v2485_v14  ;;  %v2550_v0 = vmax.f32 %v2442_v56, %v2489_v35  ;;  %2883 = vmatprep.subr.mxu0 %v5127_v3  ;;  %v2732_v12 = vsel %vm1353_vm1, %v2729_v30, %v2731_v58  ;;  %v562_v21 = vld [vmem:[%s7236_s4 + $0x28] sm:$0xff]  ;;  %v573_v58 = vld [vmem:[%s7236_s4 + $0x80] sm:$0xff]  ;;  %v576_v8 = vld [vmem:[%s7236_s4 + $0x98] sm:$0xff] }
 0x3be   : > { %v2684_v5 = vmax.f32 %v2551_v9, %v2627_v62  ;;  %2884 = vmatpush2.msra.mxu0 %v2792_v32  ;;  %v568_v9 = vld [vmem:[%s7236_s4 + $0x58] sm:$0xff]  ;;  %v574_v56 = vld [vmem:[%s7236_s4 + $0x88] sm:$0xff]  ;;  %v577_v14 = vld [vmem:[%s7236_s4 + $0xa0] sm:$0xff] }
 0x3bf   : > { %v2622_v33 = vrot.slane %v2550_v0, 1  ;;  %v2727_v10 = vrot.slane %v2550_v0, 2  ;;  %2885 = vmatprep.subr.mxu0 %v5127_v3  ;;  %v2618_v19 = vrot.slane %v2548_v41, 1  ;;  %v2723_v63 = vrot.slane %v2548_v41, 2  ;;  %v580_v35 = vld [vmem:[%s7236_s4 + $0xb8] sm:$0xff]  ;;  %v579_v32 = vld [vmem:[%s7236_s4 + $0xb0] sm:$0xff] }
 0x3c0   : > { %2886 = vmatpush2.msra.mxu0 %v2791_v43  ;;  %v2487_v17 = vpop.permute.xlu0 %2486  ;;  %v2789_v57 = vmax.f32 %v2684_v5, %v2732_v12  ;;  %v582_v51 = vld [vmem:[%s7236_s4 + $0xc8] sm:$0x3f]  ;;  %v581_v62 = vld [vmem:[%s7236_s4 + $0xc0] sm:$0x3f] }
 0x3c1   : > { %v2625_v22 = vsel %vm1161_vm0, %v2622_v33, %v2624_v38  ;;  %v2549_v55 = vmax.f32 %v2441_v6, %v2487_v17  ;;  %2887 = vmatprep.subr.mxu0 %v5127_v3  ;;  %v2730_v52 = vsel %vm1353_vm1, %v2727_v10, %v2729_v30  ;;  %v2619_v31 = vsel %vm1161_vm0, %v2616_v25, %v2618_v19  ;;  %v575_v38 = vld [vmem:[%s7236_s4 + $0x90] sm:$0xff]  ;;  %v583_v30 = vld [vmem:[%s7237_s5] sm:$0xff] }
 0x3c2   : > { %v2683_v46 = vmax.f32 %v2550_v0, %v2625_v22  ;;  %2888 = vmatpush2.msra.mxu0 %v2790_v45  ;;  %v2680_v47 = vmax.f32 %v6517_v13, %v2619_v31  ;;  %v2724_v4 = vsel %vm1353_vm1, %v2721_v37, %v2723_v63  ;;  %v586_v13 = vld [vmem:[%s7237_s5 + $0x18] sm:$0xff]  ;;  %v559_v37 = vld [vmem:[%s7236_s4 + $0x10] sm:$0xff] }
 0x3c3   : > { %v2620_v61 = vrot.slane %v2549_v55, 1  ;;  %v2725_v20 = vrot.slane %v2549_v55, 2  ;;  %2889 = vmatprep.subr.mxu0 %v5127_v3 }
 0x3c4   : > { %v2788_v59 = vmax.f32 %v2683_v46, %v2730_v52  ;;  %2890 = vmatpush2.msra.mxu0 %v2789_v57  ;;  %v2785_v27 = vmax.f32 %v2680_v47, %v2724_v4 }
 0x3c5   : > { %v2621_v24 = vsel %vm1161_vm0, %v2618_v19, %v2620_v61  ;;  %v2623_v23 = vsel %vm1161_vm0, %v2620_v61, %v2622_v33  ;;  %2891 = vmatprep.subr.mxu0 %v5127_v3  ;;  %v2728_v28 = vsel %vm1353_vm1, %v2725_v20, %v2727_v10  ;;  %v2726_v11 = vsel %vm1353_vm1, %v2723_v63, %v2725_v20 }
 0x3c6   : > { %v2682_v53 = vmax.f32 %v2549_v55, %v2623_v23  ;;  %2892 = vmatpush2.msra.mxu0 %v2788_v59  ;;  %v2681_v1 = vmax.f32 %v2548_v41, %v2621_v24 }
 0x3c7   : > { %2893 = vmatprep.subr.mxu0 %v5127_v3 }
 0x3c8   : > { %v2787_v18 = vmax.f32 %v2682_v53, %v2728_v28  ;;  %v2786_v25 = vmax.f32 %v2681_v1, %v2726_v11 }
 0x3ca   : > { %2894 = vmatpush2.msra.mxu0 %v2787_v18 }
 0x3cb   : > { %2895 = vmatprep.subr.mxu0 %v5127_v3 }
 0x3cc   : > { %2896 = vmatpush2.msra.mxu0 %v2786_v25 }
 0x3cd   : > { %2897 = vmatprep.subr.mxu0 %v5127_v3 }
 0x3ce   : > { %2898 = vmatpush2.msra.mxu0 %v2785_v27 }
 0x3cf   : > { %2900 = vmatmul.mubr.f32.vlgmr.msra.gmra.mxu0 %v557_v54  ;;  %4920 = vmatprep.subr.mxu0 %v5127_v3 }
 0x3d0   : > { %4453 = vmatprep.mubr.msk.f32.mxu0 %vm2795_vm5, %v560_v50  ;;  %4921 = vmatpush3.msk.msra.mxu0 %vm3005_vm6, %v587_v7  ;;  %vm4117_vm6 = vcmask 23552  }
 0x3d1   : > { %4922 = vmatprep.subr.mxu0 %v5127_v3 }
 0x3d2   : > { %4923 = vmatpush3.msra.mxu0 %v586_v13 }
 0x3d3   : > { %2905 = vmatmul.mubr.f32.gmra.mxu0 %v559_v37  ;;  %4924 = vmatprep.subr.mxu0 %v5127_v3 }
 0x3d4   : > { %4454 = vmatprep.mubr.msk.f32.mxu0 %vm2795_vm5, %v562_v21  ;;  %4925 = vmatpush3.msra.mxu0 %v585_v15 }
 0x3d5   : > { %4926 = vmatprep.subr.mxu0 %v5127_v3 }
 0x3d6   : > { %4927 = vmatpush3.msra.mxu0 %v584_v49 }
 0x3d7   : > { %2910 = vmatmul.mubr.f32.gmra.mxu0 %v561_v60  ;;  %4928 = vmatprep.subr.mxu0 %v5127_v3 }
 0x3d8   : > { %4455 = vmatprep.mubr.msk.f32.mxu0 %vm2795_vm5, %v564_v2  ;;  %4929 = vmatpush3.msra.mxu0 %v583_v30 }
 0x3d9   : > { %5038 = vmatprep.subr.mxu0 %v5127_v3 }
 0x3db   : > { %2915 = vmatmul.mubr.f32.gmra.mxu0 %v563_v39 }
 0x3dc   : > { %4456 = vmatprep.mubr.msk.f32.mxu0 %vm2795_vm5, %v566_v40 }
 0x3df   : > { %2920 = vmatmul.mubr.f32.gmra.mxu0 %v565_v42 }
 0x3e0   : > { %4457 = vmatprep.mubr.msk.f32.mxu0 %vm2795_vm5, %v568_v9 }
 0x3e3   : > { %2925 = vmatmul.mubr.f32.gmra.mxu0 %v567_v36 }
 0x3e4   : > { %4458 = vmatprep.mubr.msk.f32.mxu0 %vm2795_vm5, %v570_v26 }
 0x3e7   : > { %2930 = vmatmul.mubr.f32.gmra.mxu0 %v569_v44 }
 0x3e8   : > { %4459 = vmatprep.mubr.msk.f32.mxu0 %vm2795_vm5, %v572_v34 }
 0x3eb   : > { %2935 = vmatmul.mubr.f32.gmra.mxu0 %v571_v29 }
 0x3ec   : > { %4460 = vmatprep.mubr.msk.f32.mxu0 %vm2795_vm5, %v574_v56  ;;  %v588_v56 = vld [vmem:[%s7238_s6] sm:$0xff] }
 0x3ed   : > { %4995 = vmatprep.mubr.msk.f32.mxu1 %vm3371_vm8, %v588_v56 }
 0x3ef   : > { %2940 = vmatmul.mubr.f32.gmra.mxu0 %v573_v58 }
 0x3f0   : > { %4461 = vmatprep.mubr.msk.f32.mxu0 %vm2795_vm5, %v576_v8 }
 0x3f3   : > { %2945 = vmatmul.mubr.f32.gmra.mxu0 %v575_v38 }
 0x3f4   : > { %4462 = vmatprep.mubr.msk.f32.mxu0 %vm2795_vm5, %v578_v16 }
 0x3f7   : > { %2950 = vmatmul.mubr.f32.gmra.mxu0 %v577_v14 }
 0x3f8   : > { %4463 = vmatprep.mubr.msk.f32.mxu0 %vm2795_vm5, %v580_v35 }
 0x3fb   : > { %2955 = vmatmul.mubr.f32.gmra.mxu0 %v579_v32 }
 0x3fc   : > { %4464 = vmatprep.mubr.msk.f32.mxu0 %vm2795_vm5, %v582_v51  ;;  %vm4166_vm5 = vcmask 1042432  }
 0x3ff   : > { %2960 = vmatmul.mubr.f32.gmra.mxu0 %v581_v62 }
 0x400   : > { %4930 = vmatprep.mubr.msk.f32.mxu0 %vm5129_vm2, %v5127_v3 }
 0x48f   : > { %v2901_v41 = vpop.f32.mrf.mxu0 }
 0x490   : > { %4931 = vmatmul.mubr.msk.f32.vlgmr.msra.gmra.mxu0 %vm2965_vm7, %v2901_v41 }
 0x491   : > { %v2903_v0 = vpop.f32.mrf.mxu0  ;;  %4933 = vmatprep.mubr.msk.f32.mxu0 %vm5129_vm2, %v5127_v3 }
 0x493   : > { %v2906_v5 = vpop.f32.mrf.mxu0 }
 0x494   : > { %4934 = vmatmul.mubr.msk.f32.gmra.mxu0 %vm2965_vm7, %v2906_v5 }
 0x495   : > { %v2908_v43 = vpop.f32.mrf.mxu0  ;;  %4936 = vmatprep.mubr.msk.f32.mxu0 %vm5129_vm2, %v5127_v3 }
 0x497   : > { %v2911_v6 = vpop.f32.mrf.mxu0 }
 0x498   : > { %4937 = vmatmul.mubr.msk.f32.gmra.mxu0 %vm2965_vm7, %v2911_v6 }
 0x499   : > { %v2913_v48 = vpop.f32.mrf.mxu0  ;;  %4939 = vmatprep.mubr.msk.f32.mxu0 %vm5129_vm2, %v5127_v3 }
 0x49b   : > { %v2916_v33 = vpop.f32.mrf.mxu0 }
 0x49c   : > { %4940 = vmatmul.mubr.msk.f32.gmra.mxu0 %vm2965_vm7, %v2916_v33 }
 0x49d   : > { %v2918_v10 = vpop.f32.mrf.mxu0  ;;  %4942 = vmatprep.mubr.msk.f32.mxu0 %vm5129_vm2, %v5127_v3 }
 0x49f   : > { %v2921_v45 = vpop.f32.mrf.mxu0 }
 0x4a0   : > { %4943 = vmatmul.mubr.msk.f32.gmra.mxu0 %vm2965_vm7, %v2921_v45 }
 0x4a1   : > { %v2923_v17 = vpop.f32.mrf.mxu0  ;;  %4945 = vmatprep.mubr.msk.f32.mxu0 %vm5129_vm2, %v5127_v3 }
 0x4a3   : > { %v2926_v12 = vpop.f32.mrf.mxu0 }
 0x4a4   : > { %4946 = vmatmul.mubr.msk.f32.gmra.mxu0 %vm2965_vm7, %v2926_v12 }
 0x4a5   : > { %v2928_v19 = vpop.f32.mrf.mxu0  ;;  %4948 = vmatprep.mubr.msk.f32.mxu0 %vm5129_vm2, %v5127_v3 }
 0x4a7   : > { %v2931_v22 = vpop.f32.mrf.mxu0 }
 0x4a8   : > { %4949 = vmatmul.mubr.msk.f32.gmra.mxu0 %vm2965_vm7, %v2931_v22 }
 0x4a9   : > { %v2933_v55 = vpop.f32.mrf.mxu0  ;;  %4951 = vmatprep.mubr.msk.f32.mxu0 %vm5129_vm2, %v5127_v3 }
 0x4ab   : > { %v2936_v57 = vpop.f32.mrf.mxu0 }
 0x4ac   : > { %4952 = vmatmul.mubr.msk.f32.gmra.mxu0 %vm2965_vm7, %v2936_v57 }
 0x4ad   : > { %v2938_v46 = vpop.f32.mrf.mxu0  ;;  %4954 = vmatprep.mubr.msk.f32.mxu0 %vm5129_vm2, %v5127_v3 }
 0x4af   : > { %v2941_v52 = vpop.f32.mrf.mxu0 }
 0x4b0   : > { %4955 = vmatmul.mubr.msk.f32.gmra.mxu0 %vm2965_vm7, %v2941_v52 }
 0x4b1   : > { %v2943_v61 = vpop.f32.mrf.mxu0  ;;  %4957 = vmatprep.mubr.msk.f32.mxu0 %vm5129_vm2, %v5127_v3 }
 0x4b3   : > { %v2946_v20 = vpop.f32.mrf.mxu0 }
 0x4b4   : > { %4958 = vmatmul.mubr.msk.f32.gmra.mxu0 %vm2965_vm7, %v2946_v20 }
 0x4b5   : > { %v2948_v59 = vpop.f32.mrf.mxu0  ;;  %4960 = vmatprep.mubr.msk.f32.mxu0 %vm5129_vm2, %v5127_v3 }
 0x4b7   : > { %v2951_v31 = vpop.f32.mrf.mxu0 }
 0x4b8   : > { %4961 = vmatmul.mubr.msk.f32.gmra.mxu0 %vm2965_vm7, %v2951_v31 }
 0x4b9   : > { %v2953_v24 = vpop.f32.mrf.mxu0  ;;  %4963 = vmatprep.mubr.msk.f32.mxu0 %vm5129_vm2, %v5127_v3 }
 0x4bb   : > { %v2956_v23 = vpop.f32.mrf.mxu0 }
 0x4bc   : > { %4964 = vmatmul.mubr.msk.f32.gmra.mxu0 %vm2965_vm7, %v2956_v23 }
 0x4bd   : > { %v2958_v53 = vpop.f32.mrf.mxu0  ;;  %4966 = vmatprep.mubr.msk.f32.mxu0 %vm5129_vm2, %v5127_v3 }
 0x4bf   : > { %v2961_v1 = vpop.f32.mrf.mxu0 }
 0x4c0   : > { %4967 = vmatmul.mubr.msk.f32.gmra.mxu0 %vm2965_vm7, %v2961_v1  ;;  %vm4315_vm7 = vcmask 72704  }
 0x4c1   : > { %v2963_v63 = vpop.f32.mrf.mxu0  ;;  %5040 = vmatprep.mubr.msk.f32.mxu0 %vm5129_vm2, %v5127_v3 }
 0x550   : > { %v6851_v28 = vpop.f32.mrf.mxu0 }
 0x552   : > { %v4932_v18 = vpop.f32.mrf.mxu0 }
 0x554   : > { %v6853_v47 = vpop.f32.mrf.mxu0 }
 0x556   : > { %v4935_v11 = vpop.f32.mrf.mxu0 }
 0x558   : > { %v6855_v25 = vpop.f32.mrf.mxu0 }
 0x55a   : > { %v4938_v4 = vpop.f32.mrf.mxu0 }
 0x55c   : > { %v6857_v27 = vpop.f32.mrf.mxu0 }
 0x55e   : > { %v4941_v54 = vpop.f32.mrf.mxu0 }
 0x560   : > { %v6859_v50 = vpop.f32.mrf.mxu0 }
 0x562   : > { %v4944_v7 = vpop.f32.mrf.mxu0 }
 0x564   : > { %v6861_v13 = vpop.f32.mrf.mxu0 }
 0x565   : > { %3162 = vrot.lane.b32.xlu1 %v6861_v13, %s5126_s14 }
 0x566   : > { %v4947_v37 = vpop.f32.mrf.mxu0 }
 0x568   : > { %v6865_v21 = vpop.f32.mrf.mxu0 }
 0x569   : > { %3164 = vrot.lane.b32.xlu1 %v6865_v21, %s5126_s14 }
 0x56a   : > { %v4950_v15 = vpop.f32.mrf.mxu0 }
 0x56c   : > { %v6869_v49 = vpop.f32.mrf.mxu0 }
 0x56d   : > { %3218 = vrot.lane.b32.xlu0 %v6869_v49, %s5128_s15  ;;  %3166 = vrot.lane.b32.xlu1 %v6869_v49, %s5126_s14 }
 0x56e   : > { %v4953_v60 = vpop.f32.mrf.mxu0 }
 0x570   : > { %v6875_v2 = vpop.f32.mrf.mxu0 }
 0x571   : > { %3220 = vrot.lane.b32.xlu0 %v6875_v2, %s5128_s15  ;;  %3168 = vrot.lane.b32.xlu1 %v6875_v2, %s5126_s14 }
 0x572   : > { %v4956_v39 = vpop.f32.mrf.mxu0 }
 0x574   : > { %v3120_v40 = vpop.f32.mrf.mxu0 }
 0x575   : > { %3222 = vrot.lane.b32.xlu0 %v3120_v40, %s5128_s15  ;;  %3170 = vrot.lane.b32.xlu1 %v3120_v40, %s5126_s14 }
 0x576   : > { %v4959_v42 = vpop.f32.mrf.mxu0 }
 0x578   : > { %v3125_v9 = vpop.f32.mrf.mxu0 }
 0x579   : > { %3224 = vrot.lane.b32.xlu0 %v3125_v9, %s5128_s15  ;;  %3172 = vrot.lane.b32.xlu1 %v3125_v9, %s5126_s14 }
 0x57a   : > { %v4962_v36 = vpop.f32.mrf.mxu0 }
 0x57c   : > { %v3130_v26 = vpop.f32.mrf.mxu0 }
 0x57d   : > { %3226 = vrot.lane.b32.xlu0 %v3130_v26, %s5128_s15  ;;  %3174 = vrot.lane.b32.xlu1 %v3130_v26, %s5126_s14 }
 0x57e   : > { %v4965_v44 = vpop.f32.mrf.mxu0 }
 0x580   : > { %v3135_v34 = vpop.f32.mrf.mxu0 }
 0x581   : > { %3160 = vrot.lane.b32.xlu1 %v6859_v50, %s5126_s14  ;;  %3176 = vrot.lane.b32.xlu0 %v3135_v34, %s5126_s14 }
 0x582   : > { %v4968_v29 = vpop.f32.mrf.mxu0 }
 0x585   : > { %3158 = vrot.lane.b32.xlu1 %v6857_v27, %s5126_s14  ;;  %3228 = vrot.lane.b32.xlu0 %v3135_v34, %s5128_s15 }
 0x589   : > { %3156 = vrot.lane.b32.xlu1 %v6855_v25, %s5126_s14  ;;  %3216 = vrot.lane.b32.xlu0 %v6865_v21, %s5128_s15 }
 0x58d   : > { %3154 = vrot.lane.b32.xlu1 %v6853_v47, %s5126_s14  ;;  %3214 = vrot.lane.b32.xlu0 %v6861_v13, %s5128_s15 }
 0x591   : > { %3152 = vrot.lane.b32.xlu1 %v6851_v28, %s5126_s14  ;;  %3212 = vrot.lane.b32.xlu0 %v6859_v50, %s5128_s15 }
 0x595   : > { %3204 = vrot.lane.b32.xlu1 %v6851_v28, %s5128_s15  ;;  %3210 = vrot.lane.b32.xlu0 %v6857_v27, %s5128_s15 }
 0x599   : > { %3208 = vrot.lane.b32.xlu0 %v6855_v25, %s5128_s15 }
 0x59d   : > { %3206 = vrot.lane.b32.xlu0 %v6853_v47, %s5128_s15 }
 0x5d7   : > { %v3163_v58 = vpop.permute.xlu1 %3162 }
 0x5d8   : > { %v3196_v37 = vmax.f32 %v6861_v13, %v3163_v58 }
 0x5db   : > { %v3165_v8 = vpop.permute.xlu1 %3164 }
 0x5dc   : > { %v3197_v59 = vmax.f32 %v6865_v21, %v3165_v8 }
 0x5df   : > { %v3219_v38 = vpop.permute.xlu0 %3218  ;;  %v3167_v16 = vpop.permute.xlu1 %3166 }
 0x5e0   : > { %v3198_v12 = vmax.f32 %v6869_v49, %v3167_v16 }
 0x5e2   : > { %v6924_v31 = vmax.f32 %v3198_v12, %v3219_v38 }
 0x5e3   : > { %v3221_v14 = vpop.permute.xlu0 %3220  ;;  %v3169_v35 = vpop.permute.xlu1 %3168 }
 0x5e4   : > { %v3199_v45 = vmax.f32 %v6875_v2, %v3169_v35  ;;  %v3282_v60 = vrot.slane %v6924_v31, 1 }
 0x5e6   : > { %v6921_v61 = vmax.f32 %v3199_v45, %v3221_v14 }
 0x5e7   : > { %v3223_v32 = vpop.permute.xlu0 %3222  ;;  %v3171_v51 = vpop.permute.xlu1 %3170 }
 0x5e8   : > { %v3200_v6 = vmax.f32 %v3120_v40, %v3171_v51  ;;  %v3284_v21 = vrot.slane %v6921_v61, 1 }
 0x5ea   : > { %v3252_v22 = vmax.f32 %v3200_v6, %v3223_v32  ;;  %v3285_v8 = vsel %vm1161_vm0, %v3282_v60, %v3284_v21  ;;  %v3335_v32 = vrot.slane %v6921_v61, 2 }
 0x5eb   : > { %v3225_v62 = vpop.permute.xlu0 %3224  ;;  %v3173_v30 = vpop.permute.xlu1 %3172 }
 0x5ec   : > { %v3201_v43 = vmax.f32 %v3125_v9, %v3173_v30  ;;  %v3286_v53 = vrot.slane %v3252_v22, 1  ;;  %v3337_v56 = vrot.slane %v3252_v22, 2 }
 0x5ee   : > { %v3253_v17 = vmax.f32 %v3201_v43, %v3225_v62  ;;  %v3287_v13 = vsel %vm1161_vm0, %v3284_v21, %v3286_v53  ;;  %v3333_v43 = vrot.slane %v6924_v31, 2 }
 0x5ef   : > { %v3227_v41 = vpop.permute.xlu0 %3226  ;;  %v3175_v0 = vpop.permute.xlu1 %3174  ;;  %v3315_v35 = vmax.f32 %v6921_v61, %v3287_v13 }
 0x5f0   : > { %v3202_v5 = vmax.f32 %v3130_v26, %v3175_v0  ;;  %v3288_v20 = vrot.slane %v3253_v17, 1  ;;  %v3339_v42 = vrot.slane %v3253_v17, 2 }
 0x5f2   : > { %v3254_v48 = vmax.f32 %v3202_v5, %v3227_v41  ;;  %v3289_v49 = vsel %vm1161_vm0, %v3286_v53, %v3288_v20  ;;  %v3340_v30 = vsel %vm1353_vm1, %v3337_v56, %v3339_v42 }
 0x5f3   : > { %v3161_v33 = vpop.permute.xlu1 %3160  ;;  %v3177_v10 = vpop.permute.xlu0 %3176  ;;  %v3316_v29 = vmax.f32 %v3252_v22, %v3289_v49 }
 0x5f4   : > { %v3203_v19 = vmax.f32 %v3135_v34, %v3177_v10  ;;  %v3290_v55 = vrot.slane %v3254_v48, 1  ;;  %v3341_v11 = vrot.slane %v3254_v48, 2  ;;  %v3195_v38 = vmax.f32 %v6859_v50, %v3161_v33 }
 0x5f5   : > { %v3367_v5 = vmax.f32 %v3316_v29, %v3340_v30  ;;  %v3314_v50 = vmax.f32 %v6924_v31, %v3285_v8  ;;  %v3338_v33 = vsel %vm1353_vm1, %v3335_v32, %v3337_v56  ;;  %v591_v30 = vld [vmem:[%s7238_s6 + $0x18] sm:$0xff] }
 0x5f6   : > { %v3291_v18 = vsel %vm1161_vm0, %v3288_v20, %v3290_v55  ;;  %v3342_v58 = vsel %vm1353_vm1, %v3339_v42, %v3341_v11  ;;  %v3366_v12 = vmax.f32 %v3315_v35, %v3338_v33 }
 0x5f7   : > { %v6919_v57 = vpop.permute.xlu1 %3158  ;;  %v3229_v46 = vpop.permute.xlu0 %3228  ;;  %v3317_v40 = vmax.f32 %v3253_v17, %v3291_v18 }
 0x5f8   : > { %v3255_v52 = vmax.f32 %v3203_v19, %v3229_v46  ;;  %v3194_v10 = vmax.f32 %v6857_v27, %v6919_v57 }
 0x5f9   : > { %v3368_v14 = vmax.f32 %v3317_v40, %v3342_v58 }
 0x5fa   : > { %v3292_v24 = vrot.slane %v3255_v52, 1  ;;  %v3343_v23 = vrot.slane %v3255_v52, 2 }
 0x5fb   : > { %v6926_v1 = vpop.permute.xlu1 %3156  ;;  %v3217_v63 = vpop.permute.xlu0 %3216 }
 0x5fc   : > { %v3319_v4 = vmax.f32 %v3255_v52, %v3292_v24  ;;  %v6929_v54 = vmax.f32 %v3197_v59, %v3217_v63  ;;  %v3293_v7 = vsel %vm1161_vm0, %v3290_v55, %v3292_v24  ;;  %v3344_v39 = vsel %vm1353_vm1, %v3341_v11, %v3343_v23 }
 0x5fd   : > { %v3318_v15 = vmax.f32 %v3254_v48, %v3293_v7  ;;  %v3336_v55 = vsel %vm1353_vm1, %v3333_v43, %v3335_v32  ;;  %v3193_v27 = vmax.f32 %v6855_v25, %v6926_v1 }
 0x5fe   : > { %v3370_v2 = vmax.f32 %v3319_v4, %v3343_v23  ;;  %v3280_v9 = vrot.slane %v6929_v54, 1  ;;  %v3331_v6 = vrot.slane %v6929_v54, 2  ;;  %v3365_v20 = vmax.f32 %v3314_v50, %v3336_v55  ;;  %v594_v50 = vld [vmem:[%s7239_s7] sm:$0xff] }
 0x5ff   : > { %v6938_v36 = vpop.permute.xlu1 %3154  ;;  %v3215_v26 = vpop.permute.xlu0 %3214  ;;  %v3369_v44 = vmax.f32 %v3318_v15, %v3344_v39 }
 0x600   : > { %v6941_v34 = vmax.f32 %v3196_v37, %v3215_v26  ;;  %4969 = vmatprep.subr.msk.mxu1 %vm3390_vm9, %v3370_v2  ;;  %v3283_v51 = vsel %vm1161_vm0, %v3280_v9, %v3282_v60  ;;  %v3334_v59 = vsel %vm1353_vm1, %v3331_v6, %v3333_v43  ;;  %v3192_v1 = vmax.f32 %v6853_v47, %v6938_v36 }
 0x601   : > { %4970 = vmatpush3.msk.msra.mxu1 %vm3390_vm9, %v3370_v2  ;;  %v3313_v45 = vmax.f32 %v6929_v54, %v3283_v51  ;;  %v589_v51 = vld [vmem:[%s7238_s6 + $0x8] sm:$0xff] }
 0x602   : > { %v3278_v16 = vrot.slane %v6941_v34, 1  ;;  %4971 = vmatprep.subr.mxu1 %v3369_v44  ;;  %v3329_v19 = vrot.slane %v6941_v34, 2 }
 0x603   : > { %4972 = vmatpush3.msra.mxu1 %v3369_v44  ;;  %v3213_v62 = vpop.permute.xlu0 %3212  ;;  %v3153_v41 = vpop.permute.xlu1 %3152  ;;  %v3364_v63 = vmax.f32 %v3313_v45, %v3334_v59 }
 0x604   : > { %v3247_v0 = vmax.f32 %v3195_v38, %v3213_v62  ;;  %4973 = vmatprep.subr.mxu1 %v3368_v14  ;;  %v3281_v48 = vsel %vm1161_vm0, %v3278_v16, %v3280_v9  ;;  %v3191_v18 = vmax.f32 %v6851_v28, %v3153_v41  ;;  %v3332_v4 = vsel %vm1353_vm1, %v3329_v19, %v3331_v6  ;;  %v590_v62 = vld [vmem:[%s7238_s6 + $0x10] sm:$0xff]  ;;  %v592_v41 = vld [vmem:[%s7238_s6 + $0x20] sm:$0xff] }
 0x605   : > { %4974 = vmatpush3.msra.mxu1 %v3368_v14  ;;  %v3312_v46 = vmax.f32 %v6941_v34, %v3281_v48 }
 0x606   : > { %v3276_v17 = vrot.slane %v3247_v0, 1  ;;  %4975 = vmatprep.subr.mxu1 %v3367_v5  ;;  %v3327_v57 = vrot.slane %v3247_v0, 2 }
 0x607   : > { %4976 = vmatpush3.msra.mxu1 %v3367_v5  ;;  %v3211_v22 = vpop.permute.xlu0 %3210  ;;  %v3205_v24 = vpop.permute.xlu1 %3204  ;;  %v3363_v25 = vmax.f32 %v3312_v46, %v3332_v4  ;;  %v595_v5 = vld [vmem:[%s7239_s7 + $0x8] sm:$0x7f] }
 0x608   : > { %v3279_v52 = vsel %vm1161_vm0, %v3276_v17, %v3278_v16  ;;  %v3246_v61 = vmax.f32 %v3194_v10, %v3211_v22  ;;  %4977 = vmatprep.subr.mxu1 %v3366_v12  ;;  %v3243_v37 = vmax.f32 %v3191_v18, %v3205_v24  ;;  %v3330_v15 = vsel %vm1353_vm1, %v3327_v57, %v3329_v19 }
 0x609   : > { %4978 = vmatpush3.msra.mxu1 %v3366_v12  ;;  %v3311_v31 = vmax.f32 %v3247_v0, %v3279_v52  ;;  %v593_v0 = vld [vmem:[%s7238_s6 + $0x28] sm:$0xff] }
 0x60a   : > { %v3274_v23 = vrot.slane %v3246_v61, 1  ;;  %v3325_v53 = vrot.slane %v3246_v61, 2  ;;  %4979 = vmatprep.subr.mxu1 %v3365_v20  ;;  %v3269_v47 = vrot.slane %v3243_v37, 1  ;;  %v3320_v38 = vrot.slane %v3243_v37, 2 }
 0x60b   : > { %4980 = vmatpush3.msra.mxu1 %v3365_v20  ;;  %v3209_v11 = vpop.permute.xlu0 %3208  ;;  %v3362_v28 = vmax.f32 %v3311_v31, %v3330_v15 }
 0x60c   : > { %v3277_v54 = vsel %vm1161_vm0, %v3274_v23, %v3276_v17  ;;  %v3245_v7 = vmax.f32 %v3193_v27, %v3209_v11  ;;  %4981 = vmatprep.subr.mxu1 %v3364_v63  ;;  %v3328_v2 = vsel %vm1353_vm1, %v3325_v53, %v3327_v57  ;;  %v599_v11 = vld [vmem:[%s7241_s9] sm:$0x3f] }
 0x60d   : > { %v3310_v21 = vmax.f32 %v3246_v61, %v3277_v54  ;;  %4982 = vmatpush3.msra.mxu1 %v3364_v63  ;;  %5039 = vmatpush3.msk.msra.mxu0 %vm1353_vm1, %v599_v11 }
 0x60e   : > { %v3272_v49 = vrot.slane %v3245_v7, 1  ;;  %v3323_v60 = vrot.slane %v3245_v7, 2  ;;  %4983 = vmatprep.subr.mxu1 %v3363_v25 }
 0x60f   : > { %4984 = vmatpush3.msra.mxu1 %v3363_v25  ;;  %v3207_v39 = vpop.permute.xlu0 %3206  ;;  %v3361_v40 = vmax.f32 %v3310_v21, %v3328_v2 }
 0x610   : > { %v3275_v42 = vsel %vm1161_vm0, %v3272_v49, %v3274_v23  ;;  %v3244_v9 = vmax.f32 %v3192_v1, %v3207_v39  ;;  %4985 = vmatprep.subr.mxu1 %v3362_v28  ;;  %v3326_v13 = vsel %vm1353_vm1, %v3323_v60, %v3325_v53 }
 0x611   : > { %v3309_v26 = vmax.f32 %v3245_v7, %v3275_v42  ;;  %4986 = vmatpush3.msra.mxu1 %v3362_v28 }
 0x612   : > { %v3270_v36 = vrot.slane %v3244_v9, 1  ;;  %v3321_v44 = vrot.slane %v3244_v9, 2  ;;  %4987 = vmatprep.subr.mxu1 %v3361_v40 }
 0x613   : > { %4988 = vmatpush3.msra.mxu1 %v3361_v40  ;;  %v3360_v34 = vmax.f32 %v3309_v26, %v3326_v13 }
 0x614   : > { %v3273_v29 = vsel %vm1161_vm0, %v3270_v36, %v3272_v49  ;;  %v3271_v56 = vsel %vm1161_vm0, %v3269_v47, %v3270_v36  ;;  %v3324_v16 = vsel %vm1353_vm1, %v3321_v44, %v3323_v60  ;;  %v3322_v35 = vsel %vm1353_vm1, %v3320_v38, %v3321_v44 }
 0x615   : > { %v3308_v58 = vmax.f32 %v3244_v9, %v3273_v29  ;;  %4989 = vmatprep.subr.mxu1 %v3360_v34  ;;  %v3307_v8 = vmax.f32 %v3243_v37, %v3271_v56 }
 0x616   : > { %4990 = vmatpush3.msra.mxu1 %v3360_v34 }
 0x617   : > { %v3359_v14 = vmax.f32 %v3308_v58, %v3324_v16  ;;  %v3358_v32 = vmax.f32 %v3307_v8, %v3322_v35 }
 0x619   : > { %4991 = vmatprep.subr.mxu1 %v3359_v14 }
 0x61a   : > { %4992 = vmatpush3.msra.mxu1 %v3359_v14 }
 0x61b   : > { %4993 = vmatprep.subr.mxu1 %v3358_v32 }
 0x61c   : > { %4994 = vmatpush3.msra.mxu1 %v3358_v32 }
 0x61d   : > { %4996 = vmatmul.mubr.msk.f32.vlgmr.msra.gmra.mxu1 %vm3371_vm8, %v589_v51  ;;  %5004 = vmatprep.subr.msk.mxu1 %vm1161_vm0, %v595_v5 }
 0x61e   : > { %4998 = vmatprep.mubr.msk.f32.mxu1 %vm3371_vm8, %v590_v62  ;;  %5005 = vmatpush3.msk.msra.mxu1 %vm1161_vm0, %v595_v5 }
 0x61f   : > { %5006 = vmatprep.subr.mxu1 %v594_v50 }
 0x620   : > { %5007 = vmatpush3.msra.mxu1 %v594_v50 }
 0x621   : > { %4999 = vmatmul.mubr.msk.f32.gmra.mxu1 %vm3371_vm8, %v591_v30  ;;  %5017 = vmatprep.subr.mxu1 %v5127_v3 }
 0x622   : > { %5001 = vmatprep.mubr.msk.f32.mxu1 %vm3371_vm8, %v592_v41 }
 0x625   : > { %5002 = vmatmul.mubr.msk.f32.gmra.mxu1 %vm3371_vm8, %v593_v0  ;;  %vm4331_vm8 = vcmask 70656  }
 0x6dd   : > { %v4997_v43 = vpop.f32.mrf.mxu1 }
 0x6df   : > { %v3460_v6 = vpop.f32.mrf.mxu1 }
 0x6e0   : > { %5008 = vmatprep.mubr.msk.f32.mxu1 %vm3489_vm10, %v3460_v6 }
 0x6e1   : > { %v5000_v48 = vpop.f32.mrf.mxu1  ;;  %5009 = vmatmul.mubr.msk.f32.vlgmr.msra.gmra.mxu1 %vm3489_vm10, %v4997_v43 }
 0x6e3   : > { %v3470_v33 = vpop.f32.mrf.mxu1 }
 0x6e4   : > { %5011 = vmatprep.mubr.msk.f32.mxu1 %vm3489_vm10, %v3470_v33 }
 0x6e5   : > { %v5003_v10 = vpop.f32.mrf.mxu1  ;;  %5012 = vmatmul.mubr.msk.f32.gmra.mxu1 %vm3489_vm10, %v5000_v48 }
 0x6e7   : > { %v3480_v45 = vpop.f32.mrf.mxu1 }
 0x6e8   : > { %5014 = vmatprep.mubr.msk.f32.mxu1 %vm3489_vm10, %v3480_v45 }
 0x6e9   : > { %5015 = vmatmul.mubr.msk.f32.gmra.mxu1 %vm3489_vm10, %v5003_v10 }
 0x6ea   : > { %5029 = vmatprep.mubr.msk.f32.mxu1 %vm5129_vm2, %v5127_v3 }
 0x7a1   : > { %v5010_v17 = vpop.f32.mrf.mxu1 }
 0x7a2   : > { %v3613_v24 = vmul.f32 0.01, %v5010_v17  ;;  %vm3607_vm15 = vcmp.ge.f32.partialorder %v5010_v17, 0.0 }
 0x7a3   : > { %v3577_v12 = vpop.f32.mrf.mxu1 }
 0x7a4   : > { %v3612_v53 = vmul.f32 0.01, %v3577_v12  ;;  %v3619_v63 = vsel %vm3607_vm15, %v5010_v17, %v3613_v24  ;;  %vm3606_vm3 = vcmp.ge.f32.partialorder %v3577_v12, 0.0 }
 0x7a5   : > { %v5013_v19 = vpop.f32.mrf.mxu1 }
 0x7a6   : > { %vm3609_vm11 = vcmp.ge.f32.partialorder %v5013_v19, 0.0  ;;  %v3615_v22 = vmul.f32 0.01, %v5013_v19  ;;  %v3618_v18 = vsel %vm3606_vm3, %v3577_v12, %v3612_v53  ;;  %v597_v53 = vld [vmem:[%s7240_s8 + $0x8] sm:$0xff] }
 0x7a7   : > { %v3587_v55 = vpop.f32.mrf.mxu1 }
 0x7a8   : > { %v3614_v46 = vmul.f32 0.01, %v3587_v55  ;;  %v3621_v52 = vsel %vm3609_vm11, %v5013_v19, %v3615_v22  ;;  %vm3608_vm12 = vcmp.ge.f32.partialorder %v3587_v55, 0.0 }
 0x7a9   : > { %3660 = vrot.lane.b32.xlu0 %v3621_v52, %s5128_s15  ;;  %3636 = vrot.lane.b32.xlu1 %v3621_v52, %s5126_s14  ;;  %v5016_v61 = vpop.f32.mrf.mxu1 }
 0x7aa   : > { %vm3611_vm13 = vcmp.ge.f32.partialorder %v5016_v61, 0.0  ;;  %v3617_v20 = vmul.f32 0.01, %v5016_v61  ;;  %v3620_v57 = vsel %vm3608_vm12, %v3587_v55, %v3614_v46 }
 0x7ab   : > { %v3597_v27 = vpop.f32.mrf.mxu1 }
 0x7ac   : > { %v3623_v59 = vsel %vm3611_vm13, %v5016_v61, %v3617_v20  ;;  %v3616_v31 = vmul.f32 0.01, %v3597_v27  ;;  %vm3610_vm14 = vcmp.ge.f32.partialorder %v3597_v27, 0.0 }
 0x7ad   : > { %3634 = vrot.lane.b32.xlu1 %v3620_v57, %s5126_s14  ;;  %3640 = vrot.lane.b32.xlu0 %v3623_v59, %s5126_s14 }
 0x7ae   : > { %v3622_v23 = vsel %vm3610_vm14, %v3597_v27, %v3616_v31 }
 0x7b1   : > { %3664 = vrot.lane.b32.xlu0 %v3623_v59, %s5128_s15  ;;  %3638 = vrot.lane.b32.xlu1 %v3622_v23, %s5126_s14 }
 0x7b5   : > { %3662 = vrot.lane.b32.xlu0 %v3622_v23, %s5128_s15  ;;  %3632 = vrot.lane.b32.xlu1 %v3619_v63, %s5126_s14 }
 0x7b9   : > { %3658 = vrot.lane.b32.xlu0 %v3620_v57, %s5128_s15  ;;  %3630 = vrot.lane.b32.xlu1 %v3618_v18, %s5126_s14  ;;  %s7151_s14 = scalar_lea.vmem %s7245_s13, %s4537_s24 }
 0x7bd   : > { %3656 = vrot.lane.b32.xlu0 %v3619_v63, %s5128_s15  ;;  %3654 = vrot.lane.b32.xlu1 %v3618_v18, %s5128_s15 }
 0x81b   : > { %v3661_v4 = vpop.permute.xlu0 %3660  ;;  %v3637_v54 = vpop.permute.xlu1 %3636 }
 0x81c   : > { %v3651_v1 = vmax.f32 %v3621_v52, %v3637_v54 }
 0x81e   : > { %v3675_v60 = vmax.f32 %v3651_v1, %v3661_v4  ;;  %v600_v1 = vld [vmem:[%s7242_s10] sm:$0xff] }
 0x81f   : > { %v3635_v7 = vpop.permute.xlu1 %3634  ;;  %v3641_v25 = vpop.permute.xlu0 %3640 }
 0x820   : > { %v3653_v37 = vmax.f32 %v3623_v59, %v3641_v25  ;;  %v3689_v47 = vrot.slane %v3675_v60, 1  ;;  %v3650_v36 = vmax.f32 %v3620_v57, %v3635_v7  ;;  %v3712_v16 = vrot.slane %v3675_v60, 2 }
 0x823   : > { %v3665_v21 = vpop.permute.xlu0 %3664  ;;  %v3639_v15 = vpop.permute.xlu1 %3638 }
 0x824   : > { %v3677_v49 = vmax.f32 %v3653_v37, %v3665_v21  ;;  %v3652_v2 = vmax.f32 %v3622_v23, %v3639_v15  ;;  %v596_v23 = vld [vmem:[%s7240_s8] sm:$0xff] }
 0x825   : > { %v616_v37 = vld [vmem:[%s7243_s11] sm:$0x7] }
 0x826   : > { %v3693_v28 = vrot.slane %v3677_v49, 1  ;;  %v3716_v9 = vrot.slane %v3677_v49, 2  ;;  %5079 = vmatprep.subr.msk.mxu0 %vm4166_vm5, %v616_v37 }
 0x827   : > { %v3663_v39 = vpop.permute.xlu0 %3662  ;;  %v3633_v40 = vpop.permute.xlu1 %3632 }
 0x828   : > { %v3706_v42 = vmax.f32 %v3677_v49, %v3693_v28  ;;  %v3676_v26 = vmax.f32 %v3652_v2, %v3663_v39  ;;  %v3649_v35 = vmax.f32 %v3619_v63, %v3633_v40  ;;  %v598_v63 = vld [vmem:[%s7240_s8 + $0x10] sm:$0x3] }
 0x82a   : > { %v3729_v44 = vmax.f32 %v3706_v42, %v3716_v9  ;;  %v3691_v13 = vrot.slane %v3676_v26, 1  ;;  %v3714_v34 = vrot.slane %v3676_v26, 2  ;;  %v601_v42 = vld [vmem:[%s7242_s10 + $0x8] sm:$0xff] }
 0x82b   : > { %v3659_v29 = vpop.permute.xlu0 %3658  ;;  %v3631_v56 = vpop.permute.xlu1 %3630 }
 0x82c   : > { %v3692_v58 = vsel %vm1161_vm0, %v3689_v47, %v3691_v13  ;;  %v3694_v8 = vsel %vm1161_vm0, %v3691_v13, %v3693_v28  ;;  %v3674_v38 = vmax.f32 %v3650_v36, %v3659_v29  ;;  %5018 = vmatpush3.msk.msra.mxu1 %vm1353_vm1, %v3729_v44  ;;  %v3717_v51 = vsel %vm1353_vm1, %v3714_v34, %v3716_v9  ;;  %v602_v9 = vld [vmem:[%s7242_s10 + $0x10] sm:$0xff]  ;;  %v605_v36 = vld [vmem:[%s7242_s10 + $0x28] sm:$0xff]  ;;  %v607_v13 = vld [vmem:[%s7242_s10 + $0x38] sm:$0xff] }
 0x82d   : > { %v3705_v14 = vmax.f32 %v3676_v26, %v3694_v8  ;;  %5019 = vmatprep.subr.mxu1 %v5127_v3  ;;  %v3704_v32 = vmax.f32 %v3675_v60, %v3692_v58  ;;  %v3648_v41 = vmax.f32 %v3618_v18, %v3631_v56  ;;  %v3715_v33 = vsel %vm1353_vm1, %v3712_v16, %v3714_v34  ;;  %v603_v26 = vld [vmem:[%s7242_s10 + $0x18] sm:$0xff]  ;;  %v606_v44 = vld [vmem:[%s7242_s10 + $0x30] sm:$0xff]  ;;  %v608_v34 = vld [vmem:[%s7242_s10 + $0x40] sm:$0xff] }
 0x82e   : > { %v3687_v62 = vrot.slane %v3674_v38, 1  ;;  %v3710_v30 = vrot.slane %v3674_v38, 2  ;;  %v609_v29 = vld [vmem:[%s7242_s10 + $0x48] sm:$0xff]  ;;  %v610_v56 = vld [vmem:[%s7242_s10 + $0x50] sm:$0xff]  ;;  %v611_v58 = vld [vmem:[%s7242_s10 + $0x58] sm:$0xff] }
 0x82f   : > { %v3728_v0 = vmax.f32 %v3705_v14, %v3717_v51  ;;  %v3657_v5 = vpop.permute.xlu0 %3656  ;;  %v3655_v50 = vpop.permute.xlu1 %3654  ;;  %v3727_v45 = vmax.f32 %v3704_v32, %v3715_v33  ;;  %v612_v8 = vld [vmem:[%s7242_s10 + $0x60] sm:$0xff]  ;;  %v615_v14 = vld [vmem:[%s7242_s10 + $0x78] sm:$0x3f] }
 0x830   : > { %v3690_v43 = vsel %vm1161_vm0, %v3687_v62, %v3689_v47  ;;  %v3673_v6 = vmax.f32 %v3649_v35, %v3657_v5  ;;  %v3672_v48 = vmax.f32 %v3648_v41, %v3655_v50  ;;  %v3713_v17 = vsel %vm1353_vm1, %v3710_v30, %v3712_v16  ;;  %v604_v47 = vld [vmem:[%s7242_s10 + $0x20] sm:$0xff]  ;;  %v614_v16 = vld [vmem:[%s7242_s10 + $0x70] sm:$0xff] }
 0x831   : > { %v3703_v10 = vmax.f32 %v3674_v38, %v3690_v43  ;;  %5020 = vmatpush3.msra.mxu1 %v3728_v0  ;;  %v613_v38 = vld [vmem:[%s7242_s10 + $0x68] sm:$0xff] }
 0x832   : > { %v3685_v12 = vrot.slane %v3673_v6, 1  ;;  %v3708_v19 = vrot.slane %v3673_v6, 2  ;;  %v3684_v22 = vrot.slane %v3672_v48, 1  ;;  %5021 = vmatprep.subr.mxu1 %v5127_v3  ;;  %v3707_v61 = vrot.slane %v3672_v48, 2 }
 0x833   : > { %v3726_v55 = vmax.f32 %v3703_v10, %v3713_v17  ;;  %5022 = vmatpush3.msra.mxu1 %v3727_v45 }
 0x834   : > { %v3688_v46 = vsel %vm1161_vm0, %v3685_v12, %v3687_v62  ;;  %v3686_v52 = vsel %vm1161_vm0, %v3684_v22, %v3685_v12  ;;  %5023 = vmatprep.subr.mxu1 %v5127_v3  ;;  %v3711_v57 = vsel %vm1353_vm1, %v3708_v19, %v3710_v30  ;;  %v3709_v31 = vsel %vm1353_vm1, %v3707_v61, %v3708_v19  ;;  %v618_v12 = vld [vmem:[%s7244_s12 + $0x8] sm:$0xff]  ;;  %v617_v22 = vld [vmem:[%s7244_s12] sm:$0xff] }
 0x835   : > { %v3702_v20 = vmax.f32 %v3673_v6, %v3688_v46  ;;  %v3701_v27 = vmax.f32 %v3672_v48, %v3686_v52  ;;  %5024 = vmatpush3.msra.mxu1 %v3726_v55  ;;  %vm3730_vm0 = vcmask 375808   ;;  %vm3823_vm1 = vcmask 48128   ;;  %v620_v52 = vld [vmem:[%s7244_s12 + $0x18] sm:$0xff] }
 0x836   : > { %5025 = vmatprep.subr.mxu1 %v5127_v3 }
 0x837   : > { %v3725_v59 = vmax.f32 %v3702_v20, %v3711_v57  ;;  %v3724_v24 = vmax.f32 %v3701_v27, %v3709_v31  ;;  %v619_v27 = vld [vmem:[%s7244_s12 + $0x10] sm:$0xff]  ;;  %v622_v31 = vld [vmem:[%s7244_s12 + $0x28] sm:$0xff] }
 0x839   : > { %5026 = vmatpush3.msra.mxu1 %v3725_v59 }
 0x83a   : > { %5027 = vmatprep.subr.mxu1 %v5127_v3 }
 0x83b   : > { %5028 = vmatpush3.msra.mxu1 %v3724_v24 }
 0x83c   : > { %5030 = vmatmul.mubr.msk.f32.vlgmr.msra.gmra.mxu1 %vm3730_vm0, %v596_v23 }
 0x83d   : > { %5032 = vmatprep.mubr.msk.f32.mxu1 %vm5129_vm2, %v5127_v3 }
 0x840   : > { %5033 = vmatmul.mubr.msk.f32.gmra.mxu1 %vm3730_vm0, %v597_v53  ;;  %v621_v53 = vld [vmem:[%s7244_s12 + $0x20] sm:$0xff] }
 0x841   : > { %5035 = vmatprep.mubr.msk.f32.mxu1 %vm5129_vm2, %v5127_v3 }
 0x844   : > { %5036 = vmatmul.mubr.msk.f32.gmra.mxu1 %vm3730_vm0, %v598_v63 }
 0x845   : > { %5055 = vmatprep.mubr.msk.f32.mxu1 %vm3919_vm4, %v600_v1 }
 0x8fc   : > { %v3809_v18 = vpop.f32.mrf.mxu1 }
 0x8fd   : > { %5041 = vmatmul.mubr.msk.f32.vlgmr.msra.gmra.mxu0 %vm3823_vm1, %v3809_v18 }
 0x8fe   : > { %v5031_v11 = vpop.f32.mrf.mxu1  ;;  %5043 = vmatprep.mubr.msk.f32.mxu0 %vm5129_vm2, %v5127_v3  ;;  %5080 = vmatpush3.msk.msra.mxu0 %vm4166_vm5, %v616_v37  ;;  %v626_v37 = vld [vmem:[%s7244_s12 + $0x48] sm:$0xff] }
 0x8ff   : > { %v624_v11 = vld [vmem:[%s7244_s12 + $0x38] sm:$0xff] }
 0x900   : > { %v3814_v4 = vpop.f32.mrf.mxu1 }
 0x901   : > { %5044 = vmatmul.mubr.msk.f32.gmra.mxu0 %vm3823_vm1, %v3814_v4 }
 0x902   : > { %v5034_v54 = vpop.f32.mrf.mxu1  ;;  %5046 = vmatprep.mubr.msk.f32.mxu0 %vm5129_vm2, %v5127_v3  ;;  %vm3968_vm2 = vcmask 1041408  }
 0x904   : > { %v3819_v7 = vpop.f32.mrf.mxu1 }
 0x905   : > { %5047 = vmatmul.mubr.msk.f32.gmra.mxu0 %vm3823_vm1, %v3819_v7  ;;  %v623_v7 = vld [vmem:[%s7244_s12 + $0x30] sm:$0xff] }
 0x906   : > { %v5037_v25 = vpop.f32.mrf.mxu1 }
 0x9bd   : > { %v3902_v21 = vpop.f32.mrf.mxu0 }
 0x9be   : > { %v3916_v40 = vmin.f32 %v3902_v21, 3.8 }
 0x9bf   : > { %v5042_v15 = vpop.f32.mrf.mxu0 }
 0x9c1   : > { %v3907_v3 = vpop.f32.mrf.mxu0 }
 0x9c2   : > { %v3917_v39 = vmin.f32 %v3907_v3, 3.8  ;;  %v625_v3 = vld [vmem:[%s7244_s12 + $0x40] sm:$0xff] }
 0x9c3   : > { %v5045_v49 = vpop.f32.mrf.mxu0 }
 0x9c5   : > { %v3912_v60 = vpop.f32.mrf.mxu0 }
 0x9c6   : > { %v3918_v28 = vmin.f32 %v3912_v60, 3.8 }
 0x9c7   : > { %v5048_v2 = vpop.f32.mrf.mxu0 }
 0x9c8   : > { %5049 = vmatprep.subr.msk.mxu1 %vm3968_vm2, %v3918_v28 }
 0x9c9   : > { %5050 = vmatpush3.msk.msra.mxu1 %vm3968_vm2, %v3918_v28  ;;  %v628_v28 = vld [vmem:[%s7244_s12 + $0x58] sm:$0xff] }
 0x9ca   : > { %5051 = vmatprep.subr.mxu1 %v3917_v39 }
 0x9cb   : > { %5052 = vmatpush3.msra.mxu1 %v3917_v39 }
 0x9cc   : > { %5053 = vmatprep.subr.mxu1 %v3916_v40 }
 0x9cd   : > { %5054 = vmatpush3.msra.mxu1 %v3916_v40  ;;  %v627_v40 = vld [vmem:[%s7244_s12 + $0x50] sm:$0xff] }
 0x9ce   : > { %5056 = vmatmul.mubr.msk.f32.vlgmr.msra.gmra.mxu1 %vm3919_vm4, %v601_v42 }
 0x9cf   : > { %5058 = vmatprep.mubr.msk.f32.mxu1 %vm3919_vm4, %v602_v9 }
 0x9d2   : > { %5059 = vmatmul.mubr.msk.f32.gmra.mxu1 %vm3919_vm4, %v603_v26  ;;  %v630_v26 = vld [vmem:[%s7244_s12 + $0x68] sm:$0xff] }
 0x9d3   : > { %5061 = vmatprep.mubr.msk.f32.mxu1 %vm3919_vm4, %v604_v47 }
 0x9d6   : > { %5062 = vmatmul.mubr.msk.f32.gmra.mxu1 %vm3919_vm4, %v605_v36 }
 0x9d7   : > { %5064 = vmatprep.mubr.msk.f32.mxu1 %vm3919_vm4, %v606_v44  ;;  %v629_v44 = vld [vmem:[%s7244_s12 + $0x60] sm:$0xff] }
 0x9da   : > { %5065 = vmatmul.mubr.msk.f32.gmra.mxu1 %vm3919_vm4, %v607_v13 }
 0x9db   : > { %5067 = vmatprep.mubr.msk.f32.mxu1 %vm3919_vm4, %v608_v34 }
 0x9de   : > { %5068 = vmatmul.mubr.msk.f32.gmra.mxu1 %vm3919_vm4, %v609_v29  ;;  %v632_v29 = vld [vmem:[%s7244_s12 + $0x78] sm:$0x3f] }
 0x9df   : > { %5070 = vmatprep.mubr.msk.f32.mxu1 %vm3919_vm4, %v610_v56 }
 0x9e2   : > { %5071 = vmatmul.mubr.msk.f32.gmra.mxu1 %vm3919_vm4, %v611_v58 }
 0x9e3   : > { %5073 = vmatprep.mubr.msk.f32.mxu1 %vm3919_vm4, %v612_v8  ;;  %v631_v8 = vld [vmem:[%s7244_s12 + $0x70] sm:$0xff] }
 0x9e6   : > { %5074 = vmatmul.mubr.msk.f32.gmra.mxu1 %vm3919_vm4, %v613_v38 }
 0x9e7   : > { %5076 = vmatprep.mubr.msk.f32.mxu1 %vm3919_vm4, %v614_v16 }
 0x9ea   : > { %5077 = vmatmul.mubr.msk.f32.gmra.mxu1 %vm3919_vm4, %v615_v14 }
 0xa8e   : > { %v5057_v35 = vpop.f32.mrf.mxu1 }
 0xa90   : > { %v4038_v32 = vpop.f32.mrf.mxu1 }
 0xa91   : > { %5081 = vmatprep.mubr.msk.f32.mxu0 %vm4117_vm6, %v4038_v32 }
 0xa92   : > { %v5060_v51 = vpop.f32.mrf.mxu1  ;;  %5082 = vmatmul.mubr.msk.f32.vlgmr.msra.gmra.mxu0 %vm4117_vm6, %v5057_v35 }
 0xa94   : > { %v4048_v62 = vpop.f32.mrf.mxu1 }
 0xa95   : > { %5084 = vmatprep.mubr.msk.f32.mxu0 %vm4117_vm6, %v4048_v62 }
 0xa96   : > { %v5063_v30 = vpop.f32.mrf.mxu1  ;;  %5085 = vmatmul.mubr.msk.f32.gmra.mxu0 %vm4117_vm6, %v5060_v51 }
 0xa98   : > { %v4058_v41 = vpop.f32.mrf.mxu1 }
 0xa99   : > { %5087 = vmatprep.mubr.msk.f32.mxu0 %vm4117_vm6, %v4058_v41 }
 0xa9a   : > { %v5066_v0 = vpop.f32.mrf.mxu1  ;;  %5088 = vmatmul.mubr.msk.f32.gmra.mxu0 %vm4117_vm6, %v5063_v30 }
 0xa9c   : > { %v4068_v5 = vpop.f32.mrf.mxu1 }
 0xa9d   : > { %5090 = vmatprep.mubr.msk.f32.mxu0 %vm4117_vm6, %v4068_v5 }
 0xa9e   : > { %v5069_v50 = vpop.f32.mrf.mxu1  ;;  %5091 = vmatmul.mubr.msk.f32.gmra.mxu0 %vm4117_vm6, %v5066_v0 }
 0xaa0   : > { %v4078_v43 = vpop.f32.mrf.mxu1 }
 0xaa1   : > { %5093 = vmatprep.mubr.msk.f32.mxu0 %vm4117_vm6, %v4078_v43 }
 0xaa2   : > { %v5072_v6 = vpop.f32.mrf.mxu1  ;;  %5094 = vmatmul.mubr.msk.f32.gmra.mxu0 %vm4117_vm6, %v5069_v50 }
 0xaa4   : > { %v4088_v48 = vpop.f32.mrf.mxu1 }
 0xaa5   : > { %5096 = vmatprep.mubr.msk.f32.mxu0 %vm4117_vm6, %v4088_v48 }
 0xaa6   : > { %v5075_v33 = vpop.f32.mrf.mxu1  ;;  %5097 = vmatmul.mubr.msk.f32.gmra.mxu0 %vm4117_vm6, %v5072_v6 }
 0xaa8   : > { %v4098_v10 = vpop.f32.mrf.mxu1 }
 0xaa9   : > { %5099 = vmatprep.mubr.msk.f32.mxu0 %vm4117_vm6, %v4098_v10 }
 0xaaa   : > { %v5078_v45 = vpop.f32.mrf.mxu1  ;;  %5100 = vmatmul.mubr.msk.f32.gmra.mxu0 %vm4117_vm6, %v5075_v33 }
 0xaac   : > { %v4108_v17 = vpop.f32.mrf.mxu1 }
 0xaad   : > { %5102 = vmatprep.mubr.msk.f32.mxu0 %vm4117_vm6, %v4108_v17 }
 0xaae   : > { %5103 = vmatmul.mubr.msk.f32.gmra.mxu0 %vm4117_vm6, %v5078_v45 }
 0xb52   : > { %v5083_v19 = vpop.f32.mrf.mxu0 }
 0xb53   : > { %v4242_v55 = vadd.f32 %v5083_v19, %v618_v12 }
 0xb54   : > { %v4236_v46 = vpop.f32.mrf.mxu0 }
 0xb55   : > { %4317 = vst.msk [vmem:[%s7151_s14 + $0x8] sm:$0xff] %vm4315_vm7, %v4242_v55  ;;  %v4237_v61 = vadd.f32 %v4236_v46, %v617_v22 }
 0xb56   : > { %v5086_v20 = vpop.f32.mrf.mxu0 }
 0xb57   : > { %4316 = vst.msk [vmem:[%s7151_s14] sm:$0xff] %vm4315_vm7, %v4237_v61  ;;  %v4252_v57 = vadd.f32 %v5086_v20, %v620_v52 }
 0xb58   : > { %v4246_v59 = vpop.f32.mrf.mxu0 }
 0xb59   : > { %4319 = vst.msk [vmem:[%s7151_s14 + $0x18] sm:$0xff] %vm4315_vm7, %v4252_v57  ;;  %v4247_v24 = vadd.f32 %v4246_v59, %v619_v27 }
 0xb5a   : > { %v5089_v23 = vpop.f32.mrf.mxu0 }
 0xb5b   : > { %4318 = vst.msk [vmem:[%s7151_s14 + $0x10] sm:$0xff] %vm4315_vm7, %v4247_v24  ;;  %v4262_v63 = vadd.f32 %v5089_v23, %v622_v31 }
 0xb5c   : > { %v4256_v18 = vpop.f32.mrf.mxu0 }
 0xb5d   : > { %4321 = vst.msk [vmem:[%s7151_s14 + $0x28] sm:$0xff] %vm4315_vm7, %v4262_v63  ;;  %v4257_v4 = vadd.f32 %v4256_v18, %v621_v53 }
 0xb5e   : > { %v5092_v54 = vpop.f32.mrf.mxu0 }
 0xb5f   : > { %4320 = vst.msk [vmem:[%s7151_s14 + $0x20] sm:$0xff] %vm4315_vm7, %v4257_v4  ;;  %v4272_v25 = vadd.f32 %v5092_v54, %v624_v11 }
 0xb60   : > { %v4266_v1 = vpop.f32.mrf.mxu0 }
 0xb61   : > { %4323 = vst.msk [vmem:[%s7151_s14 + $0x38] sm:$0xff] %vm4315_vm7, %v4272_v25  ;;  %v4267_v21 = vadd.f32 %v4266_v1, %v623_v7 }
 0xb62   : > { %v5095_v15 = vpop.f32.mrf.mxu0 }
 0xb63   : > { %4322 = vst.msk [vmem:[%s7151_s14 + $0x30] sm:$0xff] %vm4315_vm7, %v4267_v21  ;;  %v4282_v49 = vadd.f32 %v5095_v15, %v626_v37 }
 0xb64   : > { %v4276_v60 = vpop.f32.mrf.mxu0 }
 0xb65   : > { %4325 = vst.msk [vmem:[%s7151_s14 + $0x48] sm:$0xff] %vm4315_vm7, %v4282_v49  ;;  %v4277_v2 = vadd.f32 %v4276_v60, %v625_v3 }
 0xb66   : > { %v5098_v39 = vpop.f32.mrf.mxu0 }
 0xb67   : > { %4324 = vst.msk [vmem:[%s7151_s14 + $0x40] sm:$0xff] %vm4315_vm7, %v4277_v2  ;;  %v4292_v42 = vadd.f32 %v5098_v39, %v628_v28 }
 0xb68   : > { %v4286_v9 = vpop.f32.mrf.mxu0 }
 0xb69   : > { %4327 = vst.msk [vmem:[%s7151_s14 + $0x58] sm:$0xff] %vm4315_vm7, %v4292_v42  ;;  %v4287_v47 = vadd.f32 %v4286_v9, %v627_v40 }
 0xb6a   : > { %v5101_v36 = vpop.f32.mrf.mxu0 }
 0xb6b   : > { %4326 = vst.msk [vmem:[%s7151_s14 + $0x50] sm:$0xff] %vm4315_vm7, %v4287_v47  ;;  %v4302_v13 = vadd.f32 %v5101_v36, %v630_v26 }
 0xb6c   : > { %v4296_v34 = vpop.f32.mrf.mxu0 }
 0xb6d   : > { %4329 = vst.msk [vmem:[%s7151_s14 + $0x68] sm:$0xff] %vm4315_vm7, %v4302_v13  ;;  %v4297_v56 = vadd.f32 %v4296_v34, %v629_v44 }
 0xb6e   : > { %v5104_v58 = vpop.f32.mrf.mxu0 }
 0xb6f   : > { %4328 = vst.msk [vmem:[%s7151_s14 + $0x60] sm:$0xff] %vm4315_vm7, %v4297_v56  ;;  %v4312_v38 = vadd.f32 %v5104_v58, %v632_v29 }
 0xb70   : > { %v4306_v16 = vpop.f32.mrf.mxu0 }
 0xb71   : > { %4332 = vst.msk [vmem:[%s7151_s14 + $0x78] sm:$0x3f] %vm4331_vm8, %v4312_v38  ;;  %v4307_v14 = vadd.f32 %v4306_v16, %v631_v8 }
 0xb73   : > { %4330 = vst.msk [vmem:[%s7151_s14 + $0x70] sm:$0xff] %vm4315_vm7, %v4307_v14 }
 0xb74 PF: > { %s23_s25 = sadd.s32 1, %s5124_s25  }
 0xb75   : > { %p20_p4 = scmp.ge.s32.totalorder %s23_s25, 4  }
 0xb77   :  { %22 = sbr.rel (!%p20_p4) target bundleno = 1 (0x1), region = 102 }

</bundles_post_ra>
